<compile_context>
chip_gen: v5e
topology: v5e:2x2
jax: 0.10.0
libtpu: 0.0.40
codegen_flags: <defaults>
</compile_context>

<pallas_src>
import functools

import jax
import jax.numpy as jnp
from jax.experimental import pallas as pl
from jax.experimental.pallas import tpu as pltpu

EPS = 1e-5
LANE = 128  # TPU lane width; channel axes are padded to a multiple of this.


def _ceil_to(x, m):
    return ((x + m - 1) // m) * m


# ----------------------------- Pallas kernels ------------------------------ #
def conv3x3_kernel(x_ref, w_ref, scale_ref, shift_ref,      # inputs
                   y_ref, s_ref, ss_ref,                    # outputs
                   xp_ref, pat_ref,                         # VMEM scratch
                   *, cin, apply_input_bnrelu):
    """3x3 'SAME' conv on one batch element via a single im2col MXU matmul.

    x_ref    : (1, H, W, cin)       raw input block (cin may be < Cin_p)
    w_ref    : (9*Cin_p, Cout_p)    taps flattened into the contraction dim
    scale_ref: (1, Cin_p)           producer-BN scale (used iff fused)
    shift_ref: (1, Cin_p)           producer-BN shift (used iff fused)
    y_ref    : (1, H, W, Cout_p)    conv output (pre-BN), lane-dense
    s_ref    : (1, 1, Cout_p)       per-sample channel sums       (BN mean)
    ss_ref   : (1, 1, Cout_p)       per-sample channel sum-of-sq  (BN var)
    xp_ref   : (H+2, W+2, Cin_p)    zero-padded image scratch
    pat_ref  : (H*W, 9*Cin_p)       im2col patch scratch
    """
    H, W = y_ref.shape[1], y_ref.shape[2]
    Cout_p = y_ref.shape[3]
    Cin_p = xp_ref.shape[2]

    # In-kernel zero padding: zero halo + padded channels, then write the
    # (optionally BN+ReLU'd) image into the interior.
    xp_ref[...] = jnp.zeros_like(xp_ref)
    x = x_ref[0].astype(jnp.float32)                       # (H, W, cin)
    if apply_input_bnrelu:
        # Fused producer BatchNorm + ReLU (per-channel affine on the lane axis).
        x = jnp.maximum(x * scale_ref[0, :cin] + shift_ref[0, :cin], 0.0)
    xp_ref[1:H + 1, 1:W + 1, :cin] = x

    # im2col: gather the 9 shifted views once into a single patch buffer.
    # Column blocks are 128-lane aligned because Cin_p is a multiple of 128.
    for t in range(9):
        dy, dx = t // 3, t % 3
        pat_ref[:, t * Cin_p:(t + 1) * Cin_p] = (
            xp_ref[dy:dy + H, dx:dx + W, :].reshape(H * W, Cin_p))

    # One MXU matmul with contraction depth K = 9 * Cin_p.
    acc = jnp.dot(pat_ref[...], w_ref[...], preferred_element_type=jnp.float32)

    # NOTE: no conv-bias add here — it cancels exactly under training-mode BN.
    y_ref[...] = acc.reshape(1, H, W, Cout_p).astype(y_ref.dtype)
    s_ref[...] = jnp.sum(acc, axis=0).reshape(1, 1, Cout_p)
    ss_ref[...] = jnp.sum(acc * acc, axis=0).reshape(1, 1, Cout_p)


def bn_relu_kernel(y_ref, scale_ref, shift_ref, o_ref):
    # y_ref: (1, H, W, C) lane-dense; scale/shift: (1, C); o_ref: (1, H, W, C)
    y = y_ref[...].astype(jnp.float32)
    o = y * scale_ref[0] + shift_ref[0]                    # lane-axis broadcast
    o_ref[...] = jnp.maximum(o, 0.0).astype(o_ref.dtype)


# ------------------------------ host wrappers ------------------------------ #
def conv3x3(x, w_packed, scale_in, shift_in, *, apply_input_bnrelu):
    """x: (N,H,W,cin); w_packed: (9*Cin_p, Cout_p); scale/shift: (1, Cin_p)."""
    N, H, W, cin = x.shape
    K, Cout_p = w_packed.shape
    Cin_p = K // 9

    kernel = functools.partial(
        conv3x3_kernel, cin=cin, apply_input_bnrelu=apply_input_bnrelu)

    out_shapes = (
        jax.ShapeDtypeStruct((N, H, W, Cout_p), jnp.float32),
        jax.ShapeDtypeStruct((N, 1, Cout_p), jnp.float32),
        jax.ShapeDtypeStruct((N, 1, Cout_p), jnp.float32),
    )
    return pl.pallas_call(
        kernel,
        out_shape=out_shapes,
        grid=(N,),
        in_specs=[
            pl.BlockSpec((1, H, W, cin), lambda n: (n, 0, 0, 0)),
            # Constant index_maps: weight / affine blocks are not re-fetched
            # per grid step.
            pl.BlockSpec((K, Cout_p), lambda n: (0, 0)),
            pl.BlockSpec((1, Cin_p), lambda n: (0, 0)),
            pl.BlockSpec((1, Cin_p), lambda n: (0, 0)),
        ],
        out_specs=(
            pl.BlockSpec((1, H, W, Cout_p), lambda n: (n, 0, 0, 0)),
            pl.BlockSpec((1, 1, Cout_p), lambda n: (n, 0, 0)),
            pl.BlockSpec((1, 1, Cout_p), lambda n: (n, 0, 0)),
        ),
        scratch_shapes=[
            pltpu.VMEM((H + 2, W + 2, Cin_p), jnp.float32),   # padded image
            pltpu.VMEM((H * W, K), jnp.float32),              # im2col patches
        ],
        compiler_params=pltpu.CompilerParams(
            dimension_semantics=("parallel",),
            vmem_limit_bytes=48 * 1024 * 1024,   # stays under v7x's 64 MiB VMEM
        ),
    )(x, w_packed, scale_in, shift_in)


def bn_relu(y, scale, shift):
    """y: (N,H,W,C) lane-dense; scale/shift: (1,C)."""
    N, H, W, C = y.shape
    return pl.pallas_call(
        bn_relu_kernel,
        out_shape=jax.ShapeDtypeStruct((N, H, W, C), jnp.float32),
        grid=(N,),
        in_specs=[
            pl.BlockSpec((1, H, W, C), lambda n: (n, 0, 0, 0)),
            pl.BlockSpec((1, C), lambda n: (0, 0)),
            pl.BlockSpec((1, C), lambda n: (0, 0)),
        ],
        out_specs=pl.BlockSpec((1, H, W, C), lambda n: (n, 0, 0, 0)),
        compiler_params=pltpu.CompilerParams(dimension_semantics=("parallel",)),
    )(y, scale, shift)


def _pack_weights(w, cin_p, cout_p):
    """(3,3,Cin,Cout) HWIO -> (9*cin_p, cout_p), channels zero-padded."""
    kh, kw, cin, cout = w.shape
    wp = jnp.zeros((kh, kw, cin_p, cout_p), jnp.float32)
    wp = wp.at[:, :, :cin, :cout].set(w.astype(jnp.float32))
    return wp.reshape(kh * kw * cin_p, cout_p)


def _pad_vec(v, n):
    # gamma/beta padded with 0 so padded channels stay exactly 0 through BN+ReLU.
    return jnp.zeros((n,), jnp.float32).at[:v.shape[0]].set(v.astype(jnp.float32))


def _finalize_bn(s, ss, gamma_p, beta_p, count):
    """Training-mode BatchNorm batch stats -> per-channel affine (scale, shift)."""
    mean = jnp.sum(s, axis=(0, 1)) / count
    var = jnp.sum(ss, axis=(0, 1)) / count - mean * mean
    var = jnp.maximum(var, 0.0)            # guard E[y^2]-mean^2 cancellation
    scale = gamma_p * jax.lax.rsqrt(var + EPS)
    shift = beta_p - mean * scale
    return scale.reshape(1, -1), shift.reshape(1, -1)


@jax.jit
def flexible_double_conv(x_nchw, params):
    N, Cin, H, W = x_nchw.shape
    Cout = params["w1"].shape[-1]
    cin_p = _ceil_to(Cin, LANE)
    cout_p = _ceil_to(Cout, LANE)

    x = jnp.transpose(x_nchw, (0, 2, 3, 1)).astype(jnp.float32)   # NCHW -> NHWC

    w1p = _pack_weights(params["w1"], cin_p, cout_p)
    w2p = _pack_weights(params["w2"], cout_p, cout_p)
    g1p, bt1p = _pad_vec(params["g1"], cout_p), _pad_vec(params["bt1"], cout_p)
    g2p, bt2p = _pad_vec(params["g2"], cout_p), _pad_vec(params["bt2"], cout_p)
    # Conv biases (params["b1"], params["b2"]) shift the batch mean by the same
    # per-channel constant they add, so training-mode BatchNorm cancels them
    # exactly; they are intentionally never sent to the kernels.

    count = float(N * H * W)
    ones_in = jnp.ones((1, cin_p), jnp.float32)
    zero_in = jnp.zeros((1, cin_p), jnp.float32)

    # Stage 1: conv only (its BN+ReLU is deferred into the stage-2 kernel).
    y1, s1, ss1 = conv3x3(x, w1p, ones_in, zero_in, apply_input_bnrelu=False)
    scale1, shift1 = _finalize_bn(s1, ss1, g1p, bt1p, count)

    # Stage 2: fused [BN1 + ReLU1 on the input read] + conv2.
    y2, s2, ss2 = conv3x3(y1, w2p, scale1, shift1, apply_input_bnrelu=True)
    scale2, shift2 = _finalize_bn(s2, ss2, g2p, bt2p, count)

    # Final BN2 + ReLU2 (lane-dense elementwise), then trim pad and go NCHW.
    out = bn_relu(y2, scale2, shift2)                       # (N, H, W, cout_p)
    return jnp.transpose(out[..., :Cout], (0, 3, 1, 2))     # NHWC -> NCHW


# ------------------------------ pure-JAX ref -------------------------------- #
def _ref_stage(x, w, b, gamma, beta):
    y = jax.lax.conv_general_dilated(
        x, w, (1, 1), "SAME", dimension_numbers=("NHWC", "HWIO", "NHWC")) + b
    mean = jnp.mean(y, axis=(0, 1, 2))
    var = jnp.mean((y - mean) ** 2, axis=(0, 1, 2))
    return jnp.maximum((y - mean) / jnp.sqrt(var + EPS) * gamma + beta, 0.0)


def reference(x_nchw, params):
    x = jnp.transpose(x_nchw, (0, 2, 3, 1))
    h = _ref_stage(x, params["w1"], params["b1"], params["g1"], params["bt1"])
    h = _ref_stage(h, params["w2"], params["b2"], params["g2"], params["bt2"])
    return jnp.transpose(h, (0, 3, 1, 2))


if __name__ == "__main__":
    N, Cin, Cout, H, W = 2, 4, 8, 16, 16
    key = jax.random.PRNGKey(0)
    ks = jax.random.split(key, 5)
    x = jax.random.normal(ks[0], (N, Cin, H, W), jnp.float32)
    params = dict(
        w1=0.1 * jax.random.normal(ks[1], (3, 3, Cin, Cout), jnp.float32),
        b1=0.1 * jax.random.normal(ks[2], (Cout,), jnp.float32),
        g1=jnp.ones((Cout,), jnp.float32),
        bt1=jnp.zeros((Cout,), jnp.float32),
        w2=0.1 * jax.random.normal(ks[3], (3, 3, Cout, Cout), jnp.float32),
        b2=0.1 * jax.random.normal(ks[4], (Cout,), jnp.float32),
        g2=jnp.ones((Cout,), jnp.float32),
        bt2=jnp.zeros((Cout,), jnp.float32),
    )

    out = flexible_double_conv(x, params)
    jax.block_until_ready(out)

    ref = reference(x, params)
    assert out.shape == (N, Cout, H, W)
    assert bool(jnp.allclose(out, ref, rtol=1e-3, atol=1e-3))
    print("KERNEL_OK")
</pallas_src>

<mosaic_0001>
module attributes {stable_mosaic.version = 11 : i64} {
  func.func @conv3x3_kernel(%arg0: i32, %arg1: memref<1x16x16x4xf32, #tpu.memory_space<vmem>>, %arg2: memref<1152x128xf32, #tpu.memory_space<vmem>>, %arg3: memref<1x128xf32, #tpu.memory_space<vmem>>, %arg4: memref<1x128xf32, #tpu.memory_space<vmem>>, %arg5: memref<1x16x16x128xf32, #tpu.memory_space<vmem>>, %arg6: memref<1x1x128xf32, #tpu.memory_space<vmem>>, %arg7: memref<1x1x128xf32, #tpu.memory_space<vmem>>, %arg8: memref<18x18x128xf32, #tpu.memory_space<vmem>>, %arg9: memref<256x1152xf32, #tpu.memory_space<vmem>>) attributes {dimension_semantics = [#tpu.dimension_semantics<parallel>], iteration_bounds = array<i64: 2>, scalar_prefetch = 0 : i64, scratch_operands = 2 : i64, tpu.core_type = #tpu.core_type<tc>, window_params = [{transform_indices = @transform_0, window_bounds = array<i64: 1, 16, 16, 4>}, {pipeline_mode = #tpu.pipeline_mode<synchronous>, transform_indices = @transform_1, window_bounds = array<i64: 1152, 128>}, {pipeline_mode = #tpu.pipeline_mode<synchronous>, transform_indices = @transform_2, window_bounds = array<i64: 1, 128>}, {pipeline_mode = #tpu.pipeline_mode<synchronous>, transform_indices = @transform_3, window_bounds = array<i64: 1, 128>}, {transform_indices = @transform_4, window_bounds = array<i64: 1, 16, 16, 128>}, {transform_indices = @transform_5, window_bounds = array<i64: 1, 1, 128>}, {transform_indices = @transform_6, window_bounds = array<i64: 1, 1, 128>}]} {
    %cst = arith.constant 0.000000e+00 : f32
    %0 = vector.broadcast %cst : f32 to vector<18x18x128xf32>
    %c0 = arith.constant 0 : index
    %c0_0 = arith.constant 0 : index
    %c0_1 = arith.constant 0 : index
    %1 = vector.load %arg8[%c0, %c0_0, %c0_1] : memref<18x18x128xf32, #tpu.memory_space<vmem>>, vector<18x18x128xf32>
    tpu.vector_store %arg8[%c0, %c0_0, %c0_1], %0 {strides = array<i32>} : memref<18x18x128xf32, #tpu.memory_space<vmem>>, vector<18x18x128xf32>,
    %c0_2 = arith.constant 0 : index
    %c0_3 = arith.constant 0 : index
    %c0_4 = arith.constant 0 : index
    %c0_5 = arith.constant 0 : index
    %2 = vector.load %arg1[%c0_2, %c0_3, %c0_4, %c0_5] : memref<1x16x16x4xf32, #tpu.memory_space<vmem>>, vector<1x16x16x4xf32>
    %3 = vector.shape_cast %2 : vector<1x16x16x4xf32> to vector<16x16x4xf32>
    %c1 = arith.constant 1 : index
    %c1_6 = arith.constant 1 : index
    %c0_7 = arith.constant 0 : index
    %4 = vector.load %arg8[%c1, %c1_6, %c0_7] : memref<18x18x128xf32, #tpu.memory_space<vmem>>, vector<16x16x4xf32>
    tpu.vector_store %arg8[%c1, %c1_6, %c0_7], %3 {strides = array<i32>} : memref<18x18x128xf32, #tpu.memory_space<vmem>>, vector<16x16x4xf32>,
    %c0_8 = arith.constant 0 : index
    %c0_9 = arith.constant 0 : index
    %c0_10 = arith.constant 0 : index
    %5 = vector.load %arg8[%c0_8, %c0_9, %c0_10] : memref<18x18x128xf32, #tpu.memory_space<vmem>>, vector<16x16x128xf32>
    %6 = vector.shape_cast %5 : vector<16x16x128xf32> to vector<256x128xf32>
    %c0_11 = arith.constant 0 : index
    %c0_12 = arith.constant 0 : index
    %7 = vector.load %arg9[%c0_11, %c0_12] : memref<256x1152xf32, #tpu.memory_space<vmem>>, vector<256x128xf32>
    tpu.vector_store %arg9[%c0_11, %c0_12], %6 {strides = array<i32>} : memref<256x1152xf32, #tpu.memory_space<vmem>>, vector<256x128xf32>,
    %c0_13 = arith.constant 0 : index
    %c1_14 = arith.constant 1 : index
    %c0_15 = arith.constant 0 : index
    %8 = vector.load %arg8[%c0_13, %c1_14, %c0_15] : memref<18x18x128xf32, #tpu.memory_space<vmem>>, vector<16x16x128xf32>
    %9 = vector.shape_cast %8 : vector<16x16x128xf32> to vector<256x128xf32>
    %c0_16 = arith.constant 0 : index
    %c128 = arith.constant 128 : index
    %10 = vector.load %arg9[%c0_16, %c128] : memref<256x1152xf32, #tpu.memory_space<vmem>>, vector<256x128xf32>
    tpu.vector_store %arg9[%c0_16, %c128], %9 {strides = array<i32>} : memref<256x1152xf32, #tpu.memory_space<vmem>>, vector<256x128xf32>,
    %c0_17 = arith.constant 0 : index
    %c2 = arith.constant 2 : index
    %c0_18 = arith.constant 0 : index
    %11 = vector.load %arg8[%c0_17, %c2, %c0_18] : memref<18x18x128xf32, #tpu.memory_space<vmem>>, vector<16x16x128xf32>
    %12 = vector.shape_cast %11 : vector<16x16x128xf32> to vector<256x128xf32>
    %c0_19 = arith.constant 0 : index
    %c256 = arith.constant 256 : index
    %13 = vector.load %arg9[%c0_19, %c256] : memref<256x1152xf32, #tpu.memory_space<vmem>>, vector<256x128xf32>
    tpu.vector_store %arg9[%c0_19, %c256], %12 {strides = array<i32>} : memref<256x1152xf32, #tpu.memory_space<vmem>>, vector<256x128xf32>,
    %c1_20 = arith.constant 1 : index
    %c0_21 = arith.constant 0 : index
    %c0_22 = arith.constant 0 : index
    %14 = vector.load %arg8[%c1_20, %c0_21, %c0_22] : memref<18x18x128xf32, #tpu.memory_space<vmem>>, vector<16x16x128xf32>
    %15 = vector.shape_cast %14 : vector<16x16x128xf32> to vector<256x128xf32>
    %c0_23 = arith.constant 0 : index
    %c384 = arith.constant 384 : index
    %16 = vector.load %arg9[%c0_23, %c384] : memref<256x1152xf32, #tpu.memory_space<vmem>>, vector<256x128xf32>
    tpu.vector_store %arg9[%c0_23, %c384], %15 {strides = array<i32>} : memref<256x1152xf32, #tpu.memory_space<vmem>>, vector<256x128xf32>,
    %c1_24 = arith.constant 1 : index
    %c1_25 = arith.constant 1 : index
    %c0_26 = arith.constant 0 : index
    %17 = vector.load %arg8[%c1_24, %c1_25, %c0_26] : memref<18x18x128xf32, #tpu.memory_space<vmem>>, vector<16x16x128xf32>
    %18 = vector.shape_cast %17 : vector<16x16x128xf32> to vector<256x128xf32>
    %c0_27 = arith.constant 0 : index
    %c512 = arith.constant 512 : index
    %19 = vector.load %arg9[%c0_27, %c512] : memref<256x1152xf32, #tpu.memory_space<vmem>>, vector<256x128xf32>
    tpu.vector_store %arg9[%c0_27, %c512], %18 {strides = array<i32>} : memref<256x1152xf32, #tpu.memory_space<vmem>>, vector<256x128xf32>,
    %c1_28 = arith.constant 1 : index
    %c2_29 = arith.constant 2 : index
    %c0_30 = arith.constant 0 : index
    %20 = vector.load %arg8[%c1_28, %c2_29, %c0_30] : memref<18x18x128xf32, #tpu.memory_space<vmem>>, vector<16x16x128xf32>
    %21 = vector.shape_cast %20 : vector<16x16x128xf32> to vector<256x128xf32>
    %c0_31 = arith.constant 0 : index
    %c640 = arith.constant 640 : index
    %22 = vector.load %arg9[%c0_31, %c640] : memref<256x1152xf32, #tpu.memory_space<vmem>>, vector<256x128xf32>
    tpu.vector_store %arg9[%c0_31, %c640], %21 {strides = array<i32>} : memref<256x1152xf32, #tpu.memory_space<vmem>>, vector<256x128xf32>,
    %c2_32 = arith.constant 2 : index
    %c0_33 = arith.constant 0 : index
    %c0_34 = arith.constant 0 : index
    %23 = vector.load %arg8[%c2_32, %c0_33, %c0_34] : memref<18x18x128xf32, #tpu.memory_space<vmem>>, vector<16x16x128xf32>
    %24 = vector.shape_cast %23 : vector<16x16x128xf32> to vector<256x128xf32>
    %c0_35 = arith.constant 0 : index
    %c768 = arith.constant 768 : index
    %25 = vector.load %arg9[%c0_35, %c768] : memref<256x1152xf32, #tpu.memory_space<vmem>>, vector<256x128xf32>
    tpu.vector_store %arg9[%c0_35, %c768], %24 {strides = array<i32>} : memref<256x1152xf32, #tpu.memory_space<vmem>>, vector<256x128xf32>,
    %c2_36 = arith.constant 2 : index
    %c1_37 = arith.constant 1 : index
    %c0_38 = arith.constant 0 : index
    %26 = vector.load %arg8[%c2_36, %c1_37, %c0_38] : memref<18x18x128xf32, #tpu.memory_space<vmem>>, vector<16x16x128xf32>
    %27 = vector.shape_cast %26 : vector<16x16x128xf32> to vector<256x128xf32>
    %c0_39 = arith.constant 0 : index
    %c896 = arith.constant 896 : index
    %28 = vector.load %arg9[%c0_39, %c896] : memref<256x1152xf32, #tpu.memory_space<vmem>>, vector<256x128xf32>
    tpu.vector_store %arg9[%c0_39, %c896], %27 {strides = array<i32>} : memref<256x1152xf32, #tpu.memory_space<vmem>>, vector<256x128xf32>,
    %c2_40 = arith.constant 2 : index
    %c2_41 = arith.constant 2 : index
    %c0_42 = arith.constant 0 : index
    %29 = vector.load %arg8[%c2_40, %c2_41, %c0_42] : memref<18x18x128xf32, #tpu.memory_space<vmem>>, vector<16x16x128xf32>
    %30 = vector.shape_cast %29 : vector<16x16x128xf32> to vector<256x128xf32>
    %c0_43 = arith.constant 0 : index
    %c1024 = arith.constant 1024 : index
    %31 = vector.load %arg9[%c0_43, %c1024] : memref<256x1152xf32, #tpu.memory_space<vmem>>, vector<256x128xf32>
    tpu.vector_store %arg9[%c0_43, %c1024], %30 {strides = array<i32>} : memref<256x1152xf32, #tpu.memory_space<vmem>>, vector<256x128xf32>,
    %c0_44 = arith.constant 0 : index
    %c0_45 = arith.constant 0 : index
    %32 = vector.load %arg9[%c0_44, %c0_45] : memref<256x1152xf32, #tpu.memory_space<vmem>>, vector<256x1152xf32>
    %c0_46 = arith.constant 0 : index
    %c0_47 = arith.constant 0 : index
    %33 = vector.load %arg2[%c0_46, %c0_47] : memref<1152x128xf32, #tpu.memory_space<vmem>>, vector<1152x128xf32>
    %cst_48 = arith.constant dense<0.000000e+00> : vector<256x128xf32>
    %34 = tpu.matmul %32, %33, %cst_48 {dimension_numbers = #tpu.dot_dimension_numbers<[1], [0], [0], [1], [0, 0, 1, 1], [], []>} : vector<256x1152xf32>, vector<1152x128xf32>, vector<256x128xf32> -> vector<256x128xf32>
    %35 = vector.shape_cast %34 : vector<256x128xf32> to vector<1x16x16x128xf32>
    %c0_49 = arith.constant 0 : index
    %c0_50 = arith.constant 0 : index
    %c0_51 = arith.constant 0 : index
    %c0_52 = arith.constant 0 : index
    %36 = vector.load %arg5[%c0_49, %c0_50, %c0_51, %c0_52] : memref<1x16x16x128xf32, #tpu.memory_space<vmem>>, vector<1x16x16x128xf32>
    tpu.vector_store %arg5[%c0_49, %c0_50, %c0_51, %c0_52], %35 {strides = array<i32>} : memref<1x16x16x128xf32, #tpu.memory_space<vmem>>, vector<1x16x16x128xf32>,
    %cst_53 = arith.constant dense<0.000000e+00> : vector<128xf32>
    %37 = vector.multi_reduction <add>, %34, %cst_53 [0] : vector<256x128xf32> to vector<128xf32>
    %38 = vector.shape_cast %37 : vector<128xf32> to vector<1x1x128xf32>
    %c0_54 = arith.constant 0 : index
    %c0_55 = arith.constant 0 : index
    %c0_56 = arith.constant 0 : index
    %39 = vector.load %arg6[%c0_54, %c0_55, %c0_56] : memref<1x1x128xf32, #tpu.memory_space<vmem>>, vector<1x1x128xf32>
    tpu.vector_store %arg6[%c0_54, %c0_55, %c0_56], %38 {strides = array<i32>} : memref<1x1x128xf32, #tpu.memory_space<vmem>>, vector<1x1x128xf32>,
    %40 = arith.mulf %34, %34 : vector<256x128xf32>
    %cst_57 = arith.constant dense<0.000000e+00> : vector<128xf32>
    %41 = vector.multi_reduction <add>, %40, %cst_57 [0] : vector<256x128xf32> to vector<128xf32>
    %42 = vector.shape_cast %41 : vector<128xf32> to vector<1x1x128xf32>
    %c0_58 = arith.constant 0 : index
    %c0_59 = arith.constant 0 : index
    %c0_60 = arith.constant 0 : index
    %43 = vector.load %arg7[%c0_58, %c0_59, %c0_60] : memref<1x1x128xf32, #tpu.memory_space<vmem>>, vector<1x1x128xf32>
    tpu.vector_store %arg7[%c0_58, %c0_59, %c0_60], %42 {strides = array<i32>} : memref<1x1x128xf32, #tpu.memory_space<vmem>>, vector<1x1x128xf32>,
    return
  }
  func.func @transform_0(%arg0: i32) -> (i32, i32, i32, i32) {
    %c0_i32 = arith.constant 0 : i32
    %c0_i32_0 = arith.constant 0 : i32
    %c0_i32_1 = arith.constant 0 : i32
    %c0_i32_2 = arith.constant 0 : i32
    return %arg0, %c0_i32, %c0_i32_0, %c0_i32_1 : i32, i32, i32, i32
  }
  func.func @transform_1(%arg0: i32) -> (i32, i32) {
    %c0_i32 = arith.constant 0 : i32
    %c0_i32_0 = arith.constant 0 : i32
    %c0_i32_1 = arith.constant 0 : i32
    return %c0_i32, %c0_i32_0 : i32, i32
  }
  func.func @transform_2(%arg0: i32) -> (i32, i32) {
    %c0_i32 = arith.constant 0 : i32
    %c0_i32_0 = arith.constant 0 : i32
    %c0_i32_1 = arith.constant 0 : i32
    return %c0_i32, %c0_i32_0 : i32, i32
  }
  func.func @transform_3(%arg0: i32) -> (i32, i32) {
    %c0_i32 = arith.constant 0 : i32
    %c0_i32_0 = arith.constant 0 : i32
    %c0_i32_1 = arith.constant 0 : i32
    return %c0_i32, %c0_i32_0 : i32, i32
  }
  func.func @transform_4(%arg0: i32) -> (i32, i32, i32, i32) {
    %c0_i32 = arith.constant 0 : i32
    %c0_i32_0 = arith.constant 0 : i32
    %c0_i32_1 = arith.constant 0 : i32
    %c0_i32_2 = arith.constant 0 : i32
    return %arg0, %c0_i32, %c0_i32_0, %c0_i32_1 : i32, i32, i32, i32
  }
  func.func @transform_5(%arg0: i32) -> (i32, i32, i32) {
    %c0_i32 = arith.constant 0 : i32
    %c0_i32_0 = arith.constant 0 : i32
    %c0_i32_1 = arith.constant 0 : i32
    return %arg0, %c0_i32, %c0_i32_0 : i32, i32, i32
  }
  func.func @transform_6(%arg0: i32) -> (i32, i32, i32) {
    %c0_i32 = arith.constant 0 : i32
    %c0_i32_0 = arith.constant 0 : i32
    %c0_i32_1 = arith.constant 0 : i32
    return %arg0, %c0_i32, %c0_i32_0 : i32, i32, i32
  }
}

module attributes {stable_mosaic.version = 11 : i64} {
  func.func @bn_relu_kernel(%arg0: i32, %arg1: memref<1x16x16x128xf32, #tpu.memory_space<vmem>>, %arg2: memref<1x128xf32, #tpu.memory_space<vmem>>, %arg3: memref<1x128xf32, #tpu.memory_space<vmem>>, %arg4: memref<1x16x16x128xf32, #tpu.memory_space<vmem>>) attributes {dimension_semantics = [#tpu.dimension_semantics<parallel>], iteration_bounds = array<i64: 2>, scalar_prefetch = 0 : i64, scratch_operands = 0 : i64, tpu.core_type = #tpu.core_type<tc>, window_params = [{transform_indices = @transform_0, window_bounds = array<i64: 1, 16, 16, 128>}, {pipeline_mode = #tpu.pipeline_mode<synchronous>, transform_indices = @transform_1, window_bounds = array<i64: 1, 128>}, {pipeline_mode = #tpu.pipeline_mode<synchronous>, transform_indices = @transform_2, window_bounds = array<i64: 1, 128>}, {transform_indices = @transform_3, window_bounds = array<i64: 1, 16, 16, 128>}]} {
    %c0 = arith.constant 0 : index
    %c0_0 = arith.constant 0 : index
    %c0_1 = arith.constant 0 : index
    %c0_2 = arith.constant 0 : index
    %0 = vector.load %arg1[%c0, %c0_0, %c0_1, %c0_2] : memref<1x16x16x128xf32, #tpu.memory_space<vmem>>, vector<1x16x16x128xf32>
    %c0_3 = arith.constant 0 : index
    %c0_4 = arith.constant 0 : index
    %1 = vector.load %arg2[%c0_3, %c0_4] : memref<1x128xf32, #tpu.memory_space<vmem>>, vector<1x128xf32>
    %2 = vector.shape_cast %1 : vector<1x128xf32> to vector<128xf32>
    %3 = vector.shape_cast %2 : vector<128xf32> to vector<1x1x1x128xf32>
    %4 = vector.broadcast %3 : vector<1x1x1x128xf32> to vector<1x16x16x128xf32>
    %5 = arith.mulf %0, %4 : vector<1x16x16x128xf32>
    %c0_5 = arith.constant 0 : index
    %c0_6 = arith.constant 0 : index
    %6 = vector.load %arg3[%c0_5, %c0_6] : memref<1x128xf32, #tpu.memory_space<vmem>>, vector<1x128xf32>
    %7 = vector.shape_cast %6 : vector<1x128xf32> to vector<128xf32>
    %8 = vector.shape_cast %7 : vector<128xf32> to vector<1x1x1x128xf32>
    %9 = vector.broadcast %8 : vector<1x1x1x128xf32> to vector<1x16x16x128xf32>
    %10 = arith.addf %5, %9 : vector<1x16x16x128xf32>
    %cst = arith.constant 0.000000e+00 : f32
    %11 = vector.broadcast %cst : f32 to vector<1x16x16x128xf32>
    %12 = arith.maximumf %10, %11 : vector<1x16x16x128xf32>
    %c0_7 = arith.constant 0 : index
    %c0_8 = arith.constant 0 : index
    %c0_9 = arith.constant 0 : index
    %c0_10 = arith.constant 0 : index
    %13 = vector.load %arg4[%c0_7, %c0_8, %c0_9, %c0_10] : memref<1x16x16x128xf32, #tpu.memory_space<vmem>>, vector<1x16x16x128xf32>
    tpu.vector_store %arg4[%c0_7, %c0_8, %c0_9, %c0_10], %12 {strides = array<i32>} : memref<1x16x16x128xf32, #tpu.memory_space<vmem>>, vector<1x16x16x128xf32>,
    return
  }
  func.func @transform_0(%arg0: i32) -> (i32, i32, i32, i32) {
    %c0_i32 = arith.constant 0 : i32
    %c0_i32_0 = arith.constant 0 : i32
    %c0_i32_1 = arith.constant 0 : i32
    %c0_i32_2 = arith.constant 0 : i32
    return %arg0, %c0_i32, %c0_i32_0, %c0_i32_1 : i32, i32, i32, i32
  }
  func.func @transform_1(%arg0: i32) -> (i32, i32) {
    %c0_i32 = arith.constant 0 : i32
    %c0_i32_0 = arith.constant 0 : i32
    %c0_i32_1 = arith.constant 0 : i32
    return %c0_i32, %c0_i32_0 : i32, i32
  }
  func.func @transform_2(%arg0: i32) -> (i32, i32) {
    %c0_i32 = arith.constant 0 : i32
    %c0_i32_0 = arith.constant 0 : i32
    %c0_i32_1 = arith.constant 0 : i32
    return %c0_i32, %c0_i32_0 : i32, i32
  }
  func.func @transform_3(%arg0: i32) -> (i32, i32, i32, i32) {
    %c0_i32 = arith.constant 0 : i32
    %c0_i32_0 = arith.constant 0 : i32
    %c0_i32_1 = arith.constant 0 : i32
    %c0_i32_2 = arith.constant 0 : i32
    return %arg0, %c0_i32, %c0_i32_0, %c0_i32_1 : i32, i32, i32, i32
  }
}

module attributes {stable_mosaic.version = 11 : i64} {
  func.func @conv3x3_kernel(%arg0: i32, %arg1: memref<1x16x16x128xf32, #tpu.memory_space<vmem>>, %arg2: memref<1152x128xf32, #tpu.memory_space<vmem>>, %arg3: memref<1x128xf32, #tpu.memory_space<vmem>>, %arg4: memref<1x128xf32, #tpu.memory_space<vmem>>, %arg5: memref<1x16x16x128xf32, #tpu.memory_space<vmem>>, %arg6: memref<1x1x128xf32, #tpu.memory_space<vmem>>, %arg7: memref<1x1x128xf32, #tpu.memory_space<vmem>>, %arg8: memref<18x18x128xf32, #tpu.memory_space<vmem>>, %arg9: memref<256x1152xf32, #tpu.memory_space<vmem>>) attributes {dimension_semantics = [#tpu.dimension_semantics<parallel>], iteration_bounds = array<i64: 2>, scalar_prefetch = 0 : i64, scratch_operands = 2 : i64, tpu.core_type = #tpu.core_type<tc>, window_params = [{transform_indices = @transform_0, window_bounds = array<i64: 1, 16, 16, 128>}, {pipeline_mode = #tpu.pipeline_mode<synchronous>, transform_indices = @transform_1, window_bounds = array<i64: 1152, 128>}, {pipeline_mode = #tpu.pipeline_mode<synchronous>, transform_indices = @transform_2, window_bounds = array<i64: 1, 128>}, {pipeline_mode = #tpu.pipeline_mode<synchronous>, transform_indices = @transform_3, window_bounds = array<i64: 1, 128>}, {transform_indices = @transform_4, window_bounds = array<i64: 1, 16, 16, 128>}, {transform_indices = @transform_5, window_bounds = array<i64: 1, 1, 128>}, {transform_indices = @transform_6, window_bounds = array<i64: 1, 1, 128>}]} {
    %cst = arith.constant 0.000000e+00 : f32
    %0 = vector.broadcast %cst : f32 to vector<18x18x128xf32>
    %c0 = arith.constant 0 : index
    %c0_0 = arith.constant 0 : index
    %c0_1 = arith.constant 0 : index
    %1 = vector.load %arg8[%c0, %c0_0, %c0_1] : memref<18x18x128xf32, #tpu.memory_space<vmem>>, vector<18x18x128xf32>
    tpu.vector_store %arg8[%c0, %c0_0, %c0_1], %0 {strides = array<i32>} : memref<18x18x128xf32, #tpu.memory_space<vmem>>, vector<18x18x128xf32>,
    %c0_2 = arith.constant 0 : index
    %c0_3 = arith.constant 0 : index
    %c0_4 = arith.constant 0 : index
    %c0_5 = arith.constant 0 : index
    %2 = vector.load %arg1[%c0_2, %c0_3, %c0_4, %c0_5] : memref<1x16x16x128xf32, #tpu.memory_space<vmem>>, vector<1x16x16x128xf32>
    %3 = vector.shape_cast %2 : vector<1x16x16x128xf32> to vector<16x16x128xf32>
    %c0_6 = arith.constant 0 : index
    %c0_7 = arith.constant 0 : index
    %4 = vector.load %arg3[%c0_6, %c0_7] : memref<1x128xf32, #tpu.memory_space<vmem>>, vector<1x128xf32>
    %5 = vector.shape_cast %4 : vector<1x128xf32> to vector<128xf32>
    %6 = vector.shape_cast %5 : vector<128xf32> to vector<1x1x128xf32>
    %7 = vector.broadcast %6 : vector<1x1x128xf32> to vector<16x16x128xf32>
    %8 = arith.mulf %3, %7 : vector<16x16x128xf32>
    %c0_8 = arith.constant 0 : index
    %c0_9 = arith.constant 0 : index
    %9 = vector.load %arg4[%c0_8, %c0_9] : memref<1x128xf32, #tpu.memory_space<vmem>>, vector<1x128xf32>
    %10 = vector.shape_cast %9 : vector<1x128xf32> to vector<128xf32>
    %11 = vector.shape_cast %10 : vector<128xf32> to vector<1x1x128xf32>
    %12 = vector.broadcast %11 : vector<1x1x128xf32> to vector<16x16x128xf32>
    %13 = arith.addf %8, %12 : vector<16x16x128xf32>
    %cst_10 = arith.constant 0.000000e+00 : f32
    %14 = vector.broadcast %cst_10 : f32 to vector<16x16x128xf32>
    %15 = arith.maximumf %13, %14 : vector<16x16x128xf32>
    %c1 = arith.constant 1 : index
    %c1_11 = arith.constant 1 : index
    %c0_12 = arith.constant 0 : index
    %16 = vector.load %arg8[%c1, %c1_11, %c0_12] : memref<18x18x128xf32, #tpu.memory_space<vmem>>, vector<16x16x128xf32>
    tpu.vector_store %arg8[%c1, %c1_11, %c0_12], %15 {strides = array<i32>} : memref<18x18x128xf32, #tpu.memory_space<vmem>>, vector<16x16x128xf32>,
    %c0_13 = arith.constant 0 : index
    %c0_14 = arith.constant 0 : index
    %c0_15 = arith.constant 0 : index
    %17 = vector.load %arg8[%c0_13, %c0_14, %c0_15] : memref<18x18x128xf32, #tpu.memory_space<vmem>>, vector<16x16x128xf32>
    %18 = vector.shape_cast %17 : vector<16x16x128xf32> to vector<256x128xf32>
    %c0_16 = arith.constant 0 : index
    %c0_17 = arith.constant 0 : index
    %19 = vector.load %arg9[%c0_16, %c0_17] : memref<256x1152xf32, #tpu.memory_space<vmem>>, vector<256x128xf32>
    tpu.vector_store %arg9[%c0_16, %c0_17], %18 {strides = array<i32>} : memref<256x1152xf32, #tpu.memory_space<vmem>>, vector<256x128xf32>,
    %c0_18 = arith.constant 0 : index
    %c1_19 = arith.constant 1 : index
    %c0_20 = arith.constant 0 : index
    %20 = vector.load %arg8[%c0_18, %c1_19, %c0_20] : memref<18x18x128xf32, #tpu.memory_space<vmem>>, vector<16x16x128xf32>
    %21 = vector.shape_cast %20 : vector<16x16x128xf32> to vector<256x128xf32>
    %c0_21 = arith.constant 0 : index
    %c128 = arith.constant 128 : index
    %22 = vector.load %arg9[%c0_21, %c128] : memref<256x1152xf32, #tpu.memory_space<vmem>>, vector<256x128xf32>
    tpu.vector_store %arg9[%c0_21, %c128], %21 {strides = array<i32>} : memref<256x1152xf32, #tpu.memory_space<vmem>>, vector<256x128xf32>,
    %c0_22 = arith.constant 0 : index
    %c2 = arith.constant 2 : index
    %c0_23 = arith.constant 0 : index
    %23 = vector.load %arg8[%c0_22, %c2, %c0_23] : memref<18x18x128xf32, #tpu.memory_space<vmem>>, vector<16x16x128xf32>
    %24 = vector.shape_cast %23 : vector<16x16x128xf32> to vector<256x128xf32>
    %c0_24 = arith.constant 0 : index
    %c256 = arith.constant 256 : index
    %25 = vector.load %arg9[%c0_24, %c256] : memref<256x1152xf32, #tpu.memory_space<vmem>>, vector<256x128xf32>
    tpu.vector_store %arg9[%c0_24, %c256], %24 {strides = array<i32>} : memref<256x1152xf32, #tpu.memory_space<vmem>>, vector<256x128xf32>,
    %c1_25 = arith.constant 1 : index
    %c0_26 = arith.constant 0 : index
    %c0_27 = arith.constant 0 : index
    %26 = vector.load %arg8[%c1_25, %c0_26, %c0_27] : memref<18x18x128xf32, #tpu.memory_space<vmem>>, vector<16x16x128xf32>
    %27 = vector.shape_cast %26 : vector<16x16x128xf32> to vector<256x128xf32>
    %c0_28 = arith.constant 0 : index
    %c384 = arith.constant 384 : index
    %28 = vector.load %arg9[%c0_28, %c384] : memref<256x1152xf32, #tpu.memory_space<vmem>>, vector<256x128xf32>
    tpu.vector_store %arg9[%c0_28, %c384], %27 {strides = array<i32>} : memref<256x1152xf32, #tpu.memory_space<vmem>>, vector<256x128xf32>,
    %c1_29 = arith.constant 1 : index
    %c1_30 = arith.constant 1 : index
    %c0_31 = arith.constant 0 : index
    %29 = vector.load %arg8[%c1_29, %c1_30, %c0_31] : memref<18x18x128xf32, #tpu.memory_space<vmem>>, vector<16x16x128xf32>
    %30 = vector.shape_cast %29 : vector<16x16x128xf32> to vector<256x128xf32>
    %c0_32 = arith.constant 0 : index
    %c512 = arith.constant 512 : index
    %31 = vector.load %arg9[%c0_32, %c512] : memref<256x1152xf32, #tpu.memory_space<vmem>>, vector<256x128xf32>
    tpu.vector_store %arg9[%c0_32, %c512], %30 {strides = array<i32>} : memref<256x1152xf32, #tpu.memory_space<vmem>>, vector<256x128xf32>,
    %c1_33 = arith.constant 1 : index
    %c2_34 = arith.constant 2 : index
    %c0_35 = arith.constant 0 : index
    %32 = vector.load %arg8[%c1_33, %c2_34, %c0_35] : memref<18x18x128xf32, #tpu.memory_space<vmem>>, vector<16x16x128xf32>
    %33 = vector.shape_cast %32 : vector<16x16x128xf32> to vector<256x128xf32>
    %c0_36 = arith.constant 0 : index
    %c640 = arith.constant 640 : index
    %34 = vector.load %arg9[%c0_36, %c640] : memref<256x1152xf32, #tpu.memory_space<vmem>>, vector<256x128xf32>
    tpu.vector_store %arg9[%c0_36, %c640], %33 {strides = array<i32>} : memref<256x1152xf32, #tpu.memory_space<vmem>>, vector<256x128xf32>,
    %c2_37 = arith.constant 2 : index
    %c0_38 = arith.constant 0 : index
    %c0_39 = arith.constant 0 : index
    %35 = vector.load %arg8[%c2_37, %c0_38, %c0_39] : memref<18x18x128xf32, #tpu.memory_space<vmem>>, vector<16x16x128xf32>
    %36 = vector.shape_cast %35 : vector<16x16x128xf32> to vector<256x128xf32>
    %c0_40 = arith.constant 0 : index
    %c768 = arith.constant 768 : index
    %37 = vector.load %arg9[%c0_40, %c768] : memref<256x1152xf32, #tpu.memory_space<vmem>>, vector<256x128xf32>
    tpu.vector_store %arg9[%c0_40, %c768], %36 {strides = array<i32>} : memref<256x1152xf32, #tpu.memory_space<vmem>>, vector<256x128xf32>,
    %c2_41 = arith.constant 2 : index
    %c1_42 = arith.constant 1 : index
    %c0_43 = arith.constant 0 : index
    %38 = vector.load %arg8[%c2_41, %c1_42, %c0_43] : memref<18x18x128xf32, #tpu.memory_space<vmem>>, vector<16x16x128xf32>
    %39 = vector.shape_cast %38 : vector<16x16x128xf32> to vector<256x128xf32>
    %c0_44 = arith.constant 0 : index
    %c896 = arith.constant 896 : index
    %40 = vector.load %arg9[%c0_44, %c896] : memref<256x1152xf32, #tpu.memory_space<vmem>>, vector<256x128xf32>
    tpu.vector_store %arg9[%c0_44, %c896], %39 {strides = array<i32>} : memref<256x1152xf32, #tpu.memory_space<vmem>>, vector<256x128xf32>,
    %c2_45 = arith.constant 2 : index
    %c2_46 = arith.constant 2 : index
    %c0_47 = arith.constant 0 : index
    %41 = vector.load %arg8[%c2_45, %c2_46, %c0_47] : memref<18x18x128xf32, #tpu.memory_space<vmem>>, vector<16x16x128xf32>
    %42 = vector.shape_cast %41 : vector<16x16x128xf32> to vector<256x128xf32>
    %c0_48 = arith.constant 0 : index
    %c1024 = arith.constant 1024 : index
    %43 = vector.load %arg9[%c0_48, %c1024] : memref<256x1152xf32, #tpu.memory_space<vmem>>, vector<256x128xf32>
    tpu.vector_store %arg9[%c0_48, %c1024], %42 {strides = array<i32>} : memref<256x1152xf32, #tpu.memory_space<vmem>>, vector<256x128xf32>,
    %c0_49 = arith.constant 0 : index
    %c0_50 = arith.constant 0 : index
    %44 = vector.load %arg9[%c0_49, %c0_50] : memref<256x1152xf32, #tpu.memory_space<vmem>>, vector<256x1152xf32>
    %c0_51 = arith.constant 0 : index
    %c0_52 = arith.constant 0 : index
    %45 = vector.load %arg2[%c0_51, %c0_52] : memref<1152x128xf32, #tpu.memory_space<vmem>>, vector<1152x128xf32>
    %cst_53 = arith.constant dense<0.000000e+00> : vector<256x128xf32>
    %46 = tpu.matmul %44, %45, %cst_53 {dimension_numbers = #tpu.dot_dimension_numbers<[1], [0], [0], [1], [0, 0, 1, 1], [], []>} : vector<256x1152xf32>, vector<1152x128xf32>, vector<256x128xf32> -> vector<256x128xf32>
    %47 = vector.shape_cast %46 : vector<256x128xf32> to vector<1x16x16x128xf32>
    %c0_54 = arith.constant 0 : index
    %c0_55 = arith.constant 0 : index
    %c0_56 = arith.constant 0 : index
    %c0_57 = arith.constant 0 : index
    %48 = vector.load %arg5[%c0_54, %c0_55, %c0_56, %c0_57] : memref<1x16x16x128xf32, #tpu.memory_space<vmem>>, vector<1x16x16x128xf32>
    tpu.vector_store %arg5[%c0_54, %c0_55, %c0_56, %c0_57], %47 {strides = array<i32>} : memref<1x16x16x128xf32, #tpu.memory_space<vmem>>, vector<1x16x16x128xf32>,
    %cst_58 = arith.constant dense<0.000000e+00> : vector<128xf32>
    %49 = vector.multi_reduction <add>, %46, %cst_58 [0] : vector<256x128xf32> to vector<128xf32>
    %50 = vector.shape_cast %49 : vector<128xf32> to vector<1x1x128xf32>
    %c0_59 = arith.constant 0 : index
    %c0_60 = arith.constant 0 : index
    %c0_61 = arith.constant 0 : index
    %51 = vector.load %arg6[%c0_59, %c0_60, %c0_61] : memref<1x1x128xf32, #tpu.memory_space<vmem>>, vector<1x1x128xf32>
    tpu.vector_store %arg6[%c0_59, %c0_60, %c0_61], %50 {strides = array<i32>} : memref<1x1x128xf32, #tpu.memory_space<vmem>>, vector<1x1x128xf32>,
    %52 = arith.mulf %46, %46 : vector<256x128xf32>
    %cst_62 = arith.constant dense<0.000000e+00> : vector<128xf32>
    %53 = vector.multi_reduction <add>, %52, %cst_62 [0] : vector<256x128xf32> to vector<128xf32>
    %54 = vector.shape_cast %53 : vector<128xf32> to vector<1x1x128xf32>
    %c0_63 = arith.constant 0 : index
    %c0_64 = arith.constant 0 : index
    %c0_65 = arith.constant 0 : index
    %55 = vector.load %arg7[%c0_63, %c0_64, %c0_65] : memref<1x1x128xf32, #tpu.memory_space<vmem>>, vector<1x1x128xf32>
    tpu.vector_store %arg7[%c0_63, %c0_64, %c0_65], %54 {strides = array<i32>} : memref<1x1x128xf32, #tpu.memory_space<vmem>>, vector<1x1x128xf32>,
    return
  }
  func.func @transform_0(%arg0: i32) -> (i32, i32, i32, i32) {
    %c0_i32 = arith.constant 0 : i32
    %c0_i32_0 = arith.constant 0 : i32
    %c0_i32_1 = arith.constant 0 : i32
    %c0_i32_2 = arith.constant 0 : i32
    return %arg0, %c0_i32, %c0_i32_0, %c0_i32_1 : i32, i32, i32, i32
  }
  func.func @transform_1(%arg0: i32) -> (i32, i32) {
    %c0_i32 = arith.constant 0 : i32
    %c0_i32_0 = arith.constant 0 : i32
    %c0_i32_1 = arith.constant 0 : i32
    return %c0_i32, %c0_i32_0 : i32, i32
  }
  func.func @transform_2(%arg0: i32) -> (i32, i32) {
    %c0_i32 = arith.constant 0 : i32
    %c0_i32_0 = arith.constant 0 : i32
    %c0_i32_1 = arith.constant 0 : i32
    return %c0_i32, %c0_i32_0 : i32, i32
  }
  func.func @transform_3(%arg0: i32) -> (i32, i32) {
    %c0_i32 = arith.constant 0 : i32
    %c0_i32_0 = arith.constant 0 : i32
    %c0_i32_1 = arith.constant 0 : i32
    return %c0_i32, %c0_i32_0 : i32, i32
  }
  func.func @transform_4(%arg0: i32) -> (i32, i32, i32, i32) {
    %c0_i32 = arith.constant 0 : i32
    %c0_i32_0 = arith.constant 0 : i32
    %c0_i32_1 = arith.constant 0 : i32
    %c0_i32_2 = arith.constant 0 : i32
    return %arg0, %c0_i32, %c0_i32_0, %c0_i32_1 : i32, i32, i32, i32
  }
  func.func @transform_5(%arg0: i32) -> (i32, i32, i32) {
    %c0_i32 = arith.constant 0 : i32
    %c0_i32_0 = arith.constant 0 : i32
    %c0_i32_1 = arith.constant 0 : i32
    return %arg0, %c0_i32, %c0_i32_0 : i32, i32, i32
  }
  func.func @transform_6(%arg0: i32) -> (i32, i32, i32) {
    %c0_i32 = arith.constant 0 : i32
    %c0_i32_0 = arith.constant 0 : i32
    %c0_i32_1 = arith.constant 0 : i32
    return %arg0, %c0_i32, %c0_i32_0 : i32, i32, i32
  }
}

</mosaic_0001>

<bundles_post_ra>
// kernel: flexible_double_conv.5
= control target key start
LH: loop header
LB: loop body
LE: loop exit
PB: predicated region body
PF: predicated region fallthrough
CT: control target
= control target key end

     0   :  { %s445_s12 = smov 0   ;;  %s604_s0 = inlined_call_operand.vmem [shape: f32[2,16,16,128], index: 0, kind: input, shape index: {}]   ;;  %s605_s1 = inlined_call_operand.vmem [shape: f32[1,128], index: 1, kind: input, shape index: {}]   ;;  %s606_s2 = inlined_call_operand.vmem [shape: f32[1,128], index: 2, kind: input, shape index: {}]   ;;  %s607_s3 = inlined_call_operand.vmem [shape: f32[2,16,16,128], index: 3, kind: output, shape index: {}]  }
   0x1 LB: > { %s394_s13 = sadd.s32 4294967295, %s423_s12   ;;  %p398_p0 = scmp.ge.s32.totalorder %s423_s12, 1  ;;  %s423_s12 = sphi %s445_s12, %s13_s12  }
   0x2   : > { %p137_p1 = scmp.lt.s32.totalorder %s423_s12, 3 }
   0x4   : > { %p138_p2 = pnand %p398_p0, %p137_p1 }
   0x5   : > { %p161_p3 = scmp.lt.s32.totalorder (!%p138_p2), %s394_s13, 1 }
   0x6   : > { %141 = sbr.rel (%p138_p2) target bundleno = 53 (0x35), region = 32 }
   0xb   : > { %s609_s13 = smov (!%p161_p3, %s394_s13), 1  ;;  %v456_v0 = vld [vmem:[%s605_s1] ss:$0 sm:$0xff] }
   0xc   : > { %s405_s16 = sshll.u32 %s609_s13, 8  ;;  %v466_v1 = vld [vmem:[%s606_s2] ss:$0 sm:$0xff] }
   0xd   : > { %s461_s19 = scalar_lea.vmem %s604_s0, %s405_s16  ;;  %s489_s24 = scalar_lea.vmem %s607_s3, %s405_s16 }
   0xe   : > { %v171_v2 = vld [vmem:[%s461_s19] sm:$0xff]  ;;  %v172_v3 = vld [vmem:[%s461_s19 + $0x8] sm:$0xff]  ;;  %v173_v4 = vld [vmem:[%s461_s19 + $0x10] sm:$0xff] }
   0xf   : > { %v207_v5 = vmul.f32 %v456_v0, %v171_v2  ;;  %v208_v6 = vmul.f32 %v456_v0, %v172_v3  ;;  %v209_v7 = vmul.f32 %v456_v0, %v173_v4  ;;  %v174_v8 = vld [vmem:[%s461_s19 + $0x18] sm:$0xff]  ;;  %v175_v9 = vld [vmem:[%s461_s19 + $0x20] sm:$0xff]  ;;  %v176_v10 = vld [vmem:[%s461_s19 + $0x28] sm:$0xff] }
  0x10   : > { %v210_v11 = vmul.f32 %v456_v0, %v174_v8  ;;  %v211_v12 = vmul.f32 %v456_v0, %v175_v9  ;;  %v212_v13 = vmul.f32 %v456_v0, %v176_v10  ;;  %v177_v14 = vld [vmem:[%s461_s19 + $0x30] sm:$0xff]  ;;  %v178_v15 = vld [vmem:[%s461_s19 + $0x38] sm:$0xff]  ;;  %v179_v24 = vld [vmem:[%s461_s19 + $0x40] sm:$0xff] }
  0x11   : > { %v243_v16 = vadd.f32 %v466_v1, %v207_v5  ;;  %v244_v17 = vadd.f32 %v466_v1, %v208_v6  ;;  %v245_v18 = vadd.f32 %v466_v1, %v209_v7  ;;  %v213_v19 = vmul.f32 %v456_v0, %v177_v14  ;;  %v180_v25 = vld [vmem:[%s461_s19 + $0x48] sm:$0xff]  ;;  %v181_v26 = vld [vmem:[%s461_s19 + $0x50] sm:$0xff]  ;;  %v182_v31 = vld [vmem:[%s461_s19 + $0x58] sm:$0xff] }
  0x12   : > { %v246_v20 = vadd.f32 %v466_v1, %v210_v11  ;;  %v247_v21 = vadd.f32 %v466_v1, %v211_v12  ;;  %v248_v22 = vadd.f32 %v466_v1, %v212_v13  ;;  %v214_v23 = vmul.f32 %v456_v0, %v178_v15  ;;  %v183_v32 = vld [vmem:[%s461_s19 + $0x60] sm:$0xff]  ;;  %v184_v33 = vld [vmem:[%s461_s19 + $0x68] sm:$0xff]  ;;  %v185_v37 = vld [vmem:[%s461_s19 + $0x70] sm:$0xff] }
  0x13   : > { %v275_v27 = vmax.f32 %v243_v16, 0.0  ;;  %v276_v28 = vmax.f32 %v244_v17, 0.0  ;;  %v277_v29 = vmax.f32 %v245_v18, 0.0  ;;  %v249_v30 = vadd.f32 %v466_v1, %v213_v19  ;;  %v186_v42 = vld [vmem:[%s461_s19 + $0x78] sm:$0xff]  ;;  %v187_v54 = vld [vmem:[%s461_s19 + $0x80] sm:$0xff]  ;;  %v188_v55 = vld [vmem:[%s461_s19 + $0x88] sm:$0xff] }
  0x14   : > { %v278_v34 = vmax.f32 %v246_v20, 0.0  ;;  %v279_v35 = vmax.f32 %v247_v21, 0.0  ;;  %v250_v36 = vadd.f32 %v466_v1, %v214_v23  ;;  %v280_v38 = vmax.f32 %v248_v22, 0.0  ;;  %v189_v56 = vld [vmem:[%s461_s19 + $0x90] sm:$0xff]  ;;  %v190_v59 = vld [vmem:[%s461_s19 + $0x98] sm:$0xff]  ;;  %v191_v63 = vld [vmem:[%s461_s19 + $0xa0] sm:$0xff] }
  0x15   : > { %307 = vst [vmem:[%s489_s24] sm:$0xff] %v275_v27  ;;  %v215_v39 = vmul.f32 %v456_v0, %v179_v24  ;;  %v216_v40 = vmul.f32 %v456_v0, %v180_v25  ;;  %v217_v41 = vmul.f32 %v456_v0, %v181_v26  ;;  %v281_v43 = vmax.f32 %v249_v30, 0.0  ;;  %v192_v6 = vld [vmem:[%s461_s19 + $0xa8] sm:$0xff]  ;;  %v193_v10 = vld [vmem:[%s461_s19 + $0xb0] sm:$0xff]  ;;  %v194_v14 = vld [vmem:[%s461_s19 + $0xb8] sm:$0xff] }
  0x16   : > { %308 = vst [vmem:[%s489_s24 + $0x8] sm:$0xff] %v276_v28  ;;  %v218_v44 = vmul.f32 %v456_v0, %v182_v31  ;;  %v219_v45 = vmul.f32 %v456_v0, %v183_v32  ;;  %v220_v46 = vmul.f32 %v456_v0, %v184_v33  ;;  %v221_v50 = vmul.f32 %v456_v0, %v185_v37  ;;  %v195_v18 = vld [vmem:[%s461_s19 + $0xc0] sm:$0xff]  ;;  %v196_v22 = vld [vmem:[%s461_s19 + $0xc8] sm:$0xff]  ;;  %v197_v26 = vld [vmem:[%s461_s19 + $0xd0] sm:$0xff] }
  0x17   : > { %309 = vst [vmem:[%s489_s24 + $0x10] sm:$0xff] %v277_v29  ;;  %v251_v47 = vadd.f32 %v466_v1, %v215_v39  ;;  %v252_v48 = vadd.f32 %v466_v1, %v216_v40  ;;  %v253_v49 = vadd.f32 %v466_v1, %v217_v41  ;;  %v282_v51 = vmax.f32 %v250_v36, 0.0  ;;  %v198_v30 = vld [vmem:[%s461_s19 + $0xd8] sm:$0xff] }
  0x18   : > { %310 = vst [vmem:[%s489_s24 + $0x18] sm:$0xff] %v278_v34  ;;  %v254_v52 = vadd.f32 %v466_v1, %v218_v44  ;;  %v222_v53 = vmul.f32 %v456_v0, %v186_v42  ;;  %v255_v58 = vadd.f32 %v466_v1, %v219_v45  ;;  %v256_v62 = vadd.f32 %v466_v1, %v220_v46  ;;  %v199_v34 = vld [vmem:[%s461_s19 + $0xe0] sm:$0xff]  ;;  %v201_v42 = vld [vmem:[%s461_s19 + $0xf0] sm:$0xff]  ;;  %v202_v46 = vld [vmem:[%s461_s19 + $0xf8] sm:$0xff] }
  0x19   : > { %311 = vst [vmem:[%s489_s24 + $0x20] sm:$0xff] %v279_v35  ;;  %v283_v57 = vmax.f32 %v251_v47, 0.0  ;;  %v284_v60 = vmax.f32 %v252_v48, 0.0  ;;  %v285_v61 = vmax.f32 %v253_v49, 0.0  ;;  %v257_v2 = vadd.f32 %v466_v1, %v221_v50 }
  0x1a   : > { %312 = vst [vmem:[%s489_s24 + $0x28] sm:$0xff] %v280_v38  ;;  %v223_v3 = vmul.f32 %v456_v0, %v187_v54  ;;  %v224_v4 = vmul.f32 %v456_v0, %v188_v55  ;;  %v225_v5 = vmul.f32 %v456_v0, %v189_v56  ;;  %v286_v7 = vmax.f32 %v254_v52, 0.0  ;;  %v200_v38 = vld [vmem:[%s461_s19 + $0xe8] sm:$0xff] }
  0x1b   : > { %313 = vst [vmem:[%s489_s24 + $0x30] sm:$0xff] %v281_v43  ;;  %v258_v8 = vadd.f32 %v466_v1, %v222_v53  ;;  %v226_v9 = vmul.f32 %v456_v0, %v190_v59  ;;  %v287_v11 = vmax.f32 %v255_v58, 0.0  ;;  %v227_v13 = vmul.f32 %v456_v0, %v191_v63 }
  0x1c   : > { %314 = vst [vmem:[%s489_s24 + $0x38] sm:$0xff] %v282_v51  ;;  %v259_v12 = vadd.f32 %v466_v1, %v223_v3  ;;  %v288_v15 = vmax.f32 %v256_v62, 0.0  ;;  %v260_v16 = vadd.f32 %v466_v1, %v224_v4  ;;  %v228_v17 = vmul.f32 %v456_v0, %v192_v6 }
  0x1d   : > { %315 = vst [vmem:[%s489_s24 + $0x40] sm:$0xff] %v283_v57  ;;  %v289_v19 = vmax.f32 %v257_v2, 0.0  ;;  %v261_v20 = vadd.f32 %v466_v1, %v225_v5  ;;  %v229_v21 = vmul.f32 %v456_v0, %v193_v10  ;;  %v290_v23 = vmax.f32 %v258_v8, 0.0 }
  0x1e   : > { %316 = vst [vmem:[%s489_s24 + $0x48] sm:$0xff] %v284_v60  ;;  %v262_v24 = vadd.f32 %v466_v1, %v226_v9  ;;  %v230_v25 = vmul.f32 %v456_v0, %v194_v14  ;;  %v291_v27 = vmax.f32 %v259_v12, 0.0  ;;  %v263_v28 = vadd.f32 %v466_v1, %v227_v13 }
  0x1f   : > { %317 = vst [vmem:[%s489_s24 + $0x50] sm:$0xff] %v285_v61  ;;  %v231_v29 = vmul.f32 %v456_v0, %v195_v18  ;;  %v292_v31 = vmax.f32 %v260_v16, 0.0  ;;  %v264_v32 = vadd.f32 %v466_v1, %v228_v17  ;;  %v232_v33 = vmul.f32 %v456_v0, %v196_v22 }
  0x20   : > { %318 = vst [vmem:[%s489_s24 + $0x58] sm:$0xff] %v286_v7  ;;  %v293_v35 = vmax.f32 %v261_v20, 0.0  ;;  %v265_v36 = vadd.f32 %v466_v1, %v229_v21  ;;  %v233_v37 = vmul.f32 %v456_v0, %v197_v26  ;;  %v294_v39 = vmax.f32 %v262_v24, 0.0 }
  0x21   : > { %319 = vst [vmem:[%s489_s24 + $0x60] sm:$0xff] %v287_v11  ;;  %v266_v40 = vadd.f32 %v466_v1, %v230_v25  ;;  %v234_v41 = vmul.f32 %v456_v0, %v198_v30  ;;  %v295_v43 = vmax.f32 %v263_v28, 0.0  ;;  %v267_v44 = vadd.f32 %v466_v1, %v231_v29 }
  0x22   : > { %320 = vst [vmem:[%s489_s24 + $0x68] sm:$0xff] %v288_v15  ;;  %v235_v45 = vmul.f32 %v456_v0, %v199_v34  ;;  %v296_v47 = vmax.f32 %v264_v32, 0.0  ;;  %v268_v48 = vadd.f32 %v466_v1, %v232_v33  ;;  %v236_v49 = vmul.f32 %v456_v0, %v200_v38 }
  0x23   : > { %321 = vst [vmem:[%s489_s24 + $0x70] sm:$0xff] %v289_v19  ;;  %v297_v50 = vmax.f32 %v265_v36, 0.0  ;;  %v269_v51 = vadd.f32 %v466_v1, %v233_v37  ;;  %v237_v52 = vmul.f32 %v456_v0, %v201_v42  ;;  %v298_v53 = vmax.f32 %v266_v40, 0.0 }
  0x24   : > { %322 = vst [vmem:[%s489_s24 + $0x78] sm:$0xff] %v290_v23  ;;  %v270_v54 = vadd.f32 %v466_v1, %v234_v41  ;;  %v238_v55 = vmul.f32 %v456_v0, %v202_v46  ;;  %v299_v56 = vmax.f32 %v267_v44, 0.0  ;;  %v271_v57 = vadd.f32 %v466_v1, %v235_v45 }
  0x25   : > { %323 = vst [vmem:[%s489_s24 + $0x80] sm:$0xff] %v291_v27  ;;  %v300_v58 = vmax.f32 %v268_v48, 0.0  ;;  %v272_v59 = vadd.f32 %v466_v1, %v236_v49  ;;  %v301_v60 = vmax.f32 %v269_v51, 0.0  ;;  %v273_v61 = vadd.f32 %v466_v1, %v237_v52 }
  0x26   : > { %324 = vst [vmem:[%s489_s24 + $0x88] sm:$0xff] %v292_v31  ;;  %v302_v0 = vmax.f32 %v270_v54, 0.0  ;;  %v274_v62 = vadd.f32 %v466_v1, %v238_v55  ;;  %v303_v63 = vmax.f32 %v271_v57, 0.0 }
  0x27   : > { %325 = vst [vmem:[%s489_s24 + $0x90] sm:$0xff] %v293_v35  ;;  %v304_v2 = vmax.f32 %v272_v59, 0.0  ;;  %v305_v3 = vmax.f32 %v273_v61, 0.0 }
  0x28   : > { %326 = vst [vmem:[%s489_s24 + $0x98] sm:$0xff] %v294_v39  ;;  %v306_v4 = vmax.f32 %v274_v62, 0.0 }
  0x29   : > { %327 = vst [vmem:[%s489_s24 + $0xa0] sm:$0xff] %v295_v43 }
  0x2a   : > { %328 = vst [vmem:[%s489_s24 + $0xa8] sm:$0xff] %v296_v47 }
  0x2b   : > { %329 = vst [vmem:[%s489_s24 + $0xb0] sm:$0xff] %v297_v50 }
  0x2c   : > { %330 = vst [vmem:[%s489_s24 + $0xb8] sm:$0xff] %v298_v53 }
  0x2d   : > { %331 = vst [vmem:[%s489_s24 + $0xc0] sm:$0xff] %v299_v56 }
  0x2e   : > { %332 = vst [vmem:[%s489_s24 + $0xc8] sm:$0xff] %v300_v58 }
  0x2f   : > { %333 = vst [vmem:[%s489_s24 + $0xd0] sm:$0xff] %v301_v60 }
  0x30   : > { %334 = vst [vmem:[%s489_s24 + $0xd8] sm:$0xff] %v302_v0 }
  0x31   : > { %335 = vst [vmem:[%s489_s24 + $0xe0] sm:$0xff] %v303_v63 }
  0x32   : > { %336 = vst [vmem:[%s489_s24 + $0xe8] sm:$0xff] %v304_v2 }
  0x33   : > { %337 = vst [vmem:[%s489_s24 + $0xf0] sm:$0xff] %v305_v3 }
  0x34   : > { %338 = vst [vmem:[%s489_s24 + $0xf8] sm:$0xff] %v306_v4 }
  0x35 PF: > { %s13_s12 = sadd.s32 1, %s423_s12  }
  0x36   : > { %p10_p4 = scmp.ge.s32.totalorder %s13_s12, 4  }
  0x38   :  { %12 = sbr.rel (!%p10_p4) target bundleno = 1 (0x1), region = 62 }

// kernel: flexible_double_conv.3
= control target key start
LH: loop header
LB: loop body
LE: loop exit
PB: predicated region body
PF: predicated region fallthrough
CT: control target
= control target key end

     0   :  { %s2775_s21 = smov 0   ;;  %s3684_s0 = inlined_call_operand.vmem [shape: f32[2,16,16,4], index: 0, kind: input, shape index: {}]   ;;  %s3685_s1 = inlined_call_operand.vmem [shape: f32[1152,128], index: 1, kind: input, shape index: {}]   ;;  %s3686_s2 = inlined_call_operand.vmem [shape: f32[1,128], index: 2, kind: input, shape index: {}]   ;;  %s3687_s3 = inlined_call_operand.vmem [shape: f32[1,128], index: 3, kind: input, shape index: {}]   ;;  %s3688_s4 = inlined_call_operand.vmem [shape: f32[2,16,16,128], index: 4, kind: output, shape index: {0}]   ;;  %s3689_s5 = inlined_call_operand.vmem [shape: f32[2,1,128], index: 5, kind: output, shape index: {1}]   ;;  %s3690_s6 = inlined_call_operand.vmem [shape: f32[2,1,128], index: 6, kind: output, shape index: {2}]  }
   0x1 LB: > { %s2660_s2 = sadd.s32 4294967295, %s2737_s21   ;;  %p2664_p0 = scmp.ge.s32.totalorder %s2737_s21, 1  ;;  %s2737_s21 = sphi %s2775_s21, %s17_s21  }
   0x2   : > { %p217_p1 = scmp.lt.s32.totalorder %s2737_s21, 3 }
   0x4   : > { %p218_p2 = pnand %p2664_p0, %p217_p1 }
   0x5   : > { %p253_p3 = scmp.lt.s32.totalorder (!%p218_p2), %s2660_s2, 1 }
   0x6   : > { %221 = sbr.rel (%p218_p2) target bundleno = 798 (0x31e), region = 36 }
   0xb   : > { %v1269_v0 = vld [vmem:[%s3685_s1 + $0x78] sm:$0xff]  ;;  %v1268_v1 = vld [vmem:[%s3685_s1 + $0x70] sm:$0xff]  ;;  %v2739_v2 = vmov 0.0   ;;  %v1267_v3 = vld [vmem:[%s3685_s1 + $0x68] sm:$0xff]  ;;  %s3692_s2 = smov (!%p253_p3, %s2660_s2), 1  ;;  %vm356_vm0 = vcmask 31744  }
   0xc   : > { %2673 = vmatpush.msra.mxu1 %v1269_v0  ;;  %2674 = vmatpush.msra.mxu2 %v1269_v0  ;;  %281 = vst [vmem:[#allocation2 + $0x60] sm:$0xff] %v2739_v2  ;;  %v1266_v4 = vld [vmem:[%s3685_s1 + $0x60] sm:$0xff]  ;;  %s2671_s29 = sshll.u32 %s3692_s2, 8  ;;  %v1265_v5 = vld [vmem:[%s3685_s1 + $0x58] sm:$0xff]  ;;  %v1264_v7 = vld [vmem:[%s3685_s1 + $0x50] sm:$0xff]  ;;  %s265_s28 = scalar_lea.vmem %s3689_s5, %s3692_s2 }
   0xd   : > { %2675 = vmatpush.msra.mxu3 %v1269_v0  ;;  %1398 = vmatpush.msra.mxu0 %v1269_v0  ;;  %282 = vst [vmem:[#allocation2 + $0x68] sm:$0xff] %v2739_v2  ;;  %s2807_s8 = scalar_lea.vmem %s3684_s0, %s2671_s29  ;;  %v1263_v8 = vld [vmem:[%s3685_s1 + $0x48] sm:$0xff]  ;;  %v1262_v9 = vld [vmem:[%s3685_s1 + $0x40] sm:$0xff]  ;;  %v1261_v10 = vld [vmem:[%s3685_s1 + $0x38] sm:$0xff]  ;;  %s3607_s26 = scalar_lea.vmem %s3688_s4, %s2671_s29 }
   0xe   : > { %2676 = vmatpush.msra.mxu1 %v1268_v1  ;;  %2677 = vmatpush.msra.mxu2 %v1268_v1  ;;  %269 = vst [vmem:[#allocation2] sm:$0xff] %v2739_v2  ;;  %v329_v6 = vld [vmem:[%s2807_s8 + $0x30] sm:$0xff]  ;;  %v1259_v12 = vld [vmem:[%s3685_s1 + $0x28] sm:$0xff]  ;;  %v1258_v13 = vld [vmem:[%s3685_s1 + $0x20] sm:$0xff]  ;;  %s268_s9 = scalar_lea.vmem %s3690_s6, %s3692_s2 }
   0xf   : > { %2678 = vmatpush.msra.mxu3 %v1268_v1  ;;  %1399 = vmatpush.msra.mxu0 %v1268_v1  ;;  %270 = vst [vmem:[#allocation2 + $0x8] sm:$0xff] %v2739_v2  ;;  %v1260_v11 = vld [vmem:[%s3685_s1 + $0x30] sm:$0xff]  ;;  %v1257_v14 = vld [vmem:[%s3685_s1 + $0x18] sm:$0xff]  ;;  %v1255_v16 = vld [vmem:[%s3685_s1 + $0x8] sm:$0xff] }
  0x10   : > { %2679 = vmatpush.msra.mxu1 %v1267_v3  ;;  %2680 = vmatpush.msra.mxu2 %v1267_v3  ;;  %271 = vst [vmem:[#allocation2 + $0x10] sm:$0x3] %v2739_v2  ;;  %v1256_v15 = vld [vmem:[%s3685_s1 + $0x10] sm:$0xff]  ;;  %v1254_v17 = vld [vmem:[%s3685_s1] sm:$0xff]  ;;  %v1301_v19 = vld [vmem:[%s3685_s1 + $0x178] sm:$0xff] }
  0x11   : > { %2681 = vmatpush.msra.mxu3 %v1267_v3  ;;  %1400 = vmatpush.msra.mxu0 %v1267_v3  ;;  %272 = vst [vmem:[#allocation2 + $0x18] sm:$0xff] %v2739_v2  ;;  %v1317_v20 = vld [vmem:[%s3685_s1 + $0x1f8] sm:$0xff]  ;;  %v1300_v22 = vld [vmem:[%s3685_s1 + $0x170] sm:$0xff]  ;;  %v1299_v25 = vld [vmem:[%s3685_s1 + $0x168] sm:$0xff] }
  0x12   : > { %2682 = vmatpush.msra.mxu1 %v1266_v4  ;;  %2683 = vmatpush.msra.mxu2 %v1266_v4  ;;  %363 = vst.msk [vmem:[#allocation2 + $0x61] sm:$0xff] %vm356_vm0, %v329_v6  ;;  %v1285_v21 = vld [vmem:[%s3685_s1 + $0xf8] sm:$0xff]  ;;  %v1316_v23 = vld [vmem:[%s3685_s1 + $0x1f0] sm:$0xff]  ;;  %v1315_v26 = vld [vmem:[%s3685_s1 + $0x1e8] sm:$0xff] }
  0x13   : > { %2684 = vmatpush.msra.mxu3 %v1266_v4  ;;  %1401 = vmatpush.msra.mxu0 %v1266_v4  ;;  %273 = vst [vmem:[#allocation2 + $0x20] sm:$0xff] %v2739_v2  ;;  %v1284_v24 = vld [vmem:[%s3685_s1 + $0xf0] sm:$0xff]  ;;  %v1333_v27 = vld [vmem:[%s3685_s1 + $0x278] sm:$0xff]  ;;  %v1283_v28 = vld [vmem:[%s3685_s1 + $0xe8] sm:$0xff] }
  0x14   : > { %2685 = vmatpush.msra.mxu1 %v1265_v5  ;;  %2686 = vmatpush.msra.mxu2 %v1265_v5  ;;  %274 = vst [vmem:[#allocation2 + $0x28] sm:$0x3] %v2739_v2  ;;  %v1298_v29 = vld [vmem:[%s3685_s1 + $0x160] sm:$0xff]  ;;  %v1332_v31 = vld [vmem:[%s3685_s1 + $0x270] sm:$0xff]  ;;  %v1297_v33 = vld [vmem:[%s3685_s1 + $0x158] sm:$0xff] }
  0x15   : > { %2687 = vmatpush.msra.mxu3 %v1265_v5  ;;  %1402 = vmatpush.msra.mxu0 %v1265_v5  ;;  %275 = vst [vmem:[#allocation2 + $0x30] sm:$0xff] %v2739_v2  ;;  %v1314_v30 = vld [vmem:[%s3685_s1 + $0x1e0] sm:$0xff]  ;;  %v1313_v34 = vld [vmem:[%s3685_s1 + $0x1d8] sm:$0xff]  ;;  %v1331_v35 = vld [vmem:[%s3685_s1 + $0x268] sm:$0xff] }
  0x16   : > { %2688 = vmatpush.msra.mxu1 %v1264_v7  ;;  %2689 = vmatpush.msra.mxu2 %v1264_v7  ;;  %276 = vst [vmem:[#allocation2 + $0x38] sm:$0xff] %v2739_v2  ;;  %v1282_v32 = vld [vmem:[%s3685_s1 + $0xe0] sm:$0xff]  ;;  %v1281_v36 = vld [vmem:[%s3685_s1 + $0xd8] sm:$0xff]  ;;  %v1296_v37 = vld [vmem:[%s3685_s1 + $0x150] sm:$0xff] }
  0x17   : > { %2690 = vmatpush.msra.mxu3 %v1264_v7  ;;  %1403 = vmatpush.msra.mxu0 %v1264_v7  ;;  %277 = vst [vmem:[#allocation2 + $0x40] sm:$0x3] %v2739_v2  ;;  %v1312_v38 = vld [vmem:[%s3685_s1 + $0x1d0] sm:$0xff]  ;;  %v1330_v39 = vld [vmem:[%s3685_s1 + $0x260] sm:$0xff]  ;;  %v330_v42 = vld [vmem:[%s2807_s8 + $0x38] sm:$0xff] }
  0x18   : > { %2691 = vmatpush.msra.mxu1 %v1263_v8  ;;  %2692 = vmatpush.msra.mxu2 %v1263_v8  ;;  %278 = vst [vmem:[#allocation2 + $0x48] sm:$0xff] %v2739_v2  ;;  %v337_v40 = vld [vmem:[%s2807_s8 + $0x70] sm:$0xff]  ;;  %v338_v43 = vld [vmem:[%s2807_s8 + $0x78] sm:$0xff]  ;;  %v331_v45 = vld [vmem:[%s2807_s8 + $0x40] sm:$0xff] }
  0x19   : > { %2693 = vmatpush.msra.mxu3 %v1263_v8  ;;  %1404 = vmatpush.msra.mxu0 %v1263_v8  ;;  %279 = vst [vmem:[#allocation2 + $0x50] sm:$0xff] %v2739_v2  ;;  %v2870_v18 = vld [vmem:[#allocation2 + $0x60] sm:$0xff]  ;;  %v345_v41 = vld [vmem:[%s2807_s8 + $0xb0] sm:$0xff]  ;;  %v346_v44 = vld [vmem:[%s2807_s8 + $0xb8] sm:$0xff] }
  0x1a   : > { %2694 = vmatpush.msra.mxu1 %v1262_v9  ;;  %2695 = vmatpush.msra.mxu2 %v1262_v9  ;;  %280 = vst [vmem:[#allocation2 + $0x58] sm:$0x3] %v2739_v2  ;;  %v1280_v46 = vld [vmem:[%s3685_s1 + $0xd0] sm:$0xff]  ;;  %v1295_v47 = vld [vmem:[%s3685_s1 + $0x148] sm:$0xff]  ;;  %v1329_v49 = vld [vmem:[%s3685_s1 + $0x258] sm:$0xff] }
  0x1b   : > { %2696 = vmatpush.msra.mxu3 %v1262_v9  ;;  %1405 = vmatpush.msra.mxu0 %v1262_v9  ;;  %283 = vst [vmem:[#allocation2 + $0x70] sm:$0x3] %v2739_v2  ;;  %v1311_v48 = vld [vmem:[%s3685_s1 + $0x1c8] sm:$0xff]  ;;  %v1294_v51 = vld [vmem:[%s3685_s1 + $0x140] sm:$0xff]  ;;  %v1328_v53 = vld [vmem:[%s3685_s1 + $0x250] sm:$0xff] }
  0x1c   : > { %2697 = vmatpush.msra.mxu1 %v1261_v10  ;;  %2698 = vmatpush.msra.mxu2 %v1261_v10  ;;  %284 = vst [vmem:[#allocation2 + $0x78] sm:$0xff] %v2739_v2  ;;  %v1279_v50 = vld [vmem:[%s3685_s1 + $0xc8] sm:$0xff]  ;;  %v1310_v52 = vld [vmem:[%s3685_s1 + $0x1c0] sm:$0xff]  ;;  %v333_v61 = vld [vmem:[%s2807_s8 + $0x50] sm:$0xff] }
  0x1d   : > { %2699 = vmatpush.msra.mxu3 %v1261_v10  ;;  %1406 = vmatpush.msra.mxu0 %v1261_v10  ;;  %285 = vst [vmem:[#allocation2 + $0x80] sm:$0xff] %v2739_v2  ;;  %v339_v54 = vld [vmem:[%s2807_s8 + $0x80] sm:$0xff]  ;;  %v332_v56 = vld [vmem:[%s2807_s8 + $0x48] sm:$0xff]  ;;  %v1293_v0 = vld [vmem:[%s3685_s1 + $0x138] sm:$0xff] }
  0x1e   : > { %2700 = vmatpush.msra.mxu1 %v1260_v11  ;;  %2701 = vmatpush.msra.mxu2 %v1260_v11  ;;  %286 = vst [vmem:[#allocation2 + $0x88] sm:$0x3] %v2739_v2  ;;  %v347_v55 = vld [vmem:[%s2807_s8 + $0xc0] sm:$0xff]  ;;  %v340_v57 = vld [vmem:[%s2807_s8 + $0x88] sm:$0xff]  ;;  %v341_v4 = vld [vmem:[%s2807_s8 + $0x90] sm:$0xff] }
  0x1f   : > { %2702 = vmatpush.msra.mxu3 %v1260_v11  ;;  %1407 = vmatpush.msra.mxu0 %v1260_v11  ;;  %287 = vst [vmem:[#allocation2 + $0x90] sm:$0xff] %v2739_v2  ;;  %v323_v58 = vld [vmem:[%s2807_s8] sm:$0xff]  ;;  %v348_v60 = vld [vmem:[%s2807_s8 + $0xc8] sm:$0xff]  ;;  %v1277_v5 = vld [vmem:[%s3685_s1 + $0xb8] sm:$0xff] }
  0x20   : > { %2703 = vmatpush.msra.mxu1 %v1259_v12  ;;  %2704 = vmatpush.msra.mxu2 %v1259_v12  ;;  %288 = vst [vmem:[#allocation2 + $0x98] sm:$0xff] %v2739_v2  ;;  %v1278_v63 = vld [vmem:[%s3685_s1 + $0xc0] sm:$0xff]  ;;  %v1327_v3 = vld [vmem:[%s3685_s1 + $0x248] sm:$0xff]  ;;  %v1292_v6 = vld [vmem:[%s3685_s1 + $0x130] sm:$0xff] }
  0x21   : > { %2705 = vmatpush.msra.mxu3 %v1259_v12  ;;  %1408 = vmatpush.msra.mxu0 %v1259_v12  ;;  %289 = vst [vmem:[#allocation2 + $0xa0] sm:$0x3] %v2739_v2  ;;  %v324_v7 = vld [vmem:[%s2807_s8 + $0x8] sm:$0xff]  ;;  %v1308_v8 = vld [vmem:[%s3685_s1 + $0x1b0] sm:$0xff]  ;;  %v1326_v9 = vld [vmem:[%s3685_s1 + $0x240] sm:$0xff] }
  0x22   : > { %2706 = vmatpush.msra.mxu1 %v1258_v13  ;;  %2707 = vmatpush.msra.mxu2 %v1258_v13  ;;  %290 = vst [vmem:[#allocation2 + $0xa8] sm:$0xff] %v2739_v2  ;;  %v349_v10 = vld [vmem:[%s2807_s8 + $0xd0] sm:$0xff]  ;;  %v334_v12 = vld [vmem:[%s2807_s8 + $0x58] sm:$0xff] }
  0x23   : > { %2708 = vmatpush.msra.mxu3 %v1258_v13  ;;  %291 = vst [vmem:[#allocation2 + $0xb0] sm:$0xff] %v2739_v2  ;;  %1409 = vmatpush.msra.mxu0 %v1258_v13 }
  0x24   : > { %2709 = vmatpush.msra.mxu1 %v1257_v14  ;;  %2710 = vmatpush.msra.mxu2 %v1257_v14  ;;  %292 = vst [vmem:[#allocation2 + $0xb8] sm:$0x3] %v2739_v2 }
  0x25   : > { %2711 = vmatpush.msra.mxu3 %v1257_v14  ;;  %293 = vst [vmem:[#allocation2 + $0xc0] sm:$0xff] %v2739_v2  ;;  %1410 = vmatpush.msra.mxu0 %v1257_v14  ;;  %v342_v14 = vld [vmem:[%s2807_s8 + $0x98] sm:$0xff] }
  0x26   : > { %2712 = vmatpush.msra.mxu1 %v1256_v15  ;;  %2713 = vmatpush.msra.mxu2 %v1256_v15  ;;  %294 = vst [vmem:[#allocation2 + $0xc8] sm:$0xff] %v2739_v2 }
  0x27   : > { %2714 = vmatpush.msra.mxu3 %v1256_v15  ;;  %295 = vst [vmem:[#allocation2 + $0xd0] sm:$0x3] %v2739_v2  ;;  %1411 = vmatpush.msra.mxu0 %v1256_v15 }
  0x28   : > { %2715 = vmatpush.msra.mxu1 %v1255_v16  ;;  %2716 = vmatpush.msra.mxu2 %v1255_v16  ;;  %296 = vst [vmem:[#allocation2 + $0xd8] sm:$0xff] %v2739_v2 }
  0x29   : > { %2717 = vmatpush.msra.mxu3 %v1255_v16  ;;  %297 = vst [vmem:[#allocation2 + $0xe0] sm:$0xff] %v2739_v2  ;;  %1412 = vmatpush.msra.mxu0 %v1255_v16  ;;  %v325_v16 = vld [vmem:[%s2807_s8 + $0x10] sm:$0xff] }
  0x2a   : > { %2718 = vmatpush.msra.mxu1 %v1254_v17  ;;  %2719 = vmatpush.msra.mxu2 %v1254_v17  ;;  %298 = vst [vmem:[#allocation2 + $0xe8] sm:$0x3] %v2739_v2 }
  0x2b   : > { %1438 = vmatmul.f32.vlgmr.msra.gmra.mxu1 %v2870_v18  ;;  %299 = vst [vmem:[#allocation2 + $0xf0] sm:$0xff] %v2739_v2  ;;  %2720 = vmatpush.msra.mxu3 %v1254_v17 }
  0x2c   : > { %300 = vst [vmem:[#allocation2 + $0xf8] sm:$0xff] %v2739_v2  ;;  %1624 = vmatpush.msrb.mxu2 %v1301_v19  ;;  %1413 = vmatpush.msra.mxu0 %v1254_v17  ;;  %v350_v17 = vld [vmem:[%s2807_s8 + $0xd8] sm:$0xff]  ;;  %v1276_v19 = vld [vmem:[%s3685_s1 + $0xb0] sm:$0xff] }
  0x2d   : > { %301 = vst [vmem:[#allocation2 + $0x100] sm:$0x3] %v2739_v2  ;;  %1737 = vmatpush.msrb.mxu3 %v1317_v20  ;;  %1511 = vmatpush.msrb.mxu1 %v1285_v21  ;;  %v1291_v20 = vld [vmem:[%s3685_s1 + $0x128] sm:$0xff]  ;;  %v335_v21 = vld [vmem:[%s2807_s8 + $0x60] sm:$0xff] }
  0x2e   : > { %302 = vst [vmem:[#allocation2 + $0x108] sm:$0xff] %v2739_v2  ;;  %1625 = vmatpush.msrb.mxu2 %v1300_v22  ;;  %1414 = vmatmul.f32.vlgmr.msra.gmra.mxu0 %v2739_v2 }
  0x2f   : > { %303 = vst [vmem:[#allocation2 + $0x110] sm:$0xff] %v2739_v2  ;;  %1738 = vmatpush.msrb.mxu3 %v1316_v23  ;;  %1512 = vmatpush.msrb.mxu1 %v1284_v24  ;;  %v1307_v23 = vld [vmem:[%s3685_s1 + $0x1a8] sm:$0xff]  ;;  %v1325_v24 = vld [vmem:[%s3685_s1 + $0x238] sm:$0xff] }
  0x30   : > { %304 = vst [vmem:[#allocation2 + $0x118] sm:$0x3] %v2739_v2  ;;  %1626 = vmatpush.msrb.mxu2 %v1299_v25  ;;  %1850 = vmatpush.msrb.mxu0 %v1333_v27  ;;  %v1275_v25 = vld [vmem:[%s3685_s1 + $0xa8] sm:$0xff]  ;;  %v343_v27 = vld [vmem:[%s2807_s8 + $0xa0] sm:$0xff] }
  0x31   : > { %305 = vst [vmem:[#allocation2 + $0x120] sm:$0xff] %v2739_v2  ;;  %1739 = vmatpush.msrb.mxu3 %v1315_v26  ;;  %1513 = vmatpush.msrb.mxu1 %v1283_v28  ;;  %v1290_v26 = vld [vmem:[%s3685_s1 + $0x120] sm:$0xff] }
  0x32   : > { %306 = vst [vmem:[#allocation2 + $0x128] sm:$0xff] %v2739_v2  ;;  %1627 = vmatpush.msrb.mxu2 %v1298_v29  ;;  %1851 = vmatpush.msrb.mxu0 %v1332_v31  ;;  %v1306_v28 = vld [vmem:[%s3685_s1 + $0x1a0] sm:$0xff]  ;;  %v1324_v29 = vld [vmem:[%s3685_s1 + $0x230] sm:$0xff] }
  0x33   : > { %307 = vst [vmem:[#allocation2 + $0x130] sm:$0x3] %v2739_v2  ;;  %1740 = vmatpush.msrb.mxu3 %v1314_v30  ;;  %1514 = vmatpush.msrb.mxu1 %v1282_v32  ;;  %v326_v30 = vld [vmem:[%s2807_s8 + $0x18] sm:$0xff]  ;;  %v351_v31 = vld [vmem:[%s2807_s8 + $0xe0] sm:$0xff] }
  0x34   : > { %308 = vst [vmem:[#allocation2 + $0x138] sm:$0xff] %v2739_v2  ;;  %1628 = vmatpush.msrb.mxu2 %v1297_v33  ;;  %1852 = vmatpush.msrb.mxu0 %v1331_v35 }
  0x35   : > { %309 = vst [vmem:[#allocation2 + $0x140] sm:$0xff] %v2739_v2  ;;  %1741 = vmatpush.msrb.mxu3 %v1313_v34  ;;  %1515 = vmatpush.msrb.mxu1 %v1281_v36  ;;  %v336_v36 = vld [vmem:[%s2807_s8 + $0x68] sm:$0xff] }
  0x36   : > { %310 = vst [vmem:[#allocation2 + $0x148] sm:$0x3] %v2739_v2  ;;  %1417 = vmatmul.f32.gmra.mxu0 %v2739_v2  ;;  %1629 = vmatpush.msrb.mxu2 %v1296_v37  ;;  %v344_v37 = vld [vmem:[%s2807_s8 + $0xa8] sm:$0xff] }
  0x37   : > { %311 = vst [vmem:[#allocation2 + $0x150] sm:$0xff] %v2739_v2  ;;  %1742 = vmatpush.msrb.mxu3 %v1312_v38  ;;  %1853 = vmatpush.msrb.mxu0 %v1330_v39  ;;  %v1274_v38 = vld [vmem:[%s3685_s1 + $0xa0] sm:$0xff]  ;;  %v1289_v39 = vld [vmem:[%s3685_s1 + $0x118] sm:$0xff] }
  0x38   : > { %312 = vst [vmem:[#allocation2 + $0x158] sm:$0xff] %v2739_v2  ;;  %1516 = vmatpush.msrb.mxu1 %v1280_v46  ;;  %1630 = vmatpush.msrb.mxu2 %v1295_v47  ;;  %v327_v46 = vld [vmem:[%s2807_s8 + $0x20] sm:$0xff]  ;;  %v352_v47 = vld [vmem:[%s2807_s8 + $0xe8] sm:$0xff] }
  0x39   : > { %313 = vst [vmem:[#allocation2 + $0x160] sm:$0x3] %v2739_v2  ;;  %1743 = vmatpush.msrb.mxu3 %v1311_v48  ;;  %1854 = vmatpush.msrb.mxu0 %v1329_v49 }
  0x3a   : > { %314 = vst [vmem:[#allocation2 + $0x168] sm:$0xff] %v2739_v2  ;;  %1517 = vmatpush.msrb.mxu1 %v1279_v50  ;;  %1631 = vmatpush.msrb.mxu2 %v1294_v51 }
  0x3b   : > { %315 = vst [vmem:[#allocation2 + $0x170] sm:$0xff] %v2739_v2  ;;  %1744 = vmatpush.msrb.mxu3 %v1310_v52  ;;  %1855 = vmatpush.msrb.mxu0 %v1328_v53  ;;  %v1272_v52 = vld [vmem:[%s3685_s1 + $0x90] sm:$0xff]  ;;  %v1287_v53 = vld [vmem:[%s3685_s1 + $0x108] sm:$0xff] }
  0x3c   : > { %316 = vst [vmem:[#allocation2 + $0x178] sm:$0x3] %v2739_v2  ;;  %1518 = vmatpush.msrb.mxu1 %v1278_v63  ;;  %1632 = vmatpush.msrb.mxu2 %v1293_v0 }
  0x3d   : > { %317 = vst [vmem:[#allocation2 + $0x180] sm:$0xff] %v2739_v2  ;;  %1856 = vmatpush.msrb.mxu0 %v1327_v3 }
  0x3e   : > { %318 = vst [vmem:[#allocation2 + $0x188] sm:$0xff] %v2739_v2  ;;  %1519 = vmatpush.msrb.mxu1 %v1277_v5  ;;  %1633 = vmatpush.msrb.mxu2 %v1292_v6  ;;  %v1319_v5 = vld [vmem:[%s3685_s1 + $0x208] sm:$0xff]  ;;  %v1381_v6 = vld [vmem:[%s3685_s1 + $0x3f8] sm:$0xff] }
  0x3f   : > { %319 = vst [vmem:[#allocation2 + $0x190] sm:$0x3] %v2739_v2  ;;  %1857 = vmatpush.msrb.mxu0 %v1326_v9 }
  0x40   : > { %320 = vst [vmem:[#allocation2 + $0x198] sm:$0xff] %v2739_v2  ;;  %1520 = vmatpush.msrb.mxu1 %v1276_v19  ;;  %1634 = vmatpush.msrb.mxu2 %v1291_v20 }
  0x41   : > { %321 = vst [vmem:[#allocation2 + $0x1a0] sm:$0xff] %v2739_v2  ;;  %1858 = vmatpush.msrb.mxu0 %v1325_v24  ;;  %v1348_v24 = vld [vmem:[%s3685_s1 + $0x2f0] sm:$0xff] }
  0x42   : > { %322 = vst [vmem:[#allocation2 + $0x1a8] sm:$0x3] %v2739_v2  ;;  %v1309_v2 = vld [vmem:[%s3685_s1 + $0x1b8] sm:$0xff]  ;;  %1521 = vmatpush.msrb.mxu1 %v1275_v25  ;;  %1635 = vmatpush.msrb.mxu2 %v1290_v26 }
  0x43   : > { %371 = vst.msk [vmem:[#allocation2 + $0xc1] sm:$0xff] %vm356_vm0, %v337_v40  ;;  %1745 = vmatpush.msrb.mxu3 %v1309_v2  ;;  %1859 = vmatpush.msrb.mxu0 %v1324_v29  ;;  %v1305_v40 = vld [vmem:[%s3685_s1 + $0x198] sm:$0xff]  ;;  %v1396_v29 = vld [vmem:[%s3685_s1 + $0x470] sm:$0xff] }
  0x44   : > { %379 = vst.msk [vmem:[#allocation2 + $0x121] sm:$0xff] %vm356_vm0, %v345_v41  ;;  %1522 = vmatpush.msrb.mxu1 %v1274_v38  ;;  %v1323_v41 = vld [vmem:[%s3685_s1 + $0x228] sm:$0xff]  ;;  %1636 = vmatpush.msrb.mxu2 %v1289_v39 }
  0x45   : > { %364 = vst.msk [vmem:[#allocation2 + $0x69] sm:$0xff] %vm356_vm0, %v330_v42  ;;  %1746 = vmatpush.msrb.mxu3 %v1308_v8  ;;  %v1273_v42 = vld [vmem:[%s3685_s1 + $0x98] sm:$0xff]  ;;  %1860 = vmatpush.msrb.mxu0 %v1323_v41  ;;  %v1318_v8 = vld [vmem:[%s3685_s1 + $0x200] sm:$0xff]  ;;  %v1347_v38 = vld [vmem:[%s3685_s1 + $0x2e8] sm:$0xff] }
  0x46   : > { %372 = vst.msk [vmem:[#allocation2 + $0xc9] sm:$0xff] %vm356_vm0, %v338_v43  ;;  %v1288_v43 = vld [vmem:[%s3685_s1 + $0x110] sm:$0xff]  ;;  %1523 = vmatpush.msrb.mxu1 %v1273_v42 }
  0x47   : > { %380 = vst.msk [vmem:[#allocation2 + $0x129] sm:$0xff] %vm356_vm0, %v346_v44  ;;  %1747 = vmatpush.msrb.mxu3 %v1307_v23  ;;  %v1304_v44 = vld [vmem:[%s3685_s1 + $0x190] sm:$0xff]  ;;  %1637 = vmatpush.msrb.mxu2 %v1288_v43  ;;  %v1362_v43 = vld [vmem:[%s3685_s1 + $0x360] sm:$0xff] }
  0x48   : > { %365 = vst.msk [vmem:[#allocation2 + $0x79] sm:$0xff] %vm356_vm0, %v331_v45  ;;  %v1322_v45 = vld [vmem:[%s3685_s1 + $0x220] sm:$0xff]  ;;  %1524 = vmatpush.msrb.mxu1 %v1272_v52  ;;  %v1380_v23 = vld [vmem:[%s3685_s1 + $0x3f0] sm:$0xff]  ;;  %v1361_v52 = vld [vmem:[%s3685_s1 + $0x358] sm:$0xff] }
  0x49   : > { %373 = vst.msk [vmem:[#allocation2 + $0xd9] sm:$0xff] %vm356_vm0, %v339_v54  ;;  %1748 = vmatpush.msrb.mxu3 %v1306_v28  ;;  %1861 = vmatpush.msrb.mxu0 %v1322_v45  ;;  %v1303_v54 = vld [vmem:[%s3685_s1 + $0x188] sm:$0xff] }
  0x4a   : > { %v3007_v59 = vld [vmem:[#allocation2 + $0xc0] sm:$0xff]  ;;  %381 = vst.msk [vmem:[#allocation2 + $0x139] sm:$0xff] %vm356_vm0, %v347_v55  ;;  %v1321_v55 = vld [vmem:[%s3685_s1 + $0x218] sm:$0xff]  ;;  %1638 = vmatpush.msrb.mxu2 %v1287_v53  ;;  %v518_v39 = vld [vmem:[#allocation2 + $0xa] sm:$0xff] }
  0x4b   : > { %1462 = vmatmul.f32.vlgmr.msra.gmra.mxu2 %v3007_v59  ;;  %v413_v62 = vld [vmem:[#allocation2 + $0x120] sm:$0xff]  ;;  %366 = vst.msk [vmem:[#allocation2 + $0x81] sm:$0xff] %vm356_vm0, %v332_v56  ;;  %1749 = vmatpush.msrb.mxu3 %v1305_v40  ;;  %v1271_v56 = vld [vmem:[%s3685_s1 + $0x88] sm:$0xff]  ;;  %v1377_v53 = vld [vmem:[%s3685_s1 + $0x3d8] sm:$0xff] }
  0x4c   : > { %1486 = vmatmul.f32.vlgmr.msra.gmra.mxu3 %v413_v62  ;;  %v3020_v1 = vld [vmem:[#allocation2 + $0x68] sm:$0xff]  ;;  %374 = vst.msk [vmem:[#allocation2 + $0xe1] sm:$0xff] %vm356_vm0, %v340_v57  ;;  %v1286_v57 = vld [vmem:[%s3685_s1 + $0x100] sm:$0xff]  ;;  %1862 = vmatpush.msrb.mxu0 %v1321_v55 }
  0x4d   : > { %1441 = vmatmul.f32.gmra.mxu1 %v3020_v1  ;;  %357 = vst.msk [vmem:[#allocation2 + $0x19] sm:$0xff] %vm356_vm0, %v323_v58  ;;  %v3048_v11 = vld [vmem:[#allocation2 + $0xc8] sm:$0xff]  ;;  %1750 = vmatpush.msrb.mxu3 %v1304_v44  ;;  %v1302_v58 = vld [vmem:[%s3685_s1 + $0x180] sm:$0xff] }
  0x4e   : > { %382 = vst.msk [vmem:[#allocation2 + $0x141] sm:$0xff] %vm356_vm0, %v348_v60  ;;  %v414_v13 = vld [vmem:[#allocation2 + $0x128] sm:$0xff]  ;;  %v1320_v60 = vld [vmem:[%s3685_s1 + $0x210] sm:$0xff]  ;;  %1525 = vmatpush.msrb.mxu1 %v1271_v56  ;;  %1639 = vmatpush.msrb.mxu2 %v1286_v57  ;;  %v1346_v44 = vld [vmem:[%s3685_s1 + $0x2e0] sm:$0xff] }
  0x4f   : > { %367 = vst.msk [vmem:[#allocation2 + $0x91] sm:$0xff] %vm356_vm0, %v333_v61  ;;  %v3054_v15 = vld [vmem:[#allocation2 + $0x78] sm:$0xff]  ;;  %1751 = vmatpush.msrb.mxu3 %v1303_v54  ;;  %v1270_v61 = vld [vmem:[%s3685_s1 + $0x80] sm:$0xff]  ;;  %v328_v62 = vld [vmem:[%s2807_s8 + $0x28] sm:$0xff]  ;;  %1863 = vmatpush.msrb.mxu0 %v1320_v60 }
  0x50   : > { %375 = vst.msk [vmem:[#allocation2 + $0xf1] sm:$0xff] %vm356_vm0, %v341_v4  ;;  %v3097_v32 = vld [vmem:[#allocation2 + $0xd8] sm:$0xff]  ;;  %1526 = vmatpush.msrb.mxu1 %v1270_v61  ;;  %v651_v56 = vld [vmem:[#allocation2 + $0x61] sm:$0xff]  ;;  %v652_v60 = vld [vmem:[#allocation2 + $0x69] sm:$0xff] }
  0x51   : > { %358 = vst.msk [vmem:[#allocation2 + $0x21] sm:$0xff] %vm356_vm0, %v324_v7  ;;  %v415_v33 = vld [vmem:[#allocation2 + $0x138] sm:$0xff]  ;;  %1752 = vmatpush.msrb.mxu3 %v1302_v58  ;;  %1864 = vmatpush.msrb.mxu0 %v1319_v5  ;;  %v1360_v61 = vld [vmem:[%s3685_s1 + $0x350] sm:$0xff] }
  0x52   : > { %383 = vst.msk [vmem:[#allocation2 + $0x151] sm:$0xff] %vm356_vm0, %v349_v10  ;;  %v3100_v34 = vld [vmem:[#allocation2 + $0x80] sm:$0xff]  ;;  %v1365_v4 = vld [vmem:[%s3685_s1 + $0x378] sm:$0xff] }
  0x53   : > { %1465 = vmatmul.f32.gmra.mxu2 %v3048_v11  ;;  %368 = vst.msk [vmem:[#allocation2 + $0x99] sm:$0xff] %vm356_vm0, %v334_v12  ;;  %v3139_v48 = vld [vmem:[#allocation2 + $0xe0] sm:$0xff]  ;;  %v1349_v7 = vld [vmem:[%s3685_s1 + $0x2f8] sm:$0xff]  ;;  %2189 = vmatpush.msra.mxu3 %v1381_v6 }
  0x54   : > { %1489 = vmatmul.f32.gmra.mxu3 %v414_v13  ;;  %v3068_v22 = vld [vmem:[#allocation2 + $0x18] sm:$0xff]  ;;  %376 = vst.msk [vmem:[#allocation2 + $0xf9] sm:$0xff] %vm356_vm0, %v342_v14  ;;  %2076 = vmatpush.msra.mxu2 %v1365_v4 }
  0x55   : > { %1444 = vmatmul.f32.gmra.mxu1 %v3054_v15  ;;  %1420 = vmatmul.f32.gmra.mxu0 %v3068_v22  ;;  %359 = vst.msk [vmem:[#allocation2 + $0x31] sm:$0xff] %vm356_vm0, %v325_v16  ;;  %v416_v49 = vld [vmem:[#allocation2 + $0x140] sm:$0xff]  ;;  %v1397_v14 = vld [vmem:[%s3685_s1 + $0x478] sm:$0xff] }
  0x56   : > { %384 = vst.msk [vmem:[#allocation2 + $0x159] sm:$0xff] %vm356_vm0, %v350_v17  ;;  %v3143_v50 = vld [vmem:[#allocation2 + $0x90] sm:$0xff]  ;;  %1963 = vmatpush.msra.mxu1 %v1349_v7  ;;  %1865 = vmatpush.msrb.mxu0 %v1318_v8  ;;  %v645_v28 = vld [vmem:[#allocation2 + $0x19] sm:$0xff]  ;;  %v525_v7 = vld [vmem:[#allocation2 + $0x62] sm:$0xff] }
  0x57   : > { %369 = vst.msk [vmem:[#allocation2 + $0xa9] sm:$0xff] %vm356_vm0, %v335_v21  ;;  %v3178_v63 = vld [vmem:[#allocation2 + $0xf0] sm:$0xff]  ;;  %2190 = vmatpush.msra.mxu3 %v1380_v23  ;;  %v1345_v54 = vld [vmem:[%s3685_s1 + $0x2d8] sm:$0xff] }
  0x58   : > { %377 = vst.msk [vmem:[#allocation2 + $0x109] sm:$0xff] %vm356_vm0, %v343_v27  ;;  %v3103_v35 = vld [vmem:[#allocation2 + $0x20] sm:$0xff]  ;;  %2302 = vmatpush.msra.mxu0 %v1397_v14  ;;  %v1364_v21 = vld [vmem:[%s3685_s1 + $0x370] sm:$0xff]  ;;  %1964 = vmatpush.msra.mxu1 %v1348_v24  ;;  %v1393_v57 = vld [vmem:[%s3685_s1 + $0x458] sm:$0xff] }
  0x59   : > { %360 = vst.msk [vmem:[#allocation2 + $0x39] sm:$0xff] %vm356_vm0, %v326_v30  ;;  %v417_v0 = vld [vmem:[#allocation2 + $0x150] sm:$0xff]  ;;  %2077 = vmatpush.msra.mxu2 %v1364_v21  ;;  %v453_v27 = vld [vmem:[#allocation2 + $0x1] sm:$0xff]  ;;  %v653_v6 = vld [vmem:[#allocation2 + $0x79] sm:$0xff] }
  0x5a   : > { %385 = vst.msk [vmem:[#allocation2 + $0x169] sm:$0xff] %vm356_vm0, %v351_v31  ;;  %v3181_v2 = vld [vmem:[#allocation2 + $0x98] sm:$0xff]  ;;  %2303 = vmatpush.msra.mxu0 %v1396_v29  ;;  %v517_v30 = vld [vmem:[#allocation2 + $0x2] sm:$0xff]  ;;  %1965 = vmatpush.msra.mxu1 %v1347_v38  ;;  %v526_v23 = vld [vmem:[#allocation2 + $0x6a] sm:$0xff] }
  0x5b   : > { %1468 = vmatmul.f32.gmra.mxu2 %v3097_v32  ;;  %370 = vst.msk [vmem:[#allocation2 + $0xb1] sm:$0xff] %vm356_vm0, %v336_v36  ;;  %v3203_v9 = vld [vmem:[#allocation2 + $0xf8] sm:$0xff]  ;;  %v454_v31 = vld [vmem:[#allocation2 + $0x9] sm:$0xff] }
  0x5c   : > { %1492 = vmatmul.f32.gmra.mxu3 %v415_v33  ;;  %378 = vst.msk [vmem:[#allocation2 + $0x111] sm:$0xff] %vm356_vm0, %v344_v37  ;;  %v3145_v51 = vld [vmem:[#allocation2 + $0x30] sm:$0xff]  ;;  %v646_v33 = vld [vmem:[#allocation2 + $0x21] sm:$0xff]  ;;  %1966 = vmatpush.msra.mxu1 %v1346_v44 }
  0x5d   : > { %1447 = vmatmul.f32.gmra.mxu1 %v3100_v34  ;;  %1423 = vmatmul.f32.gmra.mxu0 %v3103_v35  ;;  %361 = vst.msk [vmem:[#allocation2 + $0x49] sm:$0xff] %vm356_vm0, %v327_v46  ;;  %v418_v10 = vld [vmem:[#allocation2 + $0x158] sm:$0xff]  ;;  %v1363_v36 = vld [vmem:[%s3685_s1 + $0x368] sm:$0xff] }
  0x5e   : > { %386 = vst.msk [vmem:[#allocation2 + $0x171] sm:$0xff] %vm356_vm0, %v352_v47  ;;  %v3205_v12 = vld [vmem:[#allocation2 + $0xa8] sm:$0xff]  ;;  %2078 = vmatpush.msra.mxu2 %v1363_v36  ;;  %v3249_v40 = vld [vmem:[#allocation2 + $0x31] sm:$0xff]  ;;  %v519_v41 = vld [vmem:[#allocation2 + $0x1a] sm:$0xff]  ;;  %1967 = vmatpush.msra.mxu1 %v1345_v54 }
  0x5f   : > { %362 = vst.msk [vmem:[#allocation2 + $0x51] sm:$0xff] %vm356_vm0, %v328_v62  ;;  %v3215_v16 = vld [vmem:[#allocation2 + $0x108] sm:$0xff]  ;;  %v1394_v47 = vld [vmem:[%s3685_s1 + $0x460] sm:$0xff]  ;;  %v1376_v62 = vld [vmem:[%s3685_s1 + $0x3d0] sm:$0xff] }
  0x60   : > { %v3183_v3 = vld [vmem:[#allocation2 + $0x38] sm:$0xff]  ;;  %v1379_v37 = vld [vmem:[%s3685_s1 + $0x3e8] sm:$0xff]  ;;  %2079 = vmatpush.msra.mxu2 %v1362_v43 }
  0x61   : > { %v419_v17 = vld [vmem:[#allocation2 + $0x168] sm:$0xff]  ;;  %2191 = vmatpush.msra.mxu3 %v1379_v37  ;;  %v648_v42 = vld [vmem:[#allocation2 + $0x39] sm:$0xff] }
  0x62   : > { %v3217_v19 = vld [vmem:[#allocation2 + $0xb0] sm:$0xff]  ;;  %v520_v45 = vld [vmem:[#allocation2 + $0x22] sm:$0xff]  ;;  %2080 = vmatpush.msra.mxu2 %v1361_v52  ;;  %v522_v55 = vld [vmem:[#allocation2 + $0x3a] sm:$0xff] }
  0x63   : > { %1471 = vmatmul.f32.gmra.mxu2 %v3139_v48  ;;  %v3233_v25 = vld [vmem:[#allocation2 + $0x110] sm:$0xff]  ;;  %v1359_v14 = vld [vmem:[%s3685_s1 + $0x348] sm:$0xff]  ;;  %v656_v36 = vld [vmem:[#allocation2 + $0x99] sm:$0xff] }
  0x64   : > { %1495 = vmatmul.f32.gmra.mxu3 %v416_v49  ;;  %v3207_v13 = vld [vmem:[#allocation2 + $0x48] sm:$0xff]  ;;  %v521_v49 = vld [vmem:[#allocation2 + $0x32] sm:$0xff]  ;;  %2081 = vmatpush.msra.mxu2 %v1360_v61  ;;  %v1374_v37 = vld [vmem:[%s3685_s1 + $0x3c0] sm:$0xff] }
  0x65   : > { %1450 = vmatmul.f32.gmra.mxu1 %v3143_v50  ;;  %1426 = vmatmul.f32.gmra.mxu0 %v3145_v51  ;;  %v420_v26 = vld [vmem:[#allocation2 + $0x170] sm:$0xff]  ;;  %v1373_v52 = vld [vmem:[%s3685_s1 + $0x3b8] sm:$0xff] }
  0x66   : > { %v3219_v20 = vld [vmem:[#allocation2 + $0x50] sm:$0xff]  ;;  %2082 = vmatpush.msra.mxu2 %v1359_v14 }
  0x67   : > { %v649_v46 = vld [vmem:[#allocation2 + $0x49] sm:$0xff]  ;;  %v524_v4 = vld [vmem:[#allocation2 + $0x52] sm:$0xff] }
  0x68   : > { %v523_v58 = vld [vmem:[#allocation2 + $0x4a] sm:$0xff] }
  0x69   : > { %v657_v43 = vld [vmem:[#allocation2 + $0xa9] sm:$0xff] }
  0x6b   : > { %1474 = vmatmul.f32.gmra.mxu2 %v3178_v63 }
  0x6c   : > { %1498 = vmatmul.f32.gmra.mxu3 %v417_v0 }
  0x6d   : > { %1453 = vmatmul.f32.gmra.mxu1 %v3181_v2  ;;  %1429 = vmatmul.f32.gmra.mxu0 %v3183_v3 }
  0x73   : > { %1477 = vmatmul.f32.gmra.mxu2 %v3203_v9 }
  0x74   : > { %1501 = vmatmul.f32.gmra.mxu3 %v418_v10 }
  0x75   : > { %1456 = vmatmul.f32.gmra.mxu1 %v3205_v12  ;;  %1432 = vmatmul.f32.gmra.mxu0 %v3207_v13 }
  0x7b   : > { %1480 = vmatmul.f32.gmra.mxu2 %v3215_v16 }
  0x7c   : > { %1504 = vmatmul.f32.gmra.mxu3 %v419_v17 }
  0x7d   : > { %1459 = vmatmul.f32.gmra.mxu1 %v3217_v19  ;;  %1435 = vmatmul.f32.gmra.mxu0 %v3219_v20 }
  0x83   : > { %1483 = vmatmul.f32.gmra.mxu2 %v3233_v25 }
  0x84   : > { %1507 = vmatmul.f32.gmra.mxu3 %v420_v26  ;;  %v655_v26 = vld [vmem:[#allocation2 + $0x91] sm:$0xff] }
  0x85   : > { %1527 = vmatmul.f32.vlgmr.msrb.gmra.mxu1 %v453_v27  ;;  %1866 = vmatmul.f32.vlgmr.msrb.gmra.mxu0 %v645_v28  ;;  %v1391_v27 = vld [vmem:[%s3685_s1 + $0x448] sm:$0xff] }
  0x8b   : > { %1640 = vmatmul.f32.vlgmr.msrb.gmra.mxu2 %v517_v30  ;;  %v527_v30 = vld [vmem:[#allocation2 + $0x7a] sm:$0xff] }
  0x8c   : > { %1753 = vmatmul.f32.vlgmr.msrb.gmra.mxu3 %v3068_v22  ;;  %v1395_v22 = vld [vmem:[%s3685_s1 + $0x468] sm:$0xff] }
  0x8d   : > { %1530 = vmatmul.f32.gmra.mxu1 %v454_v31  ;;  %1869 = vmatmul.f32.gmra.mxu0 %v646_v33 }
  0x8e   : > { %2304 = vmatpush.msra.mxu0 %v1395_v22 }
  0x90   : > { %2305 = vmatpush.msra.mxu0 %v1394_v47 }
  0x92   : > { %2306 = vmatpush.msra.mxu0 %v1393_v57 }
  0x93   : > { %1643 = vmatmul.f32.gmra.mxu2 %v518_v39  ;;  %v1342_v39 = vld [vmem:[%s3685_s1 + $0x2c0] sm:$0xff] }
  0x94   : > { %1756 = vmatmul.f32.gmra.mxu3 %v3103_v35  ;;  %v1378_v35 = vld [vmem:[%s3685_s1 + $0x3e0] sm:$0xff] }
  0x95   : > { %1533 = vmatmul.f32.gmra.mxu1 %v645_v28  ;;  %1872 = vmatmul.f32.gmra.mxu0 %v3249_v40 }
  0x96   : > { %2192 = vmatpush.msra.mxu3 %v1378_v35  ;;  %v1390_v35 = vld [vmem:[%s3685_s1 + $0x440] sm:$0xff] }
  0x98   : > { %2193 = vmatpush.msra.mxu3 %v1377_v53 }
  0x9a   : > { %2194 = vmatpush.msra.mxu3 %v1376_v62 }
  0x9b   : > { %1646 = vmatmul.f32.gmra.mxu2 %v519_v41  ;;  %v528_v41 = vld [vmem:[#allocation2 + $0x82] sm:$0xff] }
  0x9c   : > { %1759 = vmatmul.f32.gmra.mxu3 %v3145_v51  ;;  %v650_v51 = vld [vmem:[#allocation2 + $0x51] sm:$0xff] }
  0x9d   : > { %1536 = vmatmul.f32.gmra.mxu1 %v646_v33  ;;  %1875 = vmatmul.f32.gmra.mxu0 %v648_v42 }
  0xa3   : > { %1649 = vmatmul.f32.gmra.mxu2 %v520_v45 }
  0xa4   : > { %1762 = vmatmul.f32.gmra.mxu3 %v3183_v3  ;;  %v1344_v3 = vld [vmem:[%s3685_s1 + $0x2d0] sm:$0xff] }
  0xa5   : > { %1539 = vmatmul.f32.gmra.mxu1 %v3249_v40  ;;  %1878 = vmatmul.f32.gmra.mxu0 %v649_v46 }
  0xa6   : > { %1968 = vmatpush.msra.mxu1 %v1344_v3  ;;  %v531_v3 = vld [vmem:[#allocation2 + $0xaa] sm:$0xff] }
  0xa8   : > { %v3297_v5 = vpop.f32.mrf.mxu1 }
  0xab   : > { %1652 = vmatmul.f32.gmra.mxu2 %v521_v49  ;;  %v3292_v0 = vpop.f32.mrf.mxu0 }
  0xac   : > { %1765 = vmatmul.f32.gmra.mxu3 %v3207_v13  ;;  %v654_v13 = vld [vmem:[#allocation2 + $0x81] sm:$0xff] }
  0xad   : > { %1542 = vmatmul.f32.gmra.mxu1 %v648_v42  ;;  %1881 = vmatmul.f32.gmra.mxu0 %v650_v51 }
  0xb3   : > { %1655 = vmatmul.f32.gmra.mxu2 %v522_v55  ;;  %v3303_v8 = vpop.f32.mrf.mxu0  ;;  %v1341_v55 = vld [vmem:[%s3685_s1 + $0x2b8] sm:$0xff] }
  0xb4   : > { %1768 = vmatmul.f32.gmra.mxu3 %v3219_v20  ;;  %v1343_v20 = vld [vmem:[%s3685_s1 + $0x2c8] sm:$0xff] }
  0xb5   : > { %1545 = vmatmul.f32.gmra.mxu1 %v649_v46  ;;  %1884 = vmatmul.f32.gmra.mxu0 %v651_v56  ;;  %v529_v46 = vld [vmem:[#allocation2 + $0x92] sm:$0xff] }
  0xb6   : > { %1969 = vmatpush.msra.mxu1 %v1343_v20  ;;  %v532_v20 = vld [vmem:[#allocation2 + $0xb2] sm:$0xff] }
  0xb8   : > { %1970 = vmatpush.msra.mxu1 %v1342_v39 }
  0xba   : > { %1971 = vmatpush.msra.mxu1 %v1341_v55  ;;  %v534_v55 = vld [vmem:[#allocation2 + $0xca] sm:$0xff] }
  0xbb   : > { %1658 = vmatmul.f32.gmra.mxu2 %v523_v58  ;;  %v659_v58 = vld [vmem:[#allocation2 + $0xc1] sm:$0xff] }
  0xbc   : > { %1771 = vmatmul.f32.gmra.mxu3 %v2870_v18  ;;  %v1392_v18 = vld [vmem:[%s3685_s1 + $0x450] sm:$0xff] }
  0xbd   : > { %1548 = vmatmul.f32.gmra.mxu1 %v650_v51  ;;  %1887 = vmatmul.f32.gmra.mxu0 %v652_v60  ;;  %v658_v51 = vld [vmem:[#allocation2 + $0xb1] sm:$0xff] }
  0xbe   : > { %2307 = vmatpush.msra.mxu0 %v1392_v18  ;;  %v660_v18 = vld [vmem:[#allocation2 + $0xc9] sm:$0xff] }
  0xc0   : > { %2308 = vmatpush.msra.mxu0 %v1391_v27  ;;  %v1388_v27 = vld [vmem:[%s3685_s1 + $0x430] sm:$0xff] }
  0xc2   : > { %2309 = vmatpush.msra.mxu0 %v1390_v35 }
  0xc3   : > { %1661 = vmatmul.f32.gmra.mxu2 %v524_v4 }
  0xc4   : > { %1774 = vmatmul.f32.gmra.mxu3 %v3020_v1  ;;  %v1375_v1 = vld [vmem:[%s3685_s1 + $0x3c8] sm:$0xff] }
  0xc5   : > { %1551 = vmatmul.f32.gmra.mxu1 %v651_v56  ;;  %1890 = vmatmul.f32.gmra.mxu0 %v653_v6  ;;  %v530_v56 = vld [vmem:[#allocation2 + $0x9a] sm:$0xff] }
  0xc6   : > { %2195 = vmatpush.msra.mxu3 %v1375_v1  ;;  %v1340_v1 = vld [vmem:[%s3685_s1 + $0x2b0] sm:$0xff] }
  0xc7   : > { %1972 = vmatpush.msra.mxu1 %v1340_v1 }
  0xc8   : > { %2196 = vmatpush.msra.mxu3 %v1374_v37 }
  0xca   : > { %v3305_v10 = vpop.f32.mrf.mxu1  ;;  %2197 = vmatpush.msra.mxu3 %v1373_v52  ;;  %v1339_v52 = vld [vmem:[%s3685_s1 + $0x2a8] sm:$0xff] }
  0xcb   : > { %1664 = vmatmul.f32.gmra.mxu2 %v525_v7  ;;  %v1372_v7 = vld [vmem:[%s3685_s1 + $0x3b0] sm:$0xff]  ;;  %1973 = vmatpush.msra.mxu1 %v1339_v52 }
  0xcc   : > { %1777 = vmatmul.f32.gmra.mxu3 %v3054_v15  ;;  %v665_v52 = vld [vmem:[#allocation2 + $0x109] sm:$0xff] }
  0xcd   : > { %1554 = vmatmul.f32.gmra.mxu1 %v652_v60  ;;  %1893 = vmatmul.f32.gmra.mxu0 %v654_v13  ;;  %v1389_v60 = vld [vmem:[%s3685_s1 + $0x438] sm:$0xff] }
  0xce   : > { %v3314_v17 = vpop.f32.mrf.mxu2  ;;  %2310 = vmatpush.msra.mxu0 %v1389_v60  ;;  %2198 = vmatpush.msra.mxu3 %v1372_v7  ;;  %v663_v60 = vld [vmem:[#allocation2 + $0xf1] sm:$0xff] }
  0xcf   : > { %v3319_v21 = vpop.f32.mrf.mxu3 }
  0xd0   : > { %2311 = vmatpush.msra.mxu0 %v1388_v27 }
  0xd2   : > { %v3321_v24 = vpop.f32.mrf.mxu1  ;;  %v3323_v15 = vpop.f32.mrf.mxu0 }
  0xd3   : > { %1667 = vmatmul.f32.gmra.mxu2 %v526_v23 }
  0xd4   : > { %1780 = vmatmul.f32.gmra.mxu3 %v3100_v34  ;;  %v1358_v34 = vld [vmem:[%s3685_s1 + $0x340] sm:$0xff] }
  0xd5   : > { %1557 = vmatmul.f32.gmra.mxu1 %v653_v6  ;;  %1896 = vmatmul.f32.gmra.mxu0 %v655_v26 }
  0xd6   : > { %v3329_v28 = vpop.f32.mrf.mxu2  ;;  %2083 = vmatpush.msra.mxu2 %v1358_v34  ;;  %v533_v34 = vld [vmem:[#allocation2 + $0xc2] sm:$0xff] }
  0xd7   : > { %v3331_v29 = vpop.f32.mrf.mxu3 }
  0xda   : > { %v3333_v31 = vpop.f32.mrf.mxu1  ;;  %v3335_v33 = vpop.f32.mrf.mxu0 }
  0xdb   : > { %1670 = vmatmul.f32.gmra.mxu2 %v527_v30 }
  0xdc   : > { %1783 = vmatmul.f32.gmra.mxu3 %v3143_v50 }
  0xdd   : > { %1560 = vmatmul.f32.gmra.mxu1 %v654_v13  ;;  %1899 = vmatmul.f32.gmra.mxu0 %v656_v36 }
  0xde   : > { %v3344_v38 = vpop.f32.mrf.mxu2 }
  0xdf   : > { %v3349_v22 = vpop.f32.mrf.mxu3 }
  0xe2   : > { %v3351_v42 = vpop.f32.mrf.mxu1  ;;  %v3353_v50 = vpop.f32.mrf.mxu0 }
  0xe3   : > { %1673 = vmatmul.f32.gmra.mxu2 %v528_v41  ;;  %v662_v41 = vld [vmem:[#allocation2 + $0xe1] sm:$0xff] }
  0xe4   : > { %1786 = vmatmul.f32.gmra.mxu3 %v3181_v2  ;;  %v1357_v2 = vld [vmem:[%s3685_s1 + $0x338] sm:$0xff] }
  0xe5   : > { %1563 = vmatmul.f32.gmra.mxu1 %v655_v26  ;;  %1902 = vmatmul.f32.gmra.mxu0 %v657_v43  ;;  %v661_v26 = vld [vmem:[#allocation2 + $0xd9] sm:$0xff] }
  0xe6   : > { %v3359_v44 = vpop.f32.mrf.mxu2  ;;  %2084 = vmatpush.msra.mxu2 %v1357_v2 }
  0xe7   : > { %v3361_v45 = vpop.f32.mrf.mxu3 }
  0xea   : > { %v3363_v47 = vpop.f32.mrf.mxu1  ;;  %v3365_v49 = vpop.f32.mrf.mxu0 }
  0xeb   : > { %1676 = vmatmul.f32.gmra.mxu2 %v529_v46 }
  0xec   : > { %1789 = vmatmul.f32.gmra.mxu3 %v3205_v12 }
  0xed   : > { %1566 = vmatmul.f32.gmra.mxu1 %v656_v36  ;;  %1905 = vmatmul.f32.gmra.mxu0 %v658_v51 }
  0xee   : > { %v3374_v53 = vpop.f32.mrf.mxu2 }
  0xef   : > { %v3376_v54 = vpop.f32.mrf.mxu3 }
  0xf2   : > { %v3381_v57 = vpop.f32.mrf.mxu1  ;;  %v3383_v12 = vpop.f32.mrf.mxu0 }
  0xf3   : > { %1679 = vmatmul.f32.gmra.mxu2 %v530_v56 }
  0xf4   : > { %1792 = vmatmul.f32.gmra.mxu3 %v3217_v19  ;;  %v1356_v19 = vld [vmem:[%s3685_s1 + $0x330] sm:$0xff] }
  0xf5   : > { %1569 = vmatmul.f32.gmra.mxu1 %v657_v43  ;;  %1908 = vmatmul.f32.gmra.mxu0 %v659_v58  ;;  %v1371_v43 = vld [vmem:[%s3685_s1 + $0x3a8] sm:$0xff] }
  0xf6   : > { %v3389_v61 = vpop.f32.mrf.mxu2  ;;  %2085 = vmatpush.msra.mxu2 %v1356_v19  ;;  %2199 = vmatpush.msra.mxu3 %v1371_v43 }
  0xf7   : > { %v3391_v62 = vpop.f32.mrf.mxu3 }
  0xfa   : > { %v3393_v4 = vpop.f32.mrf.mxu1  ;;  %v3395_v6 = vpop.f32.mrf.mxu0 }
  0xfb   : > { %1682 = vmatmul.f32.gmra.mxu2 %v531_v3 }
  0xfc   : > { %1795 = vmatmul.f32.gmra.mxu3 %v3007_v59 }
  0xfd   : > { %1572 = vmatmul.f32.gmra.mxu1 %v658_v51  ;;  %1911 = vmatmul.f32.gmra.mxu0 %v660_v18 }
  0xfe   : > { %v3404_v13 = vpop.f32.mrf.mxu2 }
  0xff   : > { %v3406_v14 = vpop.f32.mrf.mxu3 }
 0x102   : > { %v1528_v23 = vpop.f32.mrf.mxu1  ;;  %v1867_v59 = vpop.f32.mrf.mxu0 }
 0x103   : > { %1685 = vmatmul.f32.gmra.mxu2 %v532_v20  ;;  %v1529_v35 = vadd.f32 %v1528_v23, %v3292_v0  ;;  %v1387_v0 = vld [vmem:[%s3685_s1 + $0x428] sm:$0xff]  ;;  %v535_v20 = vld [vmem:[#allocation2 + $0xda] sm:$0xff] }
 0x104   : > { %1798 = vmatmul.f32.gmra.mxu3 %v3048_v11  ;;  %v1355_v11 = vld [vmem:[%s3685_s1 + $0x328] sm:$0xff]  ;;  %2312 = vmatpush.msra.mxu0 %v1387_v0 }
 0x105   : > { %1575 = vmatmul.f32.gmra.mxu1 %v659_v58  ;;  %1914 = vmatmul.f32.gmra.mxu0 %v661_v26 }
 0x106   : > { %v3415_v30 = vpop.f32.mrf.mxu2  ;;  %2086 = vmatpush.msra.mxu2 %v1355_v11 }
 0x107   : > { %v3417_v36 = vpop.f32.mrf.mxu3 }
 0x10a   : > { %v1531_v37 = vpop.f32.mrf.mxu1  ;;  %v1870_v39 = vpop.f32.mrf.mxu0 }
 0x10b   : > { %1688 = vmatmul.f32.gmra.mxu2 %v533_v34  ;;  %v664_v34 = vld [vmem:[#allocation2 + $0xf9] sm:$0xff] }
 0x10c   : > { %1801 = vmatmul.f32.gmra.mxu3 %v3097_v32 }
 0x10d   : > { %1578 = vmatmul.f32.gmra.mxu1 %v660_v18  ;;  %1917 = vmatmul.f32.gmra.mxu0 %v662_v41  ;;  %v1532_v18 = vadd.f32 %v1531_v37, %v3303_v8  ;;  %v1370_v8 = vld [vmem:[%s3685_s1 + $0x3a0] sm:$0xff] }
 0x10e   : > { %v1641_v46 = vpop.f32.mrf.mxu2  ;;  %2200 = vmatpush.msra.mxu3 %v1370_v8  ;;  %v538_v8 = vld [vmem:[#allocation2 + $0xfa] sm:$0xff] }
 0x10f   : > { %v1642_v51 = vadd.f32 %v1641_v46, %v1529_v35  ;;  %v1754_v2 = vpop.f32.mrf.mxu3  ;;  %v1338_v35 = vld [vmem:[%s3685_s1 + $0x2a0] sm:$0xff] }
 0x110   : > { %v536_v46 = vld [vmem:[#allocation2 + $0xe2] sm:$0xff]  ;;  %1974 = vmatpush.msra.mxu1 %v1338_v35 }
 0x111   : > { %v1755_v32 = vadd.f32 %v1754_v2, %v1642_v51 }
 0x112   : > { %v1534_v56 = vpop.f32.mrf.mxu1  ;;  %v1873_v58 = vpop.f32.mrf.mxu0 }
 0x113   : > { %v3430_v3 = vadd.f32 %v1867_v59, %v1755_v32  ;;  %1691 = vmatmul.f32.gmra.mxu2 %v534_v55 }
 0x114   : > { %1804 = vmatmul.f32.gmra.mxu3 %v3139_v48  ;;  %v1354_v48 = vld [vmem:[%s3685_s1 + $0x320] sm:$0xff] }
 0x115   : > { %1581 = vmatmul.f32.gmra.mxu1 %v661_v26  ;;  %1920 = vmatmul.f32.gmra.mxu0 %v663_v60  ;;  %v1535_v26 = vadd.f32 %v1534_v56, %v3323_v15  ;;  %v1386_v15 = vld [vmem:[%s3685_s1 + $0x420] sm:$0xff] }
 0x116   : > { %v1644_v19 = vpop.f32.mrf.mxu2  ;;  %2087 = vmatpush.msra.mxu2 %v1354_v48  ;;  %2313 = vmatpush.msra.mxu0 %v1386_v15  ;;  %v1337_v48 = vld [vmem:[%s3685_s1 + $0x298] sm:$0xff] }
 0x117   : > { %v1645_v7 = vadd.f32 %v1644_v19, %v1532_v18  ;;  %v1757_v1 = vpop.f32.mrf.mxu3  ;;  %v537_v18 = vld [vmem:[#allocation2 + $0xf2] sm:$0xff]  ;;  %1975 = vmatpush.msra.mxu1 %v1337_v48 }
 0x119   : > { %v1758_v23 = vadd.f32 %v1757_v1, %v1645_v7  ;;  %v666_v1 = vld [vmem:[#allocation2 + $0x111] sm:$0xff] }
 0x11a   : > { %v1537_v27 = vpop.f32.mrf.mxu1  ;;  %v1876_v59 = vpop.f32.mrf.mxu0 }
 0x11b   : > { %v3437_v11 = vadd.f32 %v1870_v39, %v1758_v23  ;;  %1694 = vmatmul.f32.gmra.mxu2 %v535_v20 }
 0x11c   : > { %1807 = vmatmul.f32.gmra.mxu3 %v3178_v63 }
 0x11d   : > { %1584 = vmatmul.f32.gmra.mxu1 %v662_v41  ;;  %1923 = vmatmul.f32.gmra.mxu0 %v664_v34  ;;  %v1538_v41 = vadd.f32 %v1537_v27, %v3335_v33  ;;  %v1369_v33 = vld [vmem:[%s3685_s1 + $0x398] sm:$0xff] }
 0x11e   : > { %v1647_v37 = vpop.f32.mrf.mxu2  ;;  %2201 = vmatpush.msra.mxu3 %v1369_v33 }
 0x11f   : > { %v1648_v39 = vadd.f32 %v1647_v37, %v1535_v26  ;;  %v1760_v43 = vpop.f32.mrf.mxu3 }
 0x121   : > { %v1761_v63 = vadd.f32 %v1760_v43, %v1648_v39  ;;  %v667_v39 = vld [vmem:[#allocation2 + $0x121] sm:$0xff] }
 0x122   : > { %v1540_v51 = vpop.f32.mrf.mxu1  ;;  %v1879_v2 = vpop.f32.mrf.mxu0 }
 0x123   : > { %v3450_v55 = vadd.f32 %v1873_v58, %v1761_v63  ;;  %1697 = vmatmul.f32.gmra.mxu2 %v536_v46 }
 0x124   : > { %1810 = vmatmul.f32.gmra.mxu3 %v3203_v9  ;;  %v1353_v9 = vld [vmem:[%s3685_s1 + $0x318] sm:$0xff] }
 0x125   : > { %1587 = vmatmul.f32.gmra.mxu1 %v663_v60  ;;  %1926 = vmatmul.f32.gmra.mxu0 %v665_v52  ;;  %v1541_v60 = vadd.f32 %v1540_v51, %v3353_v50  ;;  %v1385_v50 = vld [vmem:[%s3685_s1 + $0x418] sm:$0xff]  ;;  %v539_v51 = vld [vmem:[#allocation2 + $0x10a] sm:$0xff] }
 0x126   : > { %v1650_v32 = vpop.f32.mrf.mxu2  ;;  %2088 = vmatpush.msra.mxu2 %v1353_v9  ;;  %2314 = vmatpush.msra.mxu0 %v1385_v50  ;;  %v540_v9 = vld [vmem:[#allocation2 + $0x112] sm:$0xff]  ;;  %v541_v50 = vld [vmem:[#allocation2 + $0x122] sm:$0xff] }
 0x127   : > { %v1651_v56 = vadd.f32 %v1650_v32, %v1538_v41  ;;  %v1763_v0 = vpop.f32.mrf.mxu3  ;;  %v603_v41 = vld [vmem:[#allocation2 + $0x120] sm:$0xff] }
 0x129   : > { %v1764_v19 = vadd.f32 %v1763_v0, %v1651_v56  ;;  %v668_v56 = vld [vmem:[#allocation2 + $0x129] sm:$0xff] }
 0x12a   : > { %v1543_v7 = vpop.f32.mrf.mxu1  ;;  %v1882_v58 = vpop.f32.mrf.mxu0 }
 0x12b   : > { %v3457_v20 = vadd.f32 %v1876_v59, %v1764_v19  ;;  %1700 = vmatmul.f32.gmra.mxu2 %v537_v18 }
 0x12c   : > { %1813 = vmatmul.f32.gmra.mxu3 %v3215_v16 }
 0x12d   : > { %1590 = vmatmul.f32.gmra.mxu1 %v664_v34  ;;  %1929 = vmatmul.f32.gmra.mxu0 %v666_v1  ;;  %v1544_v34 = vadd.f32 %v1543_v7, %v3365_v49  ;;  %v1368_v49 = vld [vmem:[%s3685_s1 + $0x390] sm:$0xff] }
 0x12e   : > { %v1653_v23 = vpop.f32.mrf.mxu2  ;;  %2202 = vmatpush.msra.mxu3 %v1368_v49  ;;  %v542_v49 = vld [vmem:[#allocation2 + $0x12a] sm:$0xff] }
 0x12f   : > { %v1654_v27 = vadd.f32 %v1653_v23, %v1541_v60  ;;  %v1766_v59 = vpop.f32.mrf.mxu3  ;;  %v604_v60 = vld [vmem:[#allocation2 + $0x128] sm:$0xff] }
 0x131   : > { %v1767_v16 = vadd.f32 %v1766_v59, %v1654_v27  ;;  %v669_v59 = vld [vmem:[#allocation2 + $0x139] sm:$0xff] }
 0x132   : > { %v1546_v26 = vpop.f32.mrf.mxu1  ;;  %v1885_v37 = vpop.f32.mrf.mxu0 }
 0x133   : > { %v3470_v43 = vadd.f32 %v1879_v2, %v1767_v16  ;;  %1703 = vmatmul.f32.gmra.mxu2 %v538_v8 }
 0x134   : > { %1816 = vmatmul.f32.gmra.mxu3 %v3233_v25  ;;  %v1352_v25 = vld [vmem:[%s3685_s1 + $0x310] sm:$0xff] }
 0x135   : > { %1593 = vmatmul.f32.gmra.mxu1 %v665_v52  ;;  %1932 = vmatmul.f32.gmra.mxu0 %v667_v39  ;;  %v1547_v52 = vadd.f32 %v1546_v26, %v3383_v12  ;;  %v1384_v12 = vld [vmem:[%s3685_s1 + $0x410] sm:$0xff] }
 0x136   : > { %v1656_v35 = vpop.f32.mrf.mxu2  ;;  %2089 = vmatpush.msra.mxu2 %v1352_v25  ;;  %2315 = vmatpush.msra.mxu0 %v1384_v12  ;;  %v1335_v25 = vld [vmem:[%s3685_s1 + $0x288] sm:$0xff] }
 0x137   : > { %v1657_v46 = vadd.f32 %v1656_v35, %v1544_v34  ;;  %v1769_v63 = vpop.f32.mrf.mxu3  ;;  %v605_v35 = vld [vmem:[#allocation2 + $0x138] sm:$0xff] }
 0x139   : > { %v1770_v15 = vadd.f32 %v1769_v63, %v1657_v46  ;;  %v670_v63 = vld [vmem:[#allocation2 + $0x141] sm:$0xff] }
 0x13a   : > { %v1549_v2 = vpop.f32.mrf.mxu1  ;;  %v1888_v32 = vpop.f32.mrf.mxu0 }
 0x13b   : > { %v3477_v0 = vadd.f32 %v1882_v58, %v1770_v15  ;;  %1706 = vmatmul.f32.gmra.mxu2 %v539_v51  ;;  %v1336_v58 = vld [vmem:[%s3685_s1 + $0x290] sm:$0xff]  ;;  %v1351_v15 = vld [vmem:[%s3685_s1 + $0x308] sm:$0xff] }
 0x13c   : > { %1819 = vmatmul.f32.gmra.mxu3 %v603_v41  ;;  %1976 = vmatpush.msra.mxu1 %v1336_v58  ;;  %v671_v58 = vld [vmem:[#allocation2 + $0x151] sm:$0xff] }
 0x13d   : > { %1596 = vmatmul.f32.gmra.mxu1 %v666_v1  ;;  %1935 = vmatmul.f32.gmra.mxu0 %v668_v56  ;;  %v1550_v1 = vadd.f32 %v1549_v2, %v3395_v6  ;;  %v1367_v6 = vld [vmem:[%s3685_s1 + $0x388] sm:$0xff] }
 0x13e   : > { %v1659_v18 = vpop.f32.mrf.mxu2  ;;  %2090 = vmatpush.msra.mxu2 %v1351_v15  ;;  %2203 = vmatpush.msra.mxu3 %v1367_v6 }
 0x13f   : > { %v1660_v19 = vadd.f32 %v1659_v18, %v1547_v52  ;;  %v1772_v7 = vpop.f32.mrf.mxu3  ;;  %1977 = vmatpush.msra.mxu1 %v1335_v25  ;;  %v606_v18 = vld [vmem:[#allocation2 + $0x140] sm:$0xff] }
 0x141   : > { %v1773_v33 = vadd.f32 %v1772_v7, %v1660_v19 }
 0x142   : > { %v1552_v23 = vpop.f32.mrf.mxu1  ;;  %v1891_v27 = vpop.f32.mrf.mxu0 }
 0x143   : > { %v3489_v48 = vadd.f32 %v1885_v37, %v1773_v33  ;;  %1709 = vmatmul.f32.gmra.mxu2 %v540_v9 }
 0x144   : > { %1822 = vmatmul.f32.gmra.mxu3 %v604_v60 }
 0x145   : > { %1599 = vmatmul.f32.gmra.mxu1 %v667_v39  ;;  %1938 = vmatmul.f32.gmra.mxu0 %v669_v59  ;;  %v1553_v39 = vadd.f32 %v1552_v23, %v3297_v5  ;;  %v1383_v5 = vld [vmem:[%s3685_s1 + $0x408] sm:$0xff] }
 0x146   : > { %v1662_v8 = vpop.f32.mrf.mxu2  ;;  %2316 = vmatpush.msra.mxu0 %v1383_v5 }
 0x147   : > { %v1663_v16 = vadd.f32 %v1662_v8, %v1550_v1  ;;  %v1775_v26 = vpop.f32.mrf.mxu3  ;;  %v607_v8 = vld [vmem:[#allocation2 + $0x150] sm:$0xff] }
 0x149   : > { %v1776_v34 = vadd.f32 %v1775_v26, %v1663_v16 }
 0x14a   : > { %v1555_v46 = vpop.f32.mrf.mxu1  ;;  %v1894_v37 = vpop.f32.mrf.mxu0 }
 0x14b   : > { %v3495_v51 = vadd.f32 %v1888_v32, %v1776_v34  ;;  %1712 = vmatmul.f32.gmra.mxu2 %v541_v50  ;;  %v1556_v33 = vadd.f32 %v1555_v46, %v3305_v10  ;;  %v672_v50 = vld [vmem:[#allocation2 + $0x159] sm:$0xff] }
 0x14c   : > { %1825 = vmatmul.f32.gmra.mxu3 %v605_v35  ;;  %v1350_v10 = vld [vmem:[%s3685_s1 + $0x300] sm:$0xff]  ;;  %v354_v46 = vld [vmem:[%s2807_s8 + $0xf8] sm:$0xff] }
 0x14d   : > { %1602 = vmatmul.f32.gmra.mxu1 %v668_v56  ;;  %1941 = vmatmul.f32.gmra.mxu0 %v670_v63  ;;  %v353_v56 = vld [vmem:[%s2807_s8 + $0xf0] sm:$0xff]  ;;  %388 = vst.msk [vmem:[#allocation2 + $0x189] sm:$0xff] %vm356_vm0, %v354_v46 }
 0x14e   : > { %v1665_v41 = vpop.f32.mrf.mxu2  ;;  %387 = vst.msk [vmem:[#allocation2 + $0x181] sm:$0xff] %vm356_vm0, %v353_v56  ;;  %2091 = vmatpush.msra.mxu2 %v1350_v10  ;;  %v546_v10 = vld [vmem:[#allocation2 + $0x15a] sm:$0xff] }
 0x14f   : > { %v1666_v2 = vadd.f32 %v1665_v41, %v1553_v39  ;;  %v1778_v32 = vpop.f32.mrf.mxu3  ;;  %v1334_v39 = vld [vmem:[%s3685_s1 + $0x280] sm:$0xff] }
 0x150   : > { %v544_v41 = vld [vmem:[#allocation2 + $0x142] sm:$0xff]  ;;  %1978 = vmatpush.msra.mxu1 %v1334_v39 }
 0x151   : > { %v1779_v52 = vadd.f32 %v1778_v32, %v1666_v2  ;;  %v608_v32 = vld [vmem:[#allocation2 + $0x158] sm:$0xff] }
 0x152   : > { %v1558_v19 = vpop.f32.mrf.mxu1  ;;  %v1897_v7 = vpop.f32.mrf.mxu0 }
 0x153   : > { %v3507_v9 = vadd.f32 %v1891_v27, %v1779_v52  ;;  %1715 = vmatmul.f32.gmra.mxu2 %v542_v49  ;;  %v543_v27 = vld [vmem:[#allocation2 + $0x13a] sm:$0xff]  ;;  %v1559_v35 = vadd.f32 %v1558_v19, %v3321_v24  ;;  %v673_v24 = vld [vmem:[#allocation2 + $0x169] sm:$0xff] }
 0x154   : > { %1828 = vmatmul.f32.gmra.mxu3 %v606_v18  ;;  %v1382_v52 = vld [vmem:[%s3685_s1 + $0x400] sm:$0xff] }
 0x155   : > { %1605 = vmatmul.f32.gmra.mxu1 %v669_v59  ;;  %1944 = vmatmul.f32.gmra.mxu0 %v671_v58  ;;  %v1366_v59 = vld [vmem:[%s3685_s1 + $0x380] sm:$0xff] }
 0x156   : > { %v1668_v60 = vpop.f32.mrf.mxu2  ;;  %2204 = vmatpush.msra.mxu3 %v1366_v59  ;;  %2317 = vmatpush.msra.mxu0 %v1382_v52 }
 0x157   : > { %v1669_v23 = vadd.f32 %v1668_v60, %v1556_v33  ;;  %v1781_v12 = vpop.f32.mrf.mxu3  ;;  %v545_v33 = vld [vmem:[#allocation2 + $0x152] sm:$0xff] }
 0x159   : > { %v1782_v1 = vadd.f32 %v1781_v12, %v1669_v23  ;;  %v609_v23 = vld [vmem:[#allocation2 + $0x168] sm:$0xff] }
 0x15a   : > { %v1561_v16 = vpop.f32.mrf.mxu1  ;;  %v1900_v26 = vpop.f32.mrf.mxu0 }
 0x15b   : > { %v3515_v34 = vadd.f32 %v1894_v37, %v1782_v1  ;;  %1718 = vmatmul.f32.gmra.mxu2 %v543_v27  ;;  %v1562_v18 = vadd.f32 %v1561_v16, %v3333_v31  ;;  %v674_v27 = vld [vmem:[#allocation2 + $0x171] sm:$0xff] }
 0x15c   : > { %1831 = vmatmul.f32.gmra.mxu3 %v607_v8 }
 0x15d   : > { %1608 = vmatmul.f32.gmra.mxu1 %v670_v63  ;;  %1947 = vmatmul.f32.gmra.mxu0 %v672_v50 }
 0x15e   : > { %v1671_v15 = vpop.f32.mrf.mxu2 }
 0x15f   : > { %v1672_v37 = vadd.f32 %v1671_v15, %v1559_v35  ;;  %v1784_v6 = vpop.f32.mrf.mxu3  ;;  %v610_v35 = vld [vmem:[#allocation2 + $0x170] sm:$0xff] }
 0x161   : > { %v1785_v2 = vadd.f32 %v1784_v6, %v1672_v37  ;;  %v3538_v37 = vld [vmem:[#allocation2 + $0x181] sm:$0xff] }
 0x162   : > { %v1564_v25 = vpop.f32.mrf.mxu1  ;;  %v1903_v49 = vpop.f32.mrf.mxu0 }
 0x163   : > { %v3529_v63 = vadd.f32 %v1897_v7, %v1785_v2  ;;  %1721 = vmatmul.f32.gmra.mxu2 %v544_v41  ;;  %v1565_v8 = vadd.f32 %v1564_v25, %v3351_v42  ;;  %v547_v41 = vld [vmem:[#allocation2 + $0x16a] sm:$0xff] }
 0x164   : > { %1834 = vmatmul.f32.gmra.mxu3 %v608_v32  ;;  %v611_v32 = vld [vmem:[#allocation2 + $0x180] sm:$0xff] }
 0x165   : > { %1611 = vmatmul.f32.gmra.mxu1 %v671_v58  ;;  %1950 = vmatmul.f32.gmra.mxu0 %v673_v24 }
 0x166   : > { %v1674_v19 = vpop.f32.mrf.mxu2 }
 0x167   : > { %v1675_v5 = vadd.f32 %v1674_v19, %v1562_v18  ;;  %v1787_v56 = vpop.f32.mrf.mxu3  ;;  %v676_v18 = vld [vmem:[#allocation2 + $0x189] sm:$0xff] }
 0x169   : > { %v1788_v60 = vadd.f32 %v1787_v56, %v1675_v5  ;;  %v548_v56 = vld [vmem:[#allocation2 + $0x172] sm:$0xff] }
 0x16a   : > { %v1567_v12 = vpop.f32.mrf.mxu1  ;;  %v1906_v7 = vpop.f32.mrf.mxu0 }
 0x16b   : > { %v3535_v1 = vadd.f32 %v1900_v26, %v1788_v60  ;;  %1724 = vmatmul.f32.gmra.mxu2 %v545_v33  ;;  %v1568_v26 = vadd.f32 %v1567_v12, %v3363_v47  ;;  %v612_v60 = vld [vmem:[#allocation2 + $0x188] sm:$0xff]  ;;  %v709_v12 = vld [vmem:[#allocation2 + $0x1a] sm:$0xff] }
 0x16c   : > { %1837 = vmatmul.f32.gmra.mxu3 %v609_v23 }
 0x16d   : > { %1614 = vmatmul.f32.gmra.mxu1 %v672_v50  ;;  %1953 = vmatmul.f32.gmra.mxu0 %v674_v27 }
 0x16e   : > { %v1677_v31 = vpop.f32.mrf.mxu2 }
 0x16f   : > { %v1678_v58 = vadd.f32 %v1677_v31, %v1565_v8  ;;  %v1790_v16 = vpop.f32.mrf.mxu3  ;;  %v902_v31 = vld [vmem:[#allocation2 + $0x32] sm:$0xff] }
 0x171   : > { %v1791_v59 = vadd.f32 %v1790_v16, %v1678_v58 }
 0x172   : > { %v1570_v46 = vpop.f32.mrf.mxu1  ;;  %v1909_v15 = vpop.f32.mrf.mxu0 }
 0x173   : > { %v3540_v6 = vadd.f32 %v1903_v49, %v1791_v59  ;;  %1727 = vmatmul.f32.gmra.mxu2 %v546_v10  ;;  %v1571_v49 = vadd.f32 %v1570_v46, %v3381_v57  ;;  %v774_v10 = vld [vmem:[#allocation2 + $0x30] sm:$0xff]  ;;  %v710_v46 = vld [vmem:[#allocation2 + $0x22] sm:$0xff] }
 0x174   : > { %1840 = vmatmul.f32.gmra.mxu3 %v610_v35 }
 0x175   : > { %1617 = vmatmul.f32.gmra.mxu1 %v673_v24  ;;  %1956 = vmatmul.f32.gmra.mxu0 %v3538_v37 }
 0x176   : > { %v1680_v42 = vpop.f32.mrf.mxu2 }
 0x177   : > { %v1681_v50 = vadd.f32 %v1680_v42, %v1568_v26  ;;  %v1793_v39 = vpop.f32.mrf.mxu3  ;;  %v903_v42 = vld [vmem:[#allocation2 + $0x3a] sm:$0xff] }
 0x179   : > { %v1794_v2 = vadd.f32 %v1793_v39, %v1681_v50 }
 0x17a   : > { %v1573_v25 = vpop.f32.mrf.mxu1  ;;  %v1912_v52 = vpop.f32.mrf.mxu0 }
 0x17b   : > { %v3544_v19 = vadd.f32 %v1906_v7, %v1794_v2  ;;  %1730 = vmatmul.f32.gmra.mxu2 %v547_v41  ;;  %v1574_v7 = vadd.f32 %v1573_v25, %v3393_v4  ;;  %v775_v2 = vld [vmem:[#allocation2 + $0x38] sm:$0xff] }
 0x17c   : > { %1843 = vmatmul.f32.gmra.mxu3 %v611_v32  ;;  %v839_v25 = vld [vmem:[#allocation2 + $0x39] sm:$0xff] }
 0x17d   : > { %1620 = vmatmul.f32.gmra.mxu1 %v674_v27  ;;  %1959 = vmatmul.f32.gmra.mxu0 %v676_v18 }
 0x17e   : > { %v1683_v47 = vpop.f32.mrf.mxu2 }
 0x17f   : > { %v1684_v24 = vadd.f32 %v1683_v47, %v1571_v49  ;;  %v1796_v5 = vpop.f32.mrf.mxu3  ;;  %v904_v47 = vld [vmem:[#allocation2 + $0x4a] sm:$0xff] }
 0x181   : > { %v1797_v33 = vadd.f32 %v1796_v5, %v1684_v24 }
 0x182   : > { %v1576_v23 = vpop.f32.mrf.mxu1  ;;  %v1915_v8 = vpop.f32.mrf.mxu0 }
 0x183   : > { %v3547_v58 = vadd.f32 %v1909_v15, %v1797_v33  ;;  %1733 = vmatmul.f32.gmra.mxu2 %v548_v56  ;;  %v1577_v15 = vadd.f32 %v1576_v23, %v3314_v17  ;;  %v776_v56 = vld [vmem:[#allocation2 + $0x48] sm:$0xff] }
 0x184   : > { %1846 = vmatmul.f32.gmra.mxu3 %v612_v60  ;;  %v840_v60 = vld [vmem:[#allocation2 + $0x49] sm:$0xff] }
 0x185   : > { %1979 = vmatmul.f32.vlgmr.msra.gmra.mxu1 %v709_v12  ;;  %2318 = vmatmul.f32.vlgmr.msra.gmra.mxu0 %v902_v31 }
 0x186   : > { %v1686_v57 = vpop.f32.mrf.mxu2 }
 0x187   : > { %v1687_v27 = vadd.f32 %v1686_v57, %v1574_v7  ;;  %v1799_v16 = vpop.f32.mrf.mxu3  ;;  %v905_v7 = vld [vmem:[#allocation2 + $0x52] sm:$0xff] }
 0x189   : > { %v1800_v59 = vadd.f32 %v1799_v16, %v1687_v27  ;;  %v777_v16 = vld [vmem:[#allocation2 + $0x50] sm:$0xff] }
 0x18a   : > { %v1579_v35 = vpop.f32.mrf.mxu1  ;;  %v1918_v26 = vpop.f32.mrf.mxu0 }
 0x18b   : > { %v3550_v50 = vadd.f32 %v1912_v52, %v1800_v59  ;;  %2092 = vmatmul.f32.vlgmr.msra.gmra.mxu2 %v774_v10  ;;  %v1580_v52 = vadd.f32 %v1579_v35, %v3329_v28  ;;  %v841_v59 = vld [vmem:[#allocation2 + $0x51] sm:$0xff] }
 0x18c   : > { %2205 = vmatmul.f32.vlgmr.msra.gmra.mxu3 %v3249_v40 }
 0x18d   : > { %1982 = vmatmul.f32.gmra.mxu1 %v710_v46  ;;  %2321 = vmatmul.f32.gmra.mxu0 %v903_v42 }
 0x18e   : > { %v1689_v4 = vpop.f32.mrf.mxu2 }
 0x18f   : > { %v1690_v39 = vadd.f32 %v1689_v4, %v1577_v15  ;;  %v1802_v41 = vpop.f32.mrf.mxu3  ;;  %v906_v15 = vld [vmem:[#allocation2 + $0x62] sm:$0xff] }
 0x191   : > { %v1803_v32 = vadd.f32 %v1802_v41, %v1690_v39  ;;  %v778_v41 = vld [vmem:[#allocation2 + $0x60] sm:$0xff] }
 0x192   : > { %v1582_v18 = vpop.f32.mrf.mxu1  ;;  %v1921_v49 = vpop.f32.mrf.mxu0 }
 0x193   : > { %v3554_v24 = vadd.f32 %v1915_v8, %v1803_v32  ;;  %2095 = vmatmul.f32.gmra.mxu2 %v775_v2  ;;  %v1583_v8 = vadd.f32 %v1582_v18, %v3344_v38  ;;  %v842_v32 = vld [vmem:[#allocation2 + $0x61] sm:$0xff] }
 0x194   : > { %2208 = vmatmul.f32.gmra.mxu3 %v839_v25 }
 0x195   : > { %1985 = vmatmul.f32.gmra.mxu1 %v902_v31  ;;  %2324 = vmatmul.f32.gmra.mxu0 %v904_v47 }
 0x196   : > { %v1692_v40 = vpop.f32.mrf.mxu2 }
 0x197   : > { %v1693_v17 = vadd.f32 %v1692_v40, %v1580_v52  ;;  %v1805_v5 = vpop.f32.mrf.mxu3  ;;  %v907_v52 = vld [vmem:[#allocation2 + $0x6a] sm:$0xff] }
 0x199   : > { %v1806_v33 = vadd.f32 %v1805_v5, %v1693_v17  ;;  %v779_v5 = vld [vmem:[#allocation2 + $0x68] sm:$0xff] }
 0x19a   : > { %v1585_v23 = vpop.f32.mrf.mxu1  ;;  %v1924_v12 = vpop.f32.mrf.mxu0 }
 0x19b   : > { %v3557_v57 = vadd.f32 %v1918_v26, %v1806_v33  ;;  %2098 = vmatmul.f32.gmra.mxu2 %v776_v56  ;;  %v1586_v26 = vadd.f32 %v1585_v23, %v3359_v44  ;;  %v843_v33 = vld [vmem:[#allocation2 + $0x69] sm:$0xff] }
 0x19c   : > { %2211 = vmatmul.f32.gmra.mxu3 %v840_v60 }
 0x19d   : > { %1988 = vmatmul.f32.gmra.mxu1 %v903_v42  ;;  %2327 = vmatmul.f32.gmra.mxu0 %v905_v7 }
 0x19e   : > { %v1695_v28 = vpop.f32.mrf.mxu2 }
 0x19f   : > { %v1696_v31 = vadd.f32 %v1695_v28, %v1583_v8  ;;  %v1808_v27 = vpop.f32.mrf.mxu3  ;;  %v908_v8 = vld [vmem:[#allocation2 + $0x7a] sm:$0xff] }
 0x1a1   : > { %v1809_v10 = vadd.f32 %v1808_v27, %v1696_v31  ;;  %v780_v27 = vld [vmem:[#allocation2 + $0x78] sm:$0xff] }
 0x1a2   : > { %v1588_v35 = vpop.f32.mrf.mxu1  ;;  %v1927_v46 = vpop.f32.mrf.mxu0 }
 0x1a3   : > { %v3560_v4 = vadd.f32 %v1921_v49, %v1809_v10  ;;  %2101 = vmatmul.f32.gmra.mxu2 %v777_v16  ;;  %v1589_v49 = vadd.f32 %v1588_v35, %v3374_v53  ;;  %v844_v10 = vld [vmem:[#allocation2 + $0x79] sm:$0xff] }
 0x1a4   : > { %2214 = vmatmul.f32.gmra.mxu3 %v841_v59 }
 0x1a5   : > { %1991 = vmatmul.f32.gmra.mxu1 %v904_v47  ;;  %2330 = vmatmul.f32.gmra.mxu0 %v906_v15 }
 0x1a6   : > { %v1698_v38 = vpop.f32.mrf.mxu2 }
 0x1a7   : > { %v1699_v42 = vadd.f32 %v1698_v38, %v1586_v26  ;;  %v1811_v39 = vpop.f32.mrf.mxu3  ;;  %v909_v26 = vld [vmem:[#allocation2 + $0x82] sm:$0xff] }
 0x1a9   : > { %v1812_v2 = vadd.f32 %v1811_v39, %v1699_v42  ;;  %v781_v39 = vld [vmem:[#allocation2 + $0x80] sm:$0xff] }
 0x1aa   : > { %v1591_v25 = vpop.f32.mrf.mxu1  ;;  %v1930_v18 = vpop.f32.mrf.mxu0 }
 0x1ab   : > { %v3563_v40 = vadd.f32 %v1924_v12, %v1812_v2  ;;  %2104 = vmatmul.f32.gmra.mxu2 %v778_v41  ;;  %v1592_v12 = vadd.f32 %v1591_v25, %v3389_v61  ;;  %v845_v2 = vld [vmem:[#allocation2 + $0x81] sm:$0xff] }
 0x1ac   : > { %2217 = vmatmul.f32.gmra.mxu3 %v842_v32 }
 0x1ad   : > { %1994 = vmatmul.f32.gmra.mxu1 %v905_v7  ;;  %2333 = vmatmul.f32.gmra.mxu0 %v907_v52 }
 0x1ae   : > { %v1701_v44 = vpop.f32.mrf.mxu2 }
 0x1af   : > { %v1702_v47 = vadd.f32 %v1701_v44, %v1589_v49  ;;  %v1814_v17 = vpop.f32.mrf.mxu3  ;;  %v910_v49 = vld [vmem:[#allocation2 + $0x92] sm:$0xff] }
 0x1b1   : > { %v1815_v56 = vadd.f32 %v1814_v17, %v1702_v47  ;;  %v782_v17 = vld [vmem:[#allocation2 + $0x90] sm:$0xff] }
 0x1b2   : > { %v1594_v60 = vpop.f32.mrf.mxu1  ;;  %v1933_v23 = vpop.f32.mrf.mxu0 }
 0x1b3   : > { %v3566_v28 = vadd.f32 %v1927_v46, %v1815_v56  ;;  %2107 = vmatmul.f32.gmra.mxu2 %v779_v5  ;;  %v1595_v46 = vadd.f32 %v1594_v60, %v3404_v13  ;;  %v846_v56 = vld [vmem:[#allocation2 + $0x91] sm:$0xff] }
 0x1b4   : > { %2220 = vmatmul.f32.gmra.mxu3 %v843_v33 }
 0x1b5   : > { %1997 = vmatmul.f32.gmra.mxu1 %v906_v15  ;;  %2336 = vmatmul.f32.gmra.mxu0 %v908_v8 }
 0x1b6   : > { %v1704_v53 = vpop.f32.mrf.mxu2 }
 0x1b7   : > { %v1705_v7 = vadd.f32 %v1704_v53, %v1592_v12  ;;  %v1817_v31 = vpop.f32.mrf.mxu3  ;;  %v911_v12 = vld [vmem:[#allocation2 + $0x9a] sm:$0xff] }
 0x1b9   : > { %v1818_v16 = vadd.f32 %v1817_v31, %v1705_v7  ;;  %v783_v31 = vld [vmem:[#allocation2 + $0x98] sm:$0xff] }
 0x1ba   : > { %v1597_v59 = vpop.f32.mrf.mxu1  ;;  %v1936_v35 = vpop.f32.mrf.mxu0 }
 0x1bb   : > { %v3569_v38 = vadd.f32 %v1930_v18, %v1818_v16  ;;  %2110 = vmatmul.f32.gmra.mxu2 %v780_v27  ;;  %v1598_v18 = vadd.f32 %v1597_v59, %v3415_v30  ;;  %v847_v16 = vld [vmem:[#allocation2 + $0x99] sm:$0xff] }
 0x1bc   : > { %2223 = vmatmul.f32.gmra.mxu3 %v844_v10 }
 0x1bd   : > { %2000 = vmatmul.f32.gmra.mxu1 %v907_v52  ;;  %2339 = vmatmul.f32.gmra.mxu0 %v909_v26 }
 0x1be   : > { %v1707_v61 = vpop.f32.mrf.mxu2 }
 0x1bf   : > { %v1708_v15 = vadd.f32 %v1707_v61, %v1595_v46  ;;  %v1820_v42 = vpop.f32.mrf.mxu3  ;;  %v912_v46 = vld [vmem:[#allocation2 + $0xaa] sm:$0xff] }
 0x1c1   : > { %v1821_v41 = vadd.f32 %v1820_v42, %v1708_v15  ;;  %v784_v42 = vld [vmem:[#allocation2 + $0xa8] sm:$0xff] }
 0x1c2   : > { %v1600_v32 = vpop.f32.mrf.mxu1  ;;  %v1939_v25 = vpop.f32.mrf.mxu0 }
 0x1c3   : > { %v3572_v44 = vadd.f32 %v1933_v23, %v1821_v41  ;;  %2113 = vmatmul.f32.gmra.mxu2 %v781_v39  ;;  %v1601_v23 = vadd.f32 %v1600_v32, %v3319_v21  ;;  %v848_v41 = vld [vmem:[#allocation2 + $0xa9] sm:$0xff] }
 0x1c4   : > { %2226 = vmatmul.f32.gmra.mxu3 %v845_v2 }
 0x1c5   : > { %2003 = vmatmul.f32.gmra.mxu1 %v908_v8  ;;  %2342 = vmatmul.f32.gmra.mxu0 %v910_v49 }
 0x1c6   : > { %v1710_v13 = vpop.f32.mrf.mxu2 }
 0x1c7   : > { %v1711_v52 = vadd.f32 %v1710_v13, %v1598_v18  ;;  %v1823_v47 = vpop.f32.mrf.mxu3  ;;  %v913_v18 = vld [vmem:[#allocation2 + $0xb2] sm:$0xff] }
 0x1c9   : > { %v1824_v5 = vadd.f32 %v1823_v47, %v1711_v52  ;;  %v785_v47 = vld [vmem:[#allocation2 + $0xb0] sm:$0xff] }
 0x1ca   : > { %v1603_v33 = vpop.f32.mrf.mxu1  ;;  %v1942_v60 = vpop.f32.mrf.mxu0 }
 0x1cb   : > { %v3575_v53 = vadd.f32 %v1936_v35, %v1824_v5  ;;  %2116 = vmatmul.f32.gmra.mxu2 %v782_v17  ;;  %v1604_v35 = vadd.f32 %v1603_v33, %v3331_v29  ;;  %v849_v5 = vld [vmem:[#allocation2 + $0xb1] sm:$0xff] }
 0x1cc   : > { %2229 = vmatmul.f32.gmra.mxu3 %v846_v56 }
 0x1cd   : > { %2006 = vmatmul.f32.gmra.mxu1 %v909_v26  ;;  %2345 = vmatmul.f32.gmra.mxu0 %v911_v12 }
 0x1ce   : > { %v1713_v30 = vpop.f32.mrf.mxu2 }
 0x1cf   : > { %v1714_v8 = vadd.f32 %v1713_v30, %v1601_v23  ;;  %v1826_v7 = vpop.f32.mrf.mxu3  ;;  %v914_v23 = vld [vmem:[#allocation2 + $0xc2] sm:$0xff] }
 0x1d1   : > { %v1827_v27 = vadd.f32 %v1826_v7, %v1714_v8  ;;  %v786_v7 = vld [vmem:[#allocation2 + $0xc0] sm:$0xff] }
 0x1d2   : > { %v1606_v10 = vpop.f32.mrf.mxu1  ;;  %v1945_v59 = vpop.f32.mrf.mxu0 }
 0x1d3   : > { %v3578_v61 = vadd.f32 %v1939_v25, %v1827_v27  ;;  %2119 = vmatmul.f32.gmra.mxu2 %v783_v31  ;;  %v1607_v25 = vadd.f32 %v1606_v10, %v3349_v22  ;;  %v850_v27 = vld [vmem:[#allocation2 + $0xc1] sm:$0xff] }
 0x1d4   : > { %2232 = vmatmul.f32.gmra.mxu3 %v847_v16 }
 0x1d5   : > { %2009 = vmatmul.f32.gmra.mxu1 %v910_v49  ;;  %2348 = vmatmul.f32.gmra.mxu0 %v912_v46 }
 0x1d6   : > { %v1716_v21 = vpop.f32.mrf.mxu2 }
 0x1d7   : > { %v1717_v26 = vadd.f32 %v1716_v21, %v1604_v35  ;;  %v1829_v15 = vpop.f32.mrf.mxu3  ;;  %v915_v35 = vld [vmem:[#allocation2 + $0xca] sm:$0xff] }
 0x1d9   : > { %v1830_v39 = vadd.f32 %v1829_v15, %v1717_v26  ;;  %v787_v15 = vld [vmem:[#allocation2 + $0xc8] sm:$0xff] }
 0x1da   : > { %v1609_v2 = vpop.f32.mrf.mxu1  ;;  %v1948_v32 = vpop.f32.mrf.mxu0 }
 0x1db   : > { %v3581_v13 = vadd.f32 %v1942_v60, %v1830_v39  ;;  %2122 = vmatmul.f32.gmra.mxu2 %v784_v42  ;;  %v1610_v60 = vadd.f32 %v1609_v2, %v3361_v45  ;;  %v851_v39 = vld [vmem:[#allocation2 + $0xc9] sm:$0xff] }
 0x1dc   : > { %2235 = vmatmul.f32.gmra.mxu3 %v848_v41 }
 0x1dd   : > { %2012 = vmatmul.f32.gmra.mxu1 %v911_v12  ;;  %2351 = vmatmul.f32.gmra.mxu0 %v913_v18 }
 0x1de   : > { %v1719_v29 = vpop.f32.mrf.mxu2 }
 0x1df   : > { %v1720_v49 = vadd.f32 %v1719_v29, %v1607_v25  ;;  %v1832_v52 = vpop.f32.mrf.mxu3  ;;  %v916_v25 = vld [vmem:[#allocation2 + $0xda] sm:$0xff] }
 0x1e1   : > { %v1833_v17 = vadd.f32 %v1832_v52, %v1720_v49  ;;  %v788_v52 = vld [vmem:[#allocation2 + $0xd8] sm:$0xff] }
 0x1e2   : > { %v1612_v56 = vpop.f32.mrf.mxu1  ;;  %v1951_v33 = vpop.f32.mrf.mxu0 }
 0x1e3   : > { %v3584_v30 = vadd.f32 %v1945_v59, %v1833_v17  ;;  %2125 = vmatmul.f32.gmra.mxu2 %v785_v47  ;;  %v1613_v59 = vadd.f32 %v1612_v56, %v3376_v54  ;;  %v852_v17 = vld [vmem:[#allocation2 + $0xd9] sm:$0xff] }
 0x1e4   : > { %2238 = vmatmul.f32.gmra.mxu3 %v849_v5 }
 0x1e5   : > { %2015 = vmatmul.f32.gmra.mxu1 %v912_v46  ;;  %2354 = vmatmul.f32.gmra.mxu0 %v914_v23 }
 0x1e6   : > { %v1722_v22 = vpop.f32.mrf.mxu2 }
 0x1e7   : > { %v1723_v12 = vadd.f32 %v1722_v22, %v1610_v60  ;;  %v1835_v8 = vpop.f32.mrf.mxu3  ;;  %v917_v60 = vld [vmem:[#allocation2 + $0xe2] sm:$0xff] }
 0x1e9   : > { %v1836_v31 = vadd.f32 %v1835_v8, %v1723_v12  ;;  %v789_v8 = vld [vmem:[#allocation2 + $0xe0] sm:$0xff] }
 0x1ea   : > { %v1615_v16 = vpop.f32.mrf.mxu1  ;;  %v1954_v10 = vpop.f32.mrf.mxu0 }
 0x1eb   : > { %v3587_v21 = vadd.f32 %v1948_v32, %v1836_v31  ;;  %2128 = vmatmul.f32.gmra.mxu2 %v786_v7  ;;  %v1616_v32 = vadd.f32 %v1615_v16, %v3391_v62  ;;  %v853_v31 = vld [vmem:[#allocation2 + $0xe1] sm:$0xff] }
 0x1ec   : > { %2241 = vmatmul.f32.gmra.mxu3 %v850_v27 }
 0x1ed   : > { %2018 = vmatmul.f32.gmra.mxu1 %v913_v18  ;;  %2357 = vmatmul.f32.gmra.mxu0 %v915_v35 }
 0x1ee   : > { %v1725_v45 = vpop.f32.mrf.mxu2 }
 0x1ef   : > { %v1726_v46 = vadd.f32 %v1725_v45, %v1613_v59  ;;  %v1838_v26 = vpop.f32.mrf.mxu3  ;;  %v918_v59 = vld [vmem:[#allocation2 + $0xf2] sm:$0xff] }
 0x1f1   : > { %v1839_v42 = vadd.f32 %v1838_v26, %v1726_v46  ;;  %v790_v26 = vld [vmem:[#allocation2 + $0xf0] sm:$0xff] }
 0x1f2   : > { %v1618_v41 = vpop.f32.mrf.mxu1  ;;  %v1957_v2 = vpop.f32.mrf.mxu0 }
 0x1f3   : > { %v3590_v29 = vadd.f32 %v1951_v33, %v1839_v42  ;;  %2131 = vmatmul.f32.gmra.mxu2 %v787_v15  ;;  %v1619_v33 = vadd.f32 %v1618_v41, %v3406_v14  ;;  %v854_v42 = vld [vmem:[#allocation2 + $0xf1] sm:$0xff] }
 0x1f4   : > { %2244 = vmatmul.f32.gmra.mxu3 %v851_v39 }
 0x1f5   : > { %2021 = vmatmul.f32.gmra.mxu1 %v914_v23  ;;  %2360 = vmatmul.f32.gmra.mxu0 %v916_v25 }
 0x1f6   : > { %v1728_v54 = vpop.f32.mrf.mxu2 }
 0x1f7   : > { %v1729_v18 = vadd.f32 %v1728_v54, %v1616_v32  ;;  %v1841_v49 = vpop.f32.mrf.mxu3  ;;  %v919_v32 = vld [vmem:[#allocation2 + $0xfa] sm:$0xff] }
 0x1f9   : > { %v1842_v47 = vadd.f32 %v1841_v49, %v1729_v18  ;;  %v791_v49 = vld [vmem:[#allocation2 + $0xf8] sm:$0xff] }
 0x1fa   : > { %v1621_v5 = vpop.f32.mrf.mxu1  ;;  %v1960_v56 = vpop.f32.mrf.mxu0 }
 0x1fb   : > { %v3593_v22 = vadd.f32 %v1954_v10, %v1842_v47  ;;  %2134 = vmatmul.f32.gmra.mxu2 %v788_v52  ;;  %v1622_v10 = vadd.f32 %v1621_v5, %v3417_v36  ;;  %v855_v47 = vld [vmem:[#allocation2 + $0xf9] sm:$0xff] }
 0x1fc   : > { %2247 = vmatmul.f32.gmra.mxu3 %v852_v17 }
 0x1fd   : > { %2024 = vmatmul.f32.gmra.mxu1 %v915_v35  ;;  %2363 = vmatmul.f32.gmra.mxu0 %v917_v60 }
 0x1fe   : > { %v1731_v62 = vpop.f32.mrf.mxu2 }
 0x1ff   : > { %v1732_v23 = vadd.f32 %v1731_v62, %v1619_v33  ;;  %v1844_v12 = vpop.f32.mrf.mxu3 }
 0x201   : > { %v1845_v7 = vadd.f32 %v1844_v12, %v1732_v23  ;;  %v792_v12 = vld [vmem:[#allocation2 + $0x108] sm:$0xff] }
 0x202   : > { %v1980_v27 = vpop.f32.mrf.mxu1  ;;  %v2319_v16 = vpop.f32.mrf.mxu0 }
 0x203   : > { %v3596_v45 = vadd.f32 %v1957_v2, %v1845_v7  ;;  %2137 = vmatmul.f32.gmra.mxu2 %v789_v8  ;;  %v1981_v2 = vadd.f32 %v1980_v27, %v3430_v3  ;;  %v856_v7 = vld [vmem:[#allocation2 + $0x109] sm:$0xff] }
 0x204   : > { %2250 = vmatmul.f32.gmra.mxu3 %v853_v31 }
 0x205   : > { %2027 = vmatmul.f32.gmra.mxu1 %v916_v25  ;;  %2366 = vmatmul.f32.gmra.mxu0 %v918_v59 }
 0x206   : > { %v1734_v14 = vpop.f32.mrf.mxu2 }
 0x207   : > { %v1735_v35 = vadd.f32 %v1734_v14, %v1622_v10  ;;  %v1847_v46 = vpop.f32.mrf.mxu3  ;;  %v921_v10 = vld [vmem:[#allocation2 + $0x112] sm:$0xff] }
 0x209   : > { %v1848_v15 = vadd.f32 %v1847_v46, %v1735_v35 }
 0x20a   : > { %v1983_v39 = vpop.f32.mrf.mxu1  ;;  %v2322_v41 = vpop.f32.mrf.mxu0 }
 0x20b   : > { %v3599_v54 = vadd.f32 %v1960_v56, %v1848_v15  ;;  %2140 = vmatmul.f32.gmra.mxu2 %v790_v26  ;;  %v920_v56 = vld [vmem:[#allocation2 + $0x10a] sm:$0xff]  ;;  %v1984_v3 = vadd.f32 %v1983_v39, %v3437_v11 }
 0x20c   : > { %2253 = vmatmul.f32.gmra.mxu3 %v854_v42  ;;  %v793_v39 = vld [vmem:[#allocation2 + $0x110] sm:$0xff] }
 0x20d   : > { %2030 = vmatmul.f32.gmra.mxu1 %v917_v60  ;;  %2369 = vmatmul.f32.gmra.mxu0 %v919_v32 }
 0x20e   : > { %v2093_v36 = vpop.f32.mrf.mxu2 }
 0x20f   : > { %v2094_v25 = vadd.f32 %v2093_v36, %v1981_v2  ;;  %v2206_v18 = vpop.f32.mrf.mxu3  ;;  %v857_v36 = vld [vmem:[#allocation2 + $0x111] sm:$0xff] }
 0x211   : > { %v2207_v52 = vadd.f32 %v2206_v18, %v2094_v25  ;;  %v922_v18 = vld [vmem:[#allocation2 + $0x122] sm:$0xff] }
 0x212   : > { %v1986_v17 = vpop.f32.mrf.mxu1  ;;  %v2325_v5 = vpop.f32.mrf.mxu0 }
 0x213   : > { %v2320_v33 = vadd.f32 %v2319_v16, %v2207_v52  ;;  %2143 = vmatmul.f32.gmra.mxu2 %v791_v49  ;;  %v1987_v16 = vadd.f32 %v1986_v17, %v3450_v55 }
 0x214   : > { %2256 = vmatmul.f32.gmra.mxu3 %v855_v47 }
 0x215   : > { %2415 = vst [vmem:[%s3607_s26] sm:$0xff] %v2320_v33  ;;  %2033 = vmatmul.f32.gmra.mxu1 %v918_v59  ;;  %2372 = vmatmul.f32.gmra.mxu0 %v920_v56  ;;  %v2485_v35 = vmul.f32 %v2320_v33, %v2320_v33 }
 0x216   : > { %v2096_v60 = vpop.f32.mrf.mxu2 }
 0x217   : > { %v2097_v62 = vadd.f32 %v2096_v60, %v1984_v3  ;;  %v2209_v23 = vpop.f32.mrf.mxu3  ;;  %v794_v60 = vld [vmem:[#allocation2 + $0x120] sm:$0xff] }
 0x219   : > { %v2210_v8 = vadd.f32 %v2209_v23, %v2097_v62  ;;  %v858_v23 = vld [vmem:[#allocation2 + $0x121] sm:$0xff] }
 0x21a   : > { %v1989_v31 = vpop.f32.mrf.mxu1  ;;  %v2328_v27 = vpop.f32.mrf.mxu0 }
 0x21b   : > { %v2323_v14 = vadd.f32 %v2322_v41, %v2210_v8  ;;  %2146 = vmatmul.f32.gmra.mxu2 %v792_v12  ;;  %v1990_v55 = vadd.f32 %v1989_v31, %v3457_v20 }
 0x21c   : > { %2259 = vmatmul.f32.gmra.mxu3 %v856_v7 }
 0x21d   : > { %2416 = vst [vmem:[%s3607_s26 + $0x8] sm:$0xff] %v2323_v14  ;;  %v2447_v11 = vadd.f32 %v2323_v14, %v2320_v33  ;;  %v2486_v59 = vmul.f32 %v2323_v14, %v2323_v14  ;;  %2036 = vmatmul.f32.gmra.mxu1 %v919_v32  ;;  %2375 = vmatmul.f32.gmra.mxu0 %v921_v10 }
 0x21e   : > { %v2099_v46 = vpop.f32.mrf.mxu2 }
 0x21f   : > { %v2517_v26 = vadd.f32 %v2486_v59, %v2485_v35  ;;  %v2100_v15 = vadd.f32 %v2099_v46, %v1987_v16  ;;  %v2212_v42 = vpop.f32.mrf.mxu3  ;;  %v795_v59 = vld [vmem:[#allocation2 + $0x128] sm:$0xff] }
 0x221   : > { %v2213_v2 = vadd.f32 %v2212_v42, %v2100_v15 }
 0x222   : > { %v1992_v25 = vpop.f32.mrf.mxu1  ;;  %v2331_v41 = vpop.f32.mrf.mxu0 }
 0x223   : > { %v2326_v49 = vadd.f32 %v2325_v5, %v2213_v2  ;;  %2149 = vmatmul.f32.gmra.mxu2 %v793_v39  ;;  %v923_v5 = vld [vmem:[#allocation2 + $0x12a] sm:$0xff]  ;;  %v1993_v20 = vadd.f32 %v1992_v25, %v3470_v43 }
 0x224   : > { %2262 = vmatmul.f32.gmra.mxu3 %v857_v36 }
 0x225   : > { %2417 = vst [vmem:[%s3607_s26 + $0x10] sm:$0xff] %v2326_v49  ;;  %v2448_v52 = vadd.f32 %v2447_v11, %v2326_v49  ;;  %v2487_v32 = vmul.f32 %v2326_v49, %v2326_v49  ;;  %2039 = vmatmul.f32.gmra.mxu1 %v920_v56  ;;  %2378 = vmatmul.f32.gmra.mxu0 %v922_v18 }
 0x226   : > { %v2102_v47 = vpop.f32.mrf.mxu2 }
 0x227   : > { %v2518_v17 = vadd.f32 %v2517_v26, %v2487_v32  ;;  %v2103_v33 = vadd.f32 %v2102_v47, %v1990_v55  ;;  %v2215_v3 = vpop.f32.mrf.mxu3  ;;  %v859_v26 = vld [vmem:[#allocation2 + $0x129] sm:$0xff]  ;;  %v860_v47 = vld [vmem:[#allocation2 + $0x139] sm:$0xff] }
 0x229   : > { %v2216_v62 = vadd.f32 %v2215_v3, %v2103_v33 }
 0x22a   : > { %v1995_v12 = vpop.f32.mrf.mxu1  ;;  %v2334_v8 = vpop.f32.mrf.mxu0 }
 0x22b   : > { %v2329_v7 = vadd.f32 %v2328_v27, %v2216_v62  ;;  %2152 = vmatmul.f32.gmra.mxu2 %v794_v60  ;;  %v924_v27 = vld [vmem:[#allocation2 + $0x13a] sm:$0xff]  ;;  %v1996_v43 = vadd.f32 %v1995_v12, %v3477_v0 }
 0x22c   : > { %2265 = vmatmul.f32.gmra.mxu3 %v858_v23 }
 0x22d   : > { %2418 = vst [vmem:[%s3607_s26 + $0x18] sm:$0xff] %v2329_v7  ;;  %v2449_v31 = vadd.f32 %v2448_v52, %v2329_v7  ;;  %v2488_v56 = vmul.f32 %v2329_v7, %v2329_v7  ;;  %2042 = vmatmul.f32.gmra.mxu1 %v921_v10  ;;  %2381 = vmatmul.f32.gmra.mxu0 %v923_v5  ;;  %v796_v52 = vld [vmem:[#allocation2 + $0x138] sm:$0xff] }
 0x22e   : > { %v2105_v14 = vpop.f32.mrf.mxu2 }
 0x22f   : > { %v2519_v16 = vadd.f32 %v2518_v17, %v2488_v56  ;;  %v2106_v35 = vadd.f32 %v2105_v14, %v1993_v20  ;;  %v2218_v11 = vpop.f32.mrf.mxu3  ;;  %v797_v20 = vld [vmem:[#allocation2 + $0x140] sm:$0xff] }
 0x230   : > { %v861_v56 = vld [vmem:[#allocation2 + $0x141] sm:$0xff] }
 0x231   : > { %v2219_v46 = vadd.f32 %v2218_v11, %v2106_v35 }
 0x232   : > { %v1998_v15 = vpop.f32.mrf.mxu1  ;;  %v2337_v42 = vpop.f32.mrf.mxu0 }
 0x233   : > { %v2332_v39 = vadd.f32 %v2331_v41, %v2219_v46  ;;  %2155 = vmatmul.f32.gmra.mxu2 %v795_v59  ;;  %v925_v41 = vld [vmem:[#allocation2 + $0x142] sm:$0xff]  ;;  %v1999_v0 = vadd.f32 %v1998_v15, %v3489_v48 }
 0x234   : > { %2268 = vmatmul.f32.gmra.mxu3 %v859_v26 }
 0x235   : > { %2419 = vst [vmem:[%s3607_s26 + $0x20] sm:$0xff] %v2332_v39  ;;  %v2450_v2 = vadd.f32 %v2449_v31, %v2332_v39  ;;  %v2489_v10 = vmul.f32 %v2332_v39, %v2332_v39  ;;  %2045 = vmatmul.f32.gmra.mxu1 %v922_v18  ;;  %2384 = vmatmul.f32.gmra.mxu0 %v924_v27  ;;  %v798_v39 = vld [vmem:[#allocation2 + $0x150] sm:$0xff] }
 0x236   : > { %v2108_v36 = vpop.f32.mrf.mxu2 }
 0x237   : > { %v2520_v25 = vadd.f32 %v2519_v16, %v2489_v10  ;;  %v2109_v49 = vadd.f32 %v2108_v36, %v1996_v43  ;;  %v2221_v55 = vpop.f32.mrf.mxu3 }
 0x239   : > { %v2222_v32 = vadd.f32 %v2221_v55, %v2109_v49 }
 0x23a   : > { %v2001_v17 = vpop.f32.mrf.mxu1  ;;  %v2340_v33 = vpop.f32.mrf.mxu0 }
 0x23b   : > { %v2335_v3 = vadd.f32 %v2334_v8, %v2222_v32  ;;  %2158 = vmatmul.f32.gmra.mxu2 %v796_v52  ;;  %v926_v8 = vld [vmem:[#allocation2 + $0x152] sm:$0xff]  ;;  %v2002_v48 = vadd.f32 %v2001_v17, %v3495_v51 }
 0x23c   : > { %2271 = vmatmul.f32.gmra.mxu3 %v860_v47  ;;  %v799_v17 = vld [vmem:[#allocation2 + $0x158] sm:$0xff] }
 0x23d   : > { %2420 = vst [vmem:[%s3607_s26 + $0x28] sm:$0xff] %v2335_v3  ;;  %v2451_v60 = vadd.f32 %v2450_v2, %v2335_v3  ;;  %v2490_v18 = vmul.f32 %v2335_v3, %v2335_v3  ;;  %2048 = vmatmul.f32.gmra.mxu1 %v923_v5  ;;  %2387 = vmatmul.f32.gmra.mxu0 %v925_v41  ;;  %v862_v2 = vld [vmem:[#allocation2 + $0x151] sm:$0xff] }
 0x23e   : > { %v2111_v62 = vpop.f32.mrf.mxu2 }
 0x23f   : > { %v2521_v23 = vadd.f32 %v2520_v25, %v2490_v18  ;;  %v2112_v12 = vadd.f32 %v2111_v62, %v1999_v0  ;;  %v2224_v7 = vpop.f32.mrf.mxu3  ;;  %v863_v0 = vld [vmem:[#allocation2 + $0x159] sm:$0xff] }
 0x241   : > { %v2225_v31 = vadd.f32 %v2224_v7, %v2112_v12 }
 0x242   : > { %v2004_v14 = vpop.f32.mrf.mxu1  ;;  %v2343_v16 = vpop.f32.mrf.mxu0 }
 0x243   : > { %v2338_v35 = vadd.f32 %v2337_v42, %v2225_v31  ;;  %2161 = vmatmul.f32.gmra.mxu2 %v797_v20  ;;  %v927_v42 = vld [vmem:[#allocation2 + $0x15a] sm:$0xff]  ;;  %v2005_v51 = vadd.f32 %v2004_v14, %v3507_v9 }
 0x244   : > { %2274 = vmatmul.f32.gmra.mxu3 %v861_v56  ;;  %v800_v56 = vld [vmem:[#allocation2 + $0x168] sm:$0xff] }
 0x245   : > { %2421 = vst [vmem:[%s3607_s26 + $0x30] sm:$0xff] %v2338_v35  ;;  %v2452_v11 = vadd.f32 %v2451_v60, %v2338_v35  ;;  %v2491_v5 = vmul.f32 %v2338_v35, %v2338_v35  ;;  %2051 = vmatmul.f32.gmra.mxu1 %v924_v27  ;;  %2390 = vmatmul.f32.gmra.mxu0 %v926_v8  ;;  %v864_v35 = vld [vmem:[#allocation2 + $0x169] sm:$0xff] }
 0x246   : > { %v2114_v59 = vpop.f32.mrf.mxu2 }
 0x247   : > { %v2522_v46 = vadd.f32 %v2521_v23, %v2491_v5  ;;  %v2115_v26 = vadd.f32 %v2114_v59, %v2002_v48  ;;  %v2227_v15 = vpop.f32.mrf.mxu3 }
 0x249   : > { %v2228_v43 = vadd.f32 %v2227_v15, %v2115_v26 }
 0x24a   : > { %v2007_v10 = vpop.f32.mrf.mxu1  ;;  %v2346_v36 = vpop.f32.mrf.mxu0 }
 0x24b   : > { %v2341_v25 = vadd.f32 %v2340_v33, %v2228_v43  ;;  %2164 = vmatmul.f32.gmra.mxu2 %v798_v39  ;;  %v928_v33 = vld [vmem:[#allocation2 + $0x16a] sm:$0xff]  ;;  %v2008_v9 = vadd.f32 %v2007_v10, %v3515_v34 }
 0x24c   : > { %2277 = vmatmul.f32.gmra.mxu3 %v862_v2  ;;  %v801_v43 = vld [vmem:[#allocation2 + $0x170] sm:$0xff] }
 0x24d   : > { %2422 = vst [vmem:[%s3607_s26 + $0x38] sm:$0xff] %v2341_v25  ;;  %v2453_v49 = vadd.f32 %v2452_v11, %v2341_v25  ;;  %v2492_v27 = vmul.f32 %v2341_v25, %v2341_v25  ;;  %2054 = vmatmul.f32.gmra.mxu1 %v925_v41  ;;  %2393 = vmatmul.f32.gmra.mxu0 %v927_v42  ;;  %v865_v10 = vld [vmem:[#allocation2 + $0x171] sm:$0xff] }
 0x24e   : > { %v2117_v55 = vpop.f32.mrf.mxu2 }
 0x24f   : > { %v2523_v52 = vadd.f32 %v2522_v46, %v2492_v27  ;;  %v2118_v32 = vadd.f32 %v2117_v55, %v2005_v51  ;;  %v2230_v47 = vpop.f32.mrf.mxu3 }
 0x251   : > { %v2231_v3 = vadd.f32 %v2230_v47, %v2118_v32 }
 0x252   : > { %v2010_v60 = vpop.f32.mrf.mxu1  ;;  %v2349_v18 = vpop.f32.mrf.mxu0 }
 0x253   : > { %v2344_v62 = vadd.f32 %v2343_v16, %v2231_v3  ;;  %2167 = vmatmul.f32.gmra.mxu2 %v799_v17  ;;  %v929_v16 = vld [vmem:[#allocation2 + $0x172] sm:$0xff]  ;;  %v2011_v34 = vadd.f32 %v2010_v60, %v3529_v63  ;;  %v802_v17 = vld [vmem:[#allocation2 + $0x180] sm:$0xff] }
 0x254   : > { %2280 = vmatmul.f32.gmra.mxu3 %v863_v0 }
 0x255   : > { %2423 = vst [vmem:[%s3607_s26 + $0x40] sm:$0xff] %v2344_v62  ;;  %v2454_v23 = vadd.f32 %v2453_v49, %v2344_v62  ;;  %v2493_v41 = vmul.f32 %v2344_v62, %v2344_v62  ;;  %2057 = vmatmul.f32.gmra.mxu1 %v926_v8  ;;  %2396 = vmatmul.f32.gmra.mxu0 %v928_v33  ;;  %v931_v62 = vld [vmem:[#allocation2 + $0x18a] sm:$0xff] }
 0x256   : > { %v2120_v12 = vpop.f32.mrf.mxu2 }
 0x257   : > { %v2524_v7 = vadd.f32 %v2523_v52, %v2493_v41  ;;  %v2121_v20 = vadd.f32 %v2120_v12, %v2008_v9  ;;  %v2233_v31 = vpop.f32.mrf.mxu3 }
 0x259   : > { %v2234_v14 = vadd.f32 %v2233_v31, %v2121_v20  ;;  %v803_v20 = vld [vmem:[#allocation2 + $0x188] sm:$0xff] }
 0x25a   : > { %v2013_v48 = vpop.f32.mrf.mxu1  ;;  %v2352_v11 = vpop.f32.mrf.mxu0 }
 0x25b   : > { %v2347_v5 = vadd.f32 %v2346_v36, %v2234_v14  ;;  %2170 = vmatmul.f32.gmra.mxu2 %v800_v56  ;;  %v930_v36 = vld [vmem:[#allocation2 + $0x182] sm:$0xff]  ;;  %v2014_v63 = vadd.f32 %v2013_v48, %v3535_v1  ;;  %v932_v48 = vld [vmem:[#allocation2 + $0x19a] sm:$0xff] }
 0x25c   : > { %2283 = vmatmul.f32.gmra.mxu3 %v864_v35  ;;  %v867_v56 = vld [vmem:[#allocation2 + $0x189] sm:$0xff] }
 0x25d   : > { %2424 = vst [vmem:[%s3607_s26 + $0x48] sm:$0xff] %v2347_v5  ;;  %v2455_v59 = vadd.f32 %v2454_v23, %v2347_v5  ;;  %v2494_v8 = vmul.f32 %v2347_v5, %v2347_v5  ;;  %2060 = vmatmul.f32.gmra.mxu1 %v927_v42  ;;  %2399 = vmatmul.f32.gmra.mxu0 %v929_v16 }
 0x25e   : > { %v2123_v46 = vpop.f32.mrf.mxu2 }
 0x25f   : > { %v2525_v26 = vadd.f32 %v2524_v7, %v2494_v8  ;;  %v2124_v15 = vadd.f32 %v2123_v46, %v2011_v34  ;;  %v2236_v39 = vpop.f32.mrf.mxu3 }
 0x261   : > { %v2237_v2 = vadd.f32 %v2236_v39, %v2124_v15 }
 0x262   : > { %v2016_v25 = vpop.f32.mrf.mxu1  ;;  %v2355_v51 = vpop.f32.mrf.mxu0 }
 0x263   : > { %v2350_v49 = vadd.f32 %v2349_v18, %v2237_v2  ;;  %2173 = vmatmul.f32.gmra.mxu2 %v801_v43  ;;  %v2017_v1 = vadd.f32 %v2016_v25, %v3540_v6  ;;  %v933_v43 = vld [vmem:[#allocation2 + $0x1a2] sm:$0xff] }
 0x264   : > { %2286 = vmatmul.f32.gmra.mxu3 %v865_v10  ;;  %v2730_v10 = vld [vmem:[#allocation2] sm:$0xff] }
 0x265   : > { %2425 = vst [vmem:[%s3607_s26 + $0x50] sm:$0xff] %v2350_v49  ;;  %v2456_v27 = vadd.f32 %v2455_v59, %v2350_v49  ;;  %v2495_v42 = vmul.f32 %v2350_v49, %v2350_v49  ;;  %2063 = vmatmul.f32.gmra.mxu1 %v928_v33  ;;  %2402 = vmatmul.f32.gmra.mxu0 %v930_v36 }
 0x266   : > { %v2126_v55 = vpop.f32.mrf.mxu2 }
 0x267   : > { %v2526_v52 = vadd.f32 %v2525_v26, %v2495_v42  ;;  %v2127_v32 = vadd.f32 %v2126_v55, %v2014_v63  ;;  %v2239_v47 = vpop.f32.mrf.mxu3  ;;  %v868_v26 = vld [vmem:[#allocation2 + $0x199] sm:$0xff]  ;;  %v869_v55 = vld [vmem:[#allocation2 + $0x1a1] sm:$0xff] }
 0x269   : > { %v2240_v3 = vadd.f32 %v2239_v47, %v2127_v32 }
 0x26a   : > { %v2019_v0 = vpop.f32.mrf.mxu1  ;;  %v2358_v60 = vpop.f32.mrf.mxu0 }
 0x26b   : > { %v2353_v18 = vadd.f32 %v2352_v11, %v2240_v3  ;;  %2176 = vmatmul.f32.gmra.mxu2 %v802_v17 }
 0x26c   : > { %2289 = vmatmul.f32.gmra.mxu3 %v3538_v37  ;;  %v2020_v37 = vadd.f32 %v2019_v0, %v3544_v19 }
 0x26d   : > { %2426 = vst [vmem:[%s3607_s26 + $0x58] sm:$0xff] %v2353_v18  ;;  %v2457_v9 = vadd.f32 %v2456_v27, %v2353_v18  ;;  %v2496_v23 = vmul.f32 %v2353_v18, %v2353_v18  ;;  %2066 = vmatmul.f32.gmra.mxu1 %v929_v16  ;;  %2405 = vmatmul.f32.gmra.mxu0 %v931_v62 }
 0x26e   : > { %v2129_v33 = vpop.f32.mrf.mxu2 }
 0x26f   : > { %v2527_v41 = vadd.f32 %v2526_v52, %v2496_v23  ;;  %v2130_v12 = vadd.f32 %v2129_v33, %v2017_v1  ;;  %v2242_v7 = vpop.f32.mrf.mxu3 }
 0x271   : > { %v2243_v31 = vadd.f32 %v2242_v7, %v2130_v12 }
 0x272   : > { %v2022_v14 = vpop.f32.mrf.mxu1  ;;  %v2361_v35 = vpop.f32.mrf.mxu0 }
 0x273   : > { %v2356_v11 = vadd.f32 %v2355_v51, %v2243_v31  ;;  %2179 = vmatmul.f32.gmra.mxu2 %v803_v20  ;;  %v2023_v19 = vadd.f32 %v2022_v14, %v3547_v58 }
 0x274   : > { %2292 = vmatmul.f32.gmra.mxu3 %v867_v56 }
 0x275   : > { %2427 = vst [vmem:[%s3607_s26 + $0x60] sm:$0xff] %v2356_v11  ;;  %v2458_v6 = vadd.f32 %v2457_v9, %v2356_v11  ;;  %v2497_v16 = vmul.f32 %v2356_v11, %v2356_v11  ;;  %2069 = vmatmul.f32.gmra.mxu1 %v930_v36  ;;  %2408 = vmatmul.f32.gmra.mxu0 %v932_v48 }
 0x276   : > { %v2132_v5 = vpop.f32.mrf.mxu2 }
 0x277   : > { %v2528_v34 = vadd.f32 %v2527_v41, %v2497_v16  ;;  %v2133_v59 = vadd.f32 %v2132_v5, %v2020_v37  ;;  %v2245_v8 = vpop.f32.mrf.mxu3 }
 0x279   : > { %v2246_v46 = vadd.f32 %v2245_v8, %v2133_v59 }
 0x27a   : > { %v2025_v15 = vpop.f32.mrf.mxu1  ;;  %v2364_v39 = vpop.f32.mrf.mxu0 }
 0x27b   : > { %v2359_v2 = vadd.f32 %v2358_v60, %v2246_v46  ;;  %2182 = vmatmul.f32.gmra.mxu2 %v2730_v10  ;;  %v2026_v58 = vadd.f32 %v2025_v15, %v3550_v50 }
 0x27c   : > { %2295 = vmatmul.f32.gmra.mxu3 %v868_v26 }
 0x27d   : > { %2428 = vst [vmem:[%s3607_s26 + $0x68] sm:$0xff] %v2359_v2  ;;  %v2459_v25 = vadd.f32 %v2458_v6, %v2359_v2  ;;  %v2498_v51 = vmul.f32 %v2359_v2, %v2359_v2  ;;  %2072 = vmatmul.f32.gmra.mxu1 %v931_v62  ;;  %2411 = vmatmul.f32.gmra.mxu0 %v933_v43 }
 0x27e   : > { %v2135_v36 = vpop.f32.mrf.mxu2 }
 0x27f   : > { %v2529_v49 = vadd.f32 %v2528_v34, %v2498_v51  ;;  %v2136_v63 = vadd.f32 %v2135_v36, %v2023_v19  ;;  %v2248_v27 = vpop.f32.mrf.mxu3 }
 0x281   : > { %v2249_v42 = vadd.f32 %v2248_v27, %v2136_v63 }
 0x282   : > { %v2028_v52 = vpop.f32.mrf.mxu1  ;;  %v2367_v32 = vpop.f32.mrf.mxu0 }
 0x283   : > { %v2362_v47 = vadd.f32 %v2361_v35, %v2249_v42  ;;  %2185 = vmatmul.f32.gmra.mxu2 %v2730_v10  ;;  %v2029_v41 = vadd.f32 %v2028_v52, %v3554_v24 }
 0x284   : > { %2298 = vmatmul.f32.gmra.mxu3 %v869_v55 }
 0x285   : > { %2429 = vst [vmem:[%s3607_s26 + $0x70] sm:$0xff] %v2362_v47  ;;  %v2460_v17 = vadd.f32 %v2459_v25, %v2362_v47  ;;  %v2499_v3 = vmul.f32 %v2362_v47, %v2362_v47 }
 0x286   : > { %v2138_v0 = vpop.f32.mrf.mxu2 }
 0x287   : > { %v2530_v60 = vadd.f32 %v2529_v49, %v2499_v3  ;;  %v2139_v62 = vadd.f32 %v2138_v0, %v2026_v58  ;;  %v2251_v18 = vpop.f32.mrf.mxu3 }
 0x289   : > { %v2252_v1 = vadd.f32 %v2251_v18, %v2139_v62 }
 0x28a   : > { %v2031_v9 = vpop.f32.mrf.mxu1  ;;  %v2370_v23 = vpop.f32.mrf.mxu0 }
 0x28b   : > { %v2365_v33 = vadd.f32 %v2364_v39, %v2252_v1  ;;  %v2032_v37 = vadd.f32 %v2031_v9, %v3557_v57 }
 0x28d   : > { %2430 = vst [vmem:[%s3607_s26 + $0x78] sm:$0xff] %v2365_v33  ;;  %v2461_v12 = vadd.f32 %v2460_v17, %v2365_v33  ;;  %v2500_v7 = vmul.f32 %v2365_v33, %v2365_v33 }
 0x28e   : > { %v2141_v20 = vpop.f32.mrf.mxu2 }
 0x28f   : > { %v2531_v31 = vadd.f32 %v2530_v60, %v2500_v7  ;;  %v2142_v50 = vadd.f32 %v2141_v20, %v2029_v41  ;;  %v2254_v56 = vpop.f32.mrf.mxu3 }
 0x291   : > { %v2255_v14 = vadd.f32 %v2254_v56, %v2142_v50 }
 0x292   : > { %v2034_v35 = vpop.f32.mrf.mxu1  ;;  %v2373_v48 = vpop.f32.mrf.mxu0 }
 0x293   : > { %v2368_v11 = vadd.f32 %v2367_v32, %v2255_v14  ;;  %v2035_v39 = vadd.f32 %v2034_v35, %v3560_v4 }
 0x295   : > { %2431 = vst [vmem:[%s3607_s26 + $0x80] sm:$0xff] %v2368_v11  ;;  %v2462_v6 = vadd.f32 %v2461_v12, %v2368_v11  ;;  %v2501_v16 = vmul.f32 %v2368_v11, %v2368_v11 }
 0x296   : > { %v2144_v5 = vpop.f32.mrf.mxu2 }
 0x297   : > { %v2532_v34 = vadd.f32 %v2531_v31, %v2501_v16  ;;  %v2145_v24 = vadd.f32 %v2144_v5, %v2032_v37  ;;  %v2257_v59 = vpop.f32.mrf.mxu3 }
 0x299   : > { %v2258_v8 = vadd.f32 %v2257_v59, %v2145_v24 }
 0x29a   : > { %v2037_v46 = vpop.f32.mrf.mxu1  ;;  %v2376_v26 = vpop.f32.mrf.mxu0 }
 0x29b   : > { %v2371_v15 = vadd.f32 %v2370_v23, %v2258_v8  ;;  %v2038_v27 = vadd.f32 %v2037_v46, %v3563_v40 }
 0x29d   : > { %2432 = vst [vmem:[%s3607_s26 + $0x88] sm:$0xff] %v2371_v15  ;;  %v2463_v43 = vadd.f32 %v2462_v6, %v2371_v15  ;;  %v2502_v2 = vmul.f32 %v2371_v15, %v2371_v15 }
 0x29e   : > { %v2147_v10 = vpop.f32.mrf.mxu2 }
 0x29f   : > { %v2533_v19 = vadd.f32 %v2532_v34, %v2502_v2  ;;  %v2148_v57 = vadd.f32 %v2147_v10, %v2035_v39  ;;  %v2260_v25 = vpop.f32.mrf.mxu3 }
 0x2a1   : > { %v2261_v51 = vadd.f32 %v2260_v25, %v2148_v57 }
 0x2a2   : > { %v2040_v36 = vpop.f32.mrf.mxu1  ;;  %v2379_v49 = vpop.f32.mrf.mxu0 }
 0x2a3   : > { %v2374_v63 = vadd.f32 %v2373_v48, %v2261_v51  ;;  %v2041_v60 = vadd.f32 %v2040_v36, %v3566_v28 }
 0x2a5   : > { %2433 = vst [vmem:[%s3607_s26 + $0x90] sm:$0xff] %v2374_v63  ;;  %v2464_v42 = vadd.f32 %v2463_v43, %v2374_v63  ;;  %v2503_v55 = vmul.f32 %v2374_v63, %v2374_v63 }
 0x2a6   : > { %v2150_v52 = vpop.f32.mrf.mxu2 }
 0x2a7   : > { %v2534_v32 = vadd.f32 %v2533_v19, %v2503_v55  ;;  %v2151_v4 = vadd.f32 %v2150_v52, %v2038_v27  ;;  %v2263_v47 = vpop.f32.mrf.mxu3 }
 0x2a9   : > { %v2264_v58 = vadd.f32 %v2263_v47, %v2151_v4 }
 0x2aa   : > { %v2043_v17 = vpop.f32.mrf.mxu1  ;;  %v2382_v3 = vpop.f32.mrf.mxu0 }
 0x2ab   : > { %v2377_v0 = vadd.f32 %v2376_v26, %v2264_v58  ;;  %v2044_v20 = vadd.f32 %v2043_v17, %v3569_v38 }
 0x2ad   : > { %2434 = vst [vmem:[%s3607_s26 + $0x98] sm:$0xff] %v2377_v0  ;;  %v2465_v62 = vadd.f32 %v2464_v42, %v2377_v0  ;;  %v2504_v18 = vmul.f32 %v2377_v0, %v2377_v0 }
 0x2ae   : > { %v2153_v1 = vpop.f32.mrf.mxu2 }
 0x2af   : > { %v2535_v9 = vadd.f32 %v2534_v32, %v2504_v18  ;;  %v2154_v40 = vadd.f32 %v2153_v1, %v2041_v60  ;;  %v2266_v23 = vpop.f32.mrf.mxu3 }
 0x2b1   : > { %v2267_v33 = vadd.f32 %v2266_v23, %v2154_v40 }
 0x2b2   : > { %v2046_v41 = vpop.f32.mrf.mxu1  ;;  %v2385_v12 = vpop.f32.mrf.mxu0 }
 0x2b3   : > { %v2380_v7 = vadd.f32 %v2379_v49, %v2267_v33  ;;  %v2047_v16 = vadd.f32 %v2046_v41, %v3572_v44 }
 0x2b5   : > { %2435 = vst [vmem:[%s3607_s26 + $0xa0] sm:$0xff] %v2380_v7  ;;  %v2466_v31 = vadd.f32 %v2465_v62, %v2380_v7  ;;  %v2505_v50 = vmul.f32 %v2380_v7, %v2380_v7 }
 0x2b6   : > { %v2156_v56 = vpop.f32.mrf.mxu2 }
 0x2b7   : > { %v2536_v14 = vadd.f32 %v2535_v9, %v2505_v50  ;;  %v2157_v28 = vadd.f32 %v2156_v56, %v2044_v20  ;;  %v2269_v35 = vpop.f32.mrf.mxu3 }
 0x2b9   : > { %v2270_v48 = vadd.f32 %v2269_v35, %v2157_v28 }
 0x2ba   : > { %v2049_v11 = vpop.f32.mrf.mxu1  ;;  %v2388_v37 = vpop.f32.mrf.mxu0 }
 0x2bb   : > { %v2383_v6 = vadd.f32 %v2382_v3, %v2270_v48  ;;  %v2050_v43 = vadd.f32 %v2049_v11, %v3575_v53 }
 0x2bd   : > { %2436 = vst [vmem:[%s3607_s26 + $0xa8] sm:$0xff] %v2383_v6  ;;  %v2467_v5 = vadd.f32 %v2466_v31, %v2383_v6  ;;  %v2506_v34 = vmul.f32 %v2383_v6, %v2383_v6 }
 0x2be   : > { %v2159_v24 = vpop.f32.mrf.mxu2 }
 0x2bf   : > { %v2537_v59 = vadd.f32 %v2536_v14, %v2506_v34  ;;  %v2160_v38 = vadd.f32 %v2159_v24, %v2047_v16  ;;  %v2272_v8 = vpop.f32.mrf.mxu3 }
 0x2c1   : > { %v2273_v46 = vadd.f32 %v2272_v8, %v2160_v38 }
 0x2c2   : > { %v2052_v26 = vpop.f32.mrf.mxu1  ;;  %v2391_v15 = vpop.f32.mrf.mxu0 }
 0x2c3   : > { %v2386_v39 = vadd.f32 %v2385_v12, %v2273_v46  ;;  %v2053_v27 = vadd.f32 %v2052_v26, %v3578_v61 }
 0x2c5   : > { %2437 = vst [vmem:[%s3607_s26 + $0xb0] sm:$0xff] %v2386_v39  ;;  %v2468_v2 = vadd.f32 %v2467_v5, %v2386_v39  ;;  %v2507_v10 = vmul.f32 %v2386_v39, %v2386_v39 }
 0x2c6   : > { %v2162_v19 = vpop.f32.mrf.mxu2 }
 0x2c7   : > { %v2538_v57 = vadd.f32 %v2537_v59, %v2507_v10  ;;  %v2163_v44 = vadd.f32 %v2162_v19, %v2050_v43  ;;  %v2275_v25 = vpop.f32.mrf.mxu3 }
 0x2c9   : > { %v2276_v51 = vadd.f32 %v2275_v25, %v2163_v44 }
 0x2ca   : > { %v2055_v36 = vpop.f32.mrf.mxu1  ;;  %v2394_v63 = vpop.f32.mrf.mxu0 }
 0x2cb   : > { %v2389_v49 = vadd.f32 %v2388_v37, %v2276_v51  ;;  %v2056_v3 = vadd.f32 %v2055_v36, %v3581_v13 }
 0x2cd   : > { %2438 = vst [vmem:[%s3607_s26 + $0xb8] sm:$0xff] %v2389_v49  ;;  %v2469_v42 = vadd.f32 %v2468_v2, %v2389_v49  ;;  %v2508_v55 = vmul.f32 %v2389_v49, %v2389_v49 }
 0x2ce   : > { %v2165_v52 = vpop.f32.mrf.mxu2 }
 0x2cf   : > { %v2539_v32 = vadd.f32 %v2538_v57, %v2508_v55  ;;  %v2166_v53 = vadd.f32 %v2165_v52, %v2053_v27  ;;  %v2278_v4 = vpop.f32.mrf.mxu3 }
 0x2d1   : > { %v2279_v47 = vadd.f32 %v2278_v4, %v2166_v53 }
 0x2d2   : > { %v2058_v58 = vpop.f32.mrf.mxu1  ;;  %v2397_v18 = vpop.f32.mrf.mxu0 }
 0x2d3   : > { %v2392_v17 = vadd.f32 %v2391_v15, %v2279_v47  ;;  %v2059_v41 = vadd.f32 %v2058_v58, %v3584_v30 }
 0x2d5   : > { %2439 = vst [vmem:[%s3607_s26 + $0xc0] sm:$0xff] %v2392_v17  ;;  %v2470_v0 = vadd.f32 %v2469_v42, %v2392_v17  ;;  %v2509_v60 = vmul.f32 %v2392_v17, %v2392_v17 }
 0x2d6   : > { %v2168_v62 = vpop.f32.mrf.mxu2 }
 0x2d7   : > { %v2540_v1 = vadd.f32 %v2539_v32, %v2509_v60  ;;  %v2169_v61 = vadd.f32 %v2168_v62, %v2056_v3  ;;  %v2281_v9 = vpop.f32.mrf.mxu3 }
 0x2d9   : > { %v2282_v40 = vadd.f32 %v2281_v9, %v2169_v61 }
 0x2da   : > { %v2061_v23 = vpop.f32.mrf.mxu1  ;;  %v2400_v56 = vpop.f32.mrf.mxu0 }
 0x2db   : > { %v2395_v33 = vadd.f32 %v2394_v63, %v2282_v40  ;;  %v2062_v48 = vadd.f32 %v2061_v23, %v3587_v21 }
 0x2dd   : > { %2440 = vst [vmem:[%s3607_s26 + $0xc8] sm:$0xff] %v2395_v33  ;;  %v2471_v12 = vadd.f32 %v2470_v0, %v2395_v33  ;;  %v2510_v7 = vmul.f32 %v2395_v33, %v2395_v33 }
 0x2de   : > { %v2171_v20 = vpop.f32.mrf.mxu2 }
 0x2df   : > { %v2541_v31 = vadd.f32 %v2540_v1, %v2510_v7  ;;  %v2172_v13 = vadd.f32 %v2171_v20, %v2059_v41  ;;  %v2284_v50 = vpop.f32.mrf.mxu3 }
 0x2e1   : > { %v2285_v14 = vadd.f32 %v2284_v50, %v2172_v13 }
 0x2e2   : > { %v2064_v35 = vpop.f32.mrf.mxu1  ;;  %v2403_v24 = vpop.f32.mrf.mxu0 }
 0x2e3   : > { %v2398_v28 = vadd.f32 %v2397_v18, %v2285_v14  ;;  %v2065_v38 = vadd.f32 %v2064_v35, %v3590_v29 }
 0x2e5   : > { %2441 = vst [vmem:[%s3607_s26 + $0xd0] sm:$0xff] %v2398_v28  ;;  %v2472_v11 = vadd.f32 %v2471_v12, %v2398_v28  ;;  %v2511_v37 = vmul.f32 %v2398_v28, %v2398_v28 }
 0x2e6   : > { %v2174_v6 = vpop.f32.mrf.mxu2 }
 0x2e7   : > { %v2542_v16 = vadd.f32 %v2541_v31, %v2511_v37  ;;  %v2175_v30 = vadd.f32 %v2174_v6, %v2062_v48  ;;  %v2287_v5 = vpop.f32.mrf.mxu3 }
 0x2e9   : > { %v2288_v34 = vadd.f32 %v2287_v5, %v2175_v30 }
 0x2ea   : > { %v2067_v15 = vpop.f32.mrf.mxu1  ;;  %v2406_v19 = vpop.f32.mrf.mxu0 }
 0x2eb   : > { %v2401_v59 = vadd.f32 %v2400_v56, %v2288_v34  ;;  %v2068_v57 = vadd.f32 %v2067_v15, %v3593_v22 }
 0x2ed   : > { %2442 = vst [vmem:[%s3607_s26 + $0xd8] sm:$0xff] %v2401_v59  ;;  %v2473_v8 = vadd.f32 %v2472_v11, %v2401_v59  ;;  %v2512_v46 = vmul.f32 %v2401_v59, %v2401_v59 }
 0x2ee   : > { %v2177_v26 = vpop.f32.mrf.mxu2 }
 0x2ef   : > { %v2543_v39 = vadd.f32 %v2542_v16, %v2512_v46  ;;  %v2178_v21 = vadd.f32 %v2177_v26, %v2065_v38  ;;  %v2290_v43 = vpop.f32.mrf.mxu3 }
 0x2f1   : > { %v2291_v2 = vadd.f32 %v2290_v43, %v2178_v21 }
 0x2f2   : > { %v2070_v63 = vpop.f32.mrf.mxu1  ;;  %v2409_v4 = vpop.f32.mrf.mxu0 }
 0x2f3   : > { %v2404_v10 = vadd.f32 %v2403_v24, %v2291_v2  ;;  %v2071_v55 = vadd.f32 %v2070_v63, %v3596_v45 }
 0x2f5   : > { %2443 = vst [vmem:[%s3607_s26 + $0xe0] sm:$0xff] %v2404_v10  ;;  %v2474_v44 = vadd.f32 %v2473_v8, %v2404_v10  ;;  %v2513_v25 = vmul.f32 %v2404_v10, %v2404_v10 }
 0x2f6   : > { %v2180_v51 = vpop.f32.mrf.mxu2 }
 0x2f7   : > { %v2544_v36 = vadd.f32 %v2543_v39, %v2513_v25  ;;  %v2181_v29 = vadd.f32 %v2180_v51, %v2068_v57  ;;  %v2293_v49 = vpop.f32.mrf.mxu3 }
 0x2f9   : > { %v2294_v27 = vadd.f32 %v2293_v49, %v2181_v29 }
 0x2fa   : > { %v2073_v3 = vpop.f32.mrf.mxu1  ;;  %v2412_v40 = vpop.f32.mrf.mxu0 }
 0x2fb   : > { %v2407_v42 = vadd.f32 %v2406_v19, %v2294_v27  ;;  %v2074_v60 = vadd.f32 %v2073_v3, %v3599_v54 }
 0x2fd   : > { %2444 = vst [vmem:[%s3607_s26 + $0xe8] sm:$0xff] %v2407_v42  ;;  %v2475_v52 = vadd.f32 %v2474_v44, %v2407_v42  ;;  %v2514_v32 = vmul.f32 %v2407_v42, %v2407_v42 }
 0x2fe   : > { %v2183_v53 = vpop.f32.mrf.mxu2 }
 0x2ff   : > { %v2545_v47 = vadd.f32 %v2544_v36, %v2514_v32  ;;  %v2184_v22 = vadd.f32 %v2183_v53, %v2071_v55  ;;  %v2296_v58 = vpop.f32.mrf.mxu3 }
 0x301   : > { %v2297_v17 = vadd.f32 %v2296_v58, %v2184_v22 }
 0x303   : > { %v2410_v0 = vadd.f32 %v2409_v4, %v2297_v17 }
 0x305   : > { %2445 = vst [vmem:[%s3607_s26 + $0xf0] sm:$0xff] %v2410_v0  ;;  %v2476_v62 = vadd.f32 %v2475_v52, %v2410_v0  ;;  %v2515_v18 = vmul.f32 %v2410_v0, %v2410_v0 }
 0x306   : > { %v2186_v1 = vpop.f32.mrf.mxu2 }
 0x307   : > { %v2546_v61 = vadd.f32 %v2545_v47, %v2515_v18  ;;  %v2187_v45 = vadd.f32 %v2186_v1, %v2074_v60  ;;  %v2299_v9 = vpop.f32.mrf.mxu3 }
 0x309   : > { %v2300_v23 = vadd.f32 %v2299_v9, %v2187_v45 }
 0x30b   : > { %v2413_v33 = vadd.f32 %v2412_v40, %v2300_v23 }
 0x30d   : > { %2446 = vst [vmem:[%s3607_s26 + $0xf8] sm:$0xff] %v2413_v33  ;;  %v2477_v41 = vadd.f32 %v2476_v62, %v2413_v33  ;;  %v2516_v12 = vmul.f32 %v2413_v33, %v2413_v33 }
 0x30f   : > { %v2478_v7 = vrot.slane %v2477_v41, 4  ;;  %v2547_v20 = vadd.f32 %v2546_v61, %v2516_v12 }
 0x311   : > { %v2479_v31 = vadd.f32 %v2478_v7, %v2477_v41  ;;  %v2548_v13 = vrot.slane %v2547_v20, 4 }
 0x313   : > { %v2480_v54 = vrot.slane %v2479_v31, 2  ;;  %v2549_v50 = vadd.f32 %v2548_v13, %v2547_v20 }
 0x315   : > { %v2481_v56 = vadd.f32 %v2480_v54, %v2479_v31  ;;  %v2550_v14 = vrot.slane %v2549_v50, 2 }
 0x317   : > { %v2482_v28 = vrot.slane %v2481_v56, 1  ;;  %v2551_v35 = vadd.f32 %v2550_v14, %v2549_v50 }
 0x319   : > { %v2483_v48 = vadd.f32 %v2482_v28, %v2481_v56  ;;  %v2552_v11 = vrot.slane %v2551_v35, 1 }
 0x31b   : > { %2484 = vst [vmem:[%s265_s28] sm:$0x1] %v2483_v48  ;;  %v2553_v37 = vadd.f32 %v2552_v11, %v2551_v35 }
 0x31d   : > { %2554 = vst [vmem:[%s268_s9] sm:$0x1] %v2553_v37 }
 0x31e PF: > { %s17_s21 = sadd.s32 1, %s2737_s21  }
 0x31f   : > { %p14_p4 = scmp.ge.s32.totalorder %s17_s21, 4  }
 0x321   :  { %16 = sbr.rel (!%p14_p4) target bundleno = 1 (0x1), region = 92 }

// kernel: flexible_double_conv.4
= control target key start
LH: loop header
LB: loop body
LE: loop exit
PB: predicated region body
PF: predicated region fallthrough
CT: control target
= control target key end

     0   :  { %s2883_s21 = smov 0   ;;  %s3930_s0 = inlined_call_operand.vmem [shape: f32[2,16,16,128], index: 0, kind: input, shape index: {}]   ;;  %s3931_s1 = inlined_call_operand.vmem [shape: f32[1152,128], index: 1, kind: input, shape index: {}]   ;;  %s3932_s2 = inlined_call_operand.vmem [shape: f32[1,128], index: 2, kind: input, shape index: {}]   ;;  %s3933_s3 = inlined_call_operand.vmem [shape: f32[1,128], index: 3, kind: input, shape index: {}]   ;;  %s3934_s4 = inlined_call_operand.vmem [shape: f32[2,16,16,128], index: 4, kind: output, shape index: {0}]   ;;  %s3935_s5 = inlined_call_operand.vmem [shape: f32[2,1,128], index: 5, kind: output, shape index: {1}]   ;;  %s3936_s6 = inlined_call_operand.vmem [shape: f32[2,1,128], index: 6, kind: output, shape index: {2}]  }
   0x1 LB: > { %s2763_s22 = sadd.s32 4294967295, %s2845_s21   ;;  %p2767_p0 = scmp.ge.s32.totalorder %s2845_s21, 1  ;;  %s2845_s21 = sphi %s2883_s21, %s17_s21  }
   0x2   : > { %p217_p1 = scmp.lt.s32.totalorder %s2845_s21, 3 }
   0x4   : > { %p218_p2 = pnand %p2767_p0, %p217_p1 }
   0x5   : > { %p253_p3 = scmp.lt.s32.totalorder (!%p218_p2), %s2763_s22, 1 }
   0x6   : > { %221 = sbr.rel (%p218_p2) target bundleno = 798 (0x31e), region = 36 }
   0xb   : > { %v1372_v0 = vld [vmem:[%s3931_s1 + $0x78] sm:$0xff]  ;;  %v1371_v1 = vld [vmem:[%s3931_s1 + $0x70] sm:$0xff]  ;;  %v2847_v2 = vmov 0.0   ;;  %v1370_v3 = vld [vmem:[%s3931_s1 + $0x68] sm:$0xff]  ;;  %s3938_s22 = smov (!%p253_p3, %s2763_s22), 1 }
   0xc   : > { %2776 = vmatpush.msra.mxu1 %v1372_v0  ;;  %2777 = vmatpush.msra.mxu2 %v1372_v0  ;;  %281 = vst [vmem:[#allocation2 + $0x60] sm:$0xff] %v2847_v2  ;;  %v1369_v4 = vld [vmem:[%s3931_s1 + $0x60] sm:$0xff]  ;;  %s2774_s7 = sshll.u32 %s3938_s22, 8  ;;  %v1368_v5 = vld [vmem:[%s3931_s1 + $0x58] sm:$0xff]  ;;  %v1367_v10 = vld [vmem:[%s3931_s1 + $0x50] sm:$0xff]  ;;  %s265_s24 = scalar_lea.vmem %s3935_s5, %s3938_s22 }
   0xd   : > { %2778 = vmatpush.msra.mxu3 %v1372_v0  ;;  %1501 = vmatpush.msra.mxu0 %v1372_v0  ;;  %282 = vst [vmem:[#allocation2 + $0x68] sm:$0xff] %v2847_v2  ;;  %s2918_s12 = scalar_lea.vmem %s3930_s0, %s2774_s7  ;;  %v2923_v6 = vld [vmem:[%s3932_s2] ss:$0 sm:$0xff]  ;;  %v1366_v12 = vld [vmem:[%s3931_s1 + $0x48] sm:$0xff]  ;;  %v1364_v15 = vld [vmem:[%s3931_s1 + $0x38] sm:$0xff]  ;;  %s3854_s20 = scalar_lea.vmem %s3934_s4, %s2774_s7 }
   0xe   : > { %2779 = vmatpush.msra.mxu1 %v1371_v1  ;;  %2780 = vmatpush.msra.mxu2 %v1371_v1  ;;  %269 = vst [vmem:[#allocation2] sm:$0xff] %v2847_v2  ;;  %v329_v7 = vld [vmem:[%s2918_s12 + $0x30] sm:$0xff]  ;;  %v2930_v8 = vld [vmem:[%s3933_s3] ss:$0 sm:$0xff]  ;;  %v1362_v17 = vld [vmem:[%s3931_s1 + $0x28] sm:$0xff]  ;;  %s268_s27 = scalar_lea.vmem %s3936_s6, %s3938_s22 }
   0xf   : > { %2781 = vmatpush.msra.mxu3 %v1371_v1  ;;  %1502 = vmatpush.msra.mxu0 %v1371_v1  ;;  %270 = vst [vmem:[#allocation2 + $0x8] sm:$0xff] %v2847_v2  ;;  %v365_v9 = vmul.f32 %v2923_v6, %v329_v7  ;;  %v1365_v14 = vld [vmem:[%s3931_s1 + $0x40] sm:$0xff]  ;;  %v1363_v16 = vld [vmem:[%s3931_s1 + $0x30] sm:$0xff]  ;;  %v1360_v19 = vld [vmem:[%s3931_s1 + $0x18] sm:$0xff] }
  0x10   : > { %2782 = vmatpush.msra.mxu1 %v1370_v3  ;;  %2783 = vmatpush.msra.mxu2 %v1370_v3  ;;  %272 = vst [vmem:[#allocation2 + $0x18] sm:$0xff] %v2847_v2  ;;  %v1361_v18 = vld [vmem:[%s3931_s1 + $0x20] sm:$0xff]  ;;  %v1359_v20 = vld [vmem:[%s3931_s1 + $0x10] sm:$0xff]  ;;  %v1358_v21 = vld [vmem:[%s3931_s1 + $0x8] sm:$0xff] }
  0x11   : > { %2784 = vmatpush.msra.mxu3 %v1370_v3  ;;  %1503 = vmatpush.msra.mxu0 %v1370_v3  ;;  %273 = vst [vmem:[#allocation2 + $0x20] sm:$0xff] %v2847_v2  ;;  %v2940_v11 = vadd.f32 %v2930_v8, %v365_v9  ;;  %v1357_v22 = vld [vmem:[%s3931_s1] sm:$0xff]  ;;  %v1404_v24 = vld [vmem:[%s3931_s1 + $0x178] sm:$0xff]  ;;  %v1403_v27 = vld [vmem:[%s3931_s1 + $0x170] sm:$0xff] }
  0x12   : > { %2785 = vmatpush.msra.mxu1 %v1369_v4  ;;  %2786 = vmatpush.msra.mxu2 %v1369_v4  ;;  %271 = vst [vmem:[#allocation2 + $0x10] sm:$0x3] %v2847_v2  ;;  %v1420_v25 = vld [vmem:[%s3931_s1 + $0x1f8] sm:$0xff]  ;;  %v1419_v28 = vld [vmem:[%s3931_s1 + $0x1f0] sm:$0xff]  ;;  %v1402_v32 = vld [vmem:[%s3931_s1 + $0x168] sm:$0xff] }
  0x13   : > { %2787 = vmatpush.msra.mxu3 %v1369_v4  ;;  %1504 = vmatpush.msra.mxu0 %v1369_v4  ;;  %274 = vst [vmem:[#allocation2 + $0x28] sm:$0x3] %v2847_v2  ;;  %v433_v13 = vmax.f32 %v2940_v11, 0.0  ;;  %v1388_v26 = vld [vmem:[%s3931_s1 + $0xf8] sm:$0xff]  ;;  %v337_v29 = vld [vmem:[%s2918_s12 + $0x70] sm:$0xff]  ;;  %v1418_v33 = vld [vmem:[%s3931_s1 + $0x1e8] sm:$0xff] }
  0x14   : > { %2788 = vmatpush.msra.mxu1 %v1368_v5  ;;  %2789 = vmatpush.msra.mxu2 %v1368_v5  ;;  %275 = vst [vmem:[#allocation2 + $0x30] sm:$0xff] %v2847_v2  ;;  %v345_v30 = vld [vmem:[%s2918_s12 + $0xb0] sm:$0xff]  ;;  %v1436_v34 = vld [vmem:[%s3931_s1 + $0x278] sm:$0xff]  ;;  %v1386_v35 = vld [vmem:[%s3931_s1 + $0xe8] sm:$0xff]  ;;  %v373_v40 = vmul.f32 %v2923_v6, %v337_v29 }
  0x15   : > { %2790 = vmatpush.msra.mxu3 %v1368_v5  ;;  %1505 = vmatpush.msra.mxu0 %v1368_v5  ;;  %276 = vst [vmem:[#allocation2 + $0x38] sm:$0xff] %v2847_v2  ;;  %v1387_v31 = vld [vmem:[%s3931_s1 + $0xf0] sm:$0xff]  ;;  %v1401_v36 = vld [vmem:[%s3931_s1 + $0x160] sm:$0xff]  ;;  %v330_v39 = vld [vmem:[%s2918_s12 + $0x38] sm:$0xff]  ;;  %v381_v42 = vmul.f32 %v2923_v6, %v345_v30 }
  0x16   : > { %2791 = vmatpush.msra.mxu1 %v1367_v10  ;;  %2792 = vmatpush.msra.mxu2 %v1367_v10  ;;  %277 = vst [vmem:[#allocation2 + $0x40] sm:$0x3] %v2847_v2  ;;  %v1417_v37 = vld [vmem:[%s3931_s1 + $0x1e0] sm:$0xff]  ;;  %v1435_v38 = vld [vmem:[%s3931_s1 + $0x270] sm:$0xff]  ;;  %v338_v41 = vld [vmem:[%s2918_s12 + $0x78] sm:$0xff]  ;;  %v366_v44 = vmul.f32 %v2923_v6, %v330_v39  ;;  %v409_v50 = vadd.f32 %v2930_v8, %v373_v40 }
  0x17   : > { %2793 = vmatpush.msra.mxu3 %v1367_v10  ;;  %1506 = vmatpush.msra.mxu0 %v1367_v10  ;;  %278 = vst [vmem:[#allocation2 + $0x48] sm:$0xff] %v2847_v2  ;;  %v346_v43 = vld [vmem:[%s2918_s12 + $0xb8] sm:$0xff]  ;;  %v331_v45 = vld [vmem:[%s2918_s12 + $0x40] sm:$0xff]  ;;  %v374_v46 = vmul.f32 %v2923_v6, %v338_v41  ;;  %v332_v49 = vld [vmem:[%s2918_s12 + $0x48] sm:$0xff]  ;;  %v417_v55 = vadd.f32 %v2930_v8, %v381_v42 }
  0x18   : > { %2794 = vmatpush.msra.mxu1 %v1366_v12  ;;  %2795 = vmatpush.msra.mxu2 %v1366_v12  ;;  %466 = vst [vmem:[#allocation2 + $0x61] sm:$0xff] %v433_v13  ;;  %v339_v47 = vld [vmem:[%s2918_s12 + $0x80] sm:$0xff]  ;;  %v382_v51 = vmul.f32 %v2923_v6, %v346_v43  ;;  %v1400_v53 = vld [vmem:[%s3931_s1 + $0x158] sm:$0xff]  ;;  %v340_v54 = vld [vmem:[%s2918_s12 + $0x88] sm:$0xff]  ;;  %v367_v56 = vmul.f32 %v2923_v6, %v331_v45  ;;  %v441_v5 = vmax.f32 %v409_v50, 0.0 }
  0x19   : > { %2796 = vmatpush.msra.mxu3 %v1366_v12  ;;  %1507 = vmatpush.msra.mxu0 %v1366_v12  ;;  %279 = vst [vmem:[#allocation2 + $0x50] sm:$0xff] %v2847_v2  ;;  %v347_v48 = vld [vmem:[%s2918_s12 + $0xc0] sm:$0xff]  ;;  %v1416_v57 = vld [vmem:[%s3931_s1 + $0x1d8] sm:$0xff]  ;;  %v1434_v58 = vld [vmem:[%s3931_s1 + $0x268] sm:$0xff]  ;;  %v402_v60 = vadd.f32 %v2930_v8, %v366_v44  ;;  %v375_v61 = vmul.f32 %v2923_v6, %v339_v47  ;;  %v449_v12 = vmax.f32 %v417_v55, 0.0 }
  0x1a   : > { %2797 = vmatpush.msra.mxu1 %v1365_v14  ;;  %2798 = vmatpush.msra.mxu2 %v1365_v14  ;;  %280 = vst [vmem:[#allocation2 + $0x58] sm:$0x3] %v2847_v2  ;;  %v1385_v52 = vld [vmem:[%s3931_s1 + $0xe0] sm:$0xff]  ;;  %v1384_v59 = vld [vmem:[%s3931_s1 + $0xd8] sm:$0xff]  ;;  %v1399_v62 = vld [vmem:[%s3931_s1 + $0x150] sm:$0xff]  ;;  %v410_v1 = vadd.f32 %v2930_v8, %v374_v46  ;;  %v383_v3 = vmul.f32 %v2923_v6, %v347_v48 }
  0x1b   : > { %2799 = vmatpush.msra.mxu3 %v1365_v14  ;;  %1508 = vmatpush.msra.mxu0 %v1365_v14  ;;  %283 = vst [vmem:[#allocation2 + $0x70] sm:$0x3] %v2847_v2  ;;  %v1415_v63 = vld [vmem:[%s3931_s1 + $0x1d0] sm:$0xff]  ;;  %v1433_v0 = vld [vmem:[%s3931_s1 + $0x260] sm:$0xff]  ;;  %v418_v7 = vadd.f32 %v2930_v8, %v382_v51  ;;  %v368_v9 = vmul.f32 %v2923_v6, %v332_v49  ;;  %v348_v10 = vld [vmem:[%s2918_s12 + $0xc8] sm:$0xff] }
  0x1c   : > { %2800 = vmatpush.msra.mxu1 %v1364_v15  ;;  %2801 = vmatpush.msra.mxu2 %v1364_v15  ;;  %284 = vst [vmem:[#allocation2 + $0x78] sm:$0xff] %v2847_v2  ;;  %v323_v4 = vld [vmem:[%s2918_s12] sm:$0xff]  ;;  %v403_v14 = vadd.f32 %v2930_v8, %v367_v56  ;;  %v1398_v29 = vld [vmem:[%s3931_s1 + $0x148] sm:$0xff]  ;;  %v349_v30 = vld [vmem:[%s2918_s12 + $0xd0] sm:$0xff] }
  0x1d   : > { %2802 = vmatpush.msra.mxu3 %v1364_v15  ;;  %1509 = vmatpush.msra.mxu0 %v1364_v15  ;;  %285 = vst [vmem:[#allocation2 + $0x80] sm:$0xff] %v2847_v2  ;;  %v376_v15 = vmul.f32 %v2923_v6, %v340_v54  ;;  %v1397_v39 = vld [vmem:[%s3931_s1 + $0x140] sm:$0xff]  ;;  %v1431_v41 = vld [vmem:[%s3931_s1 + $0x250] sm:$0xff]  ;;  %v385_v45 = vmul.f32 %v2923_v6, %v349_v30  ;;  %v334_v46 = vld [vmem:[%s2918_s12 + $0x58] sm:$0xff] }
  0x1e   : > { %2803 = vmatpush.msra.mxu1 %v1363_v16  ;;  %2804 = vmatpush.msra.mxu2 %v1363_v16  ;;  %286 = vst [vmem:[#allocation2 + $0x88] sm:$0x3] %v2847_v2  ;;  %v1413_v40 = vld [vmem:[%s3931_s1 + $0x1c0] sm:$0xff]  ;;  %v342_v47 = vld [vmem:[%s2918_s12 + $0x98] sm:$0xff]  ;;  %v325_v48 = vld [vmem:[%s2918_s12 + $0x10] sm:$0xff]  ;;  %v370_v51 = vmul.f32 %v2923_v6, %v334_v46 }
  0x1f   : > { %2805 = vmatpush.msra.mxu3 %v1363_v16  ;;  %1510 = vmatpush.msra.mxu0 %v1363_v16  ;;  %287 = vst [vmem:[#allocation2 + $0x90] sm:$0xff] %v2847_v2  ;;  %v2994_v23 = vld [vmem:[#allocation2 + $0x60] sm:$0xff]  ;;  %v333_v16 = vld [vmem:[%s2918_s12 + $0x50] sm:$0xff]  ;;  %v378_v55 = vmul.f32 %v2923_v6, %v342_v47  ;;  %v326_v30 = vld [vmem:[%s2918_s12 + $0x18] sm:$0xff] }
  0x20   : > { %2806 = vmatpush.msra.mxu1 %v1362_v17  ;;  %2807 = vmatpush.msra.mxu2 %v1362_v17  ;;  %288 = vst [vmem:[#allocation2 + $0x98] sm:$0xff] %v2847_v2  ;;  %v1410_v46 = vld [vmem:[%s3931_s1 + $0x1a8] sm:$0xff]  ;;  %v1428_v47 = vld [vmem:[%s3931_s1 + $0x238] sm:$0xff] }
  0x21   : > { %2808 = vmatpush.msra.mxu3 %v1362_v17  ;;  %1511 = vmatpush.msra.mxu0 %v1362_v17  ;;  %289 = vst [vmem:[#allocation2 + $0xa0] sm:$0x3] %v2847_v2  ;;  %v3117_v17 = vmax.f32 %v402_v60, 0.0 }
  0x22   : > { %2809 = vmatpush.msra.mxu1 %v1361_v18  ;;  %2810 = vmatpush.msra.mxu2 %v1361_v18  ;;  %290 = vst [vmem:[#allocation2 + $0xa8] sm:$0xff] %v2847_v2 }
  0x23   : > { %2811 = vmatpush.msra.mxu3 %v1361_v18  ;;  %291 = vst [vmem:[#allocation2 + $0xb0] sm:$0xff] %v2847_v2  ;;  %1512 = vmatpush.msra.mxu0 %v1361_v18  ;;  %v411_v18 = vadd.f32 %v2930_v8, %v375_v61  ;;  %v421_v61 = vadd.f32 %v2930_v8, %v385_v45 }
  0x24   : > { %2812 = vmatpush.msra.mxu1 %v1360_v19  ;;  %2813 = vmatpush.msra.mxu2 %v1360_v19  ;;  %292 = vst [vmem:[#allocation2 + $0xb8] sm:$0x3] %v2847_v2 }
  0x25   : > { %2814 = vmatpush.msra.mxu3 %v1360_v19  ;;  %293 = vst [vmem:[#allocation2 + $0xc0] sm:$0xff] %v2847_v2  ;;  %1513 = vmatpush.msra.mxu0 %v1360_v19  ;;  %v359_v19 = vmul.f32 %v2923_v6, %v323_v4  ;;  %v406_v4 = vadd.f32 %v2930_v8, %v370_v51  ;;  %v1378_v51 = vld [vmem:[%s3931_s1 + $0xa8] sm:$0xff] }
  0x26   : > { %2815 = vmatpush.msra.mxu1 %v1359_v20  ;;  %2816 = vmatpush.msra.mxu2 %v1359_v20  ;;  %294 = vst [vmem:[#allocation2 + $0xc8] sm:$0xff] %v2847_v2 }
  0x27   : > { %2817 = vmatpush.msra.mxu3 %v1359_v20  ;;  %295 = vst [vmem:[#allocation2 + $0xd0] sm:$0x3] %v2847_v2  ;;  %1514 = vmatpush.msra.mxu0 %v1359_v20  ;;  %v341_v20 = vld [vmem:[%s2918_s12 + $0x90] sm:$0xff] }
  0x28   : > { %2818 = vmatpush.msra.mxu1 %v1358_v21  ;;  %2819 = vmatpush.msra.mxu2 %v1358_v21  ;;  %296 = vst [vmem:[#allocation2 + $0xd8] sm:$0xff] %v2847_v2 }
  0x29   : > { %2820 = vmatpush.msra.mxu3 %v1358_v21  ;;  %297 = vst [vmem:[#allocation2 + $0xe0] sm:$0xff] %v2847_v2  ;;  %1515 = vmatpush.msra.mxu0 %v1358_v21  ;;  %v442_v21 = vmax.f32 %v410_v1, 0.0  ;;  %v1381_v1 = vld [vmem:[%s3931_s1 + $0xc0] sm:$0xff] }
  0x2a   : > { %2821 = vmatpush.msra.mxu1 %v1357_v22  ;;  %2822 = vmatpush.msra.mxu2 %v1357_v22  ;;  %298 = vst [vmem:[#allocation2 + $0xe8] sm:$0x3] %v2847_v2 }
  0x2b   : > { %1541 = vmatmul.f32.vlgmr.msra.gmra.mxu1 %v2994_v23  ;;  %299 = vst [vmem:[#allocation2 + $0xf0] sm:$0xff] %v2847_v2  ;;  %2823 = vmatpush.msra.mxu3 %v1357_v22 }
  0x2c   : > { %300 = vst [vmem:[#allocation2 + $0xf8] sm:$0xff] %v2847_v2  ;;  %1727 = vmatpush.msrb.mxu2 %v1404_v24  ;;  %1516 = vmatpush.msra.mxu0 %v1357_v22  ;;  %v419_v22 = vadd.f32 %v2930_v8, %v383_v3  ;;  %v384_v24 = vmul.f32 %v2923_v6, %v348_v10  ;;  %v1396_v3 = vld [vmem:[%s3931_s1 + $0x138] sm:$0xff]  ;;  %v1430_v10 = vld [vmem:[%s3931_s1 + $0x248] sm:$0xff] }
  0x2d   : > { %301 = vst [vmem:[#allocation2 + $0x100] sm:$0x3] %v2847_v2  ;;  %1840 = vmatpush.msrb.mxu3 %v1420_v25  ;;  %1614 = vmatpush.msrb.mxu1 %v1388_v26  ;;  %v324_v25 = vld [vmem:[%s2918_s12 + $0x8] sm:$0xff]  ;;  %v450_v26 = vmax.f32 %v418_v7, 0.0 }
  0x2e   : > { %302 = vst [vmem:[#allocation2 + $0x108] sm:$0xff] %v2847_v2  ;;  %1728 = vmatpush.msrb.mxu2 %v1403_v27  ;;  %1517 = vmatmul.f32.vlgmr.msra.gmra.mxu0 %v2847_v2  ;;  %v404_v27 = vadd.f32 %v2930_v8, %v368_v9  ;;  %v360_v42 = vmul.f32 %v2923_v6, %v324_v25  ;;  %v451_v43 = vmax.f32 %v419_v22, 0.0  ;;  %v1412_v9 = vld [vmem:[%s3931_s1 + $0x1b8] sm:$0xff]  ;;  %v335_v25 = vld [vmem:[%s2918_s12 + $0x60] sm:$0xff] }
  0x2f   : > { %303 = vst [vmem:[#allocation2 + $0x110] sm:$0xff] %v2847_v2  ;;  %1841 = vmatpush.msrb.mxu3 %v1419_v28  ;;  %1615 = vmatpush.msrb.mxu1 %v1387_v31  ;;  %v1383_v28 = vld [vmem:[%s3931_s1 + $0xd0] sm:$0xff]  ;;  %v3135_v31 = vmax.f32 %v403_v14, 0.0  ;;  %v420_v44 = vadd.f32 %v2930_v8, %v384_v24  ;;  %v3222_v24 = vmax.f32 %v406_v4, 0.0 }
  0x30   : > { %304 = vst [vmem:[#allocation2 + $0x118] sm:$0x3] %v2847_v2  ;;  %1729 = vmatpush.msrb.mxu2 %v1402_v32  ;;  %1953 = vmatpush.msrb.mxu0 %v1436_v34  ;;  %v412_v32 = vadd.f32 %v2930_v8, %v376_v15  ;;  %v1432_v34 = vld [vmem:[%s3931_s1 + $0x258] sm:$0xff]  ;;  %v3165_v49 = vmax.f32 %v404_v27, 0.0 }
  0x31   : > { %305 = vst [vmem:[#allocation2 + $0x120] sm:$0xff] %v2847_v2  ;;  %1842 = vmatpush.msrb.mxu3 %v1418_v33  ;;  %1616 = vmatpush.msrb.mxu1 %v1386_v35  ;;  %v1414_v33 = vld [vmem:[%s3931_s1 + $0x1c8] sm:$0xff]  ;;  %v452_v60 = vmax.f32 %v420_v44, 0.0  ;;  %v1380_v15 = vld [vmem:[%s3931_s1 + $0xb8] sm:$0xff] }
  0x32   : > { %306 = vst [vmem:[#allocation2 + $0x128] sm:$0xff] %v2847_v2  ;;  %1730 = vmatpush.msrb.mxu2 %v1401_v36  ;;  %1954 = vmatpush.msrb.mxu0 %v1435_v38  ;;  %v1382_v35 = vld [vmem:[%s3931_s1 + $0xc8] sm:$0xff]  ;;  %v377_v36 = vmul.f32 %v2923_v6, %v341_v20  ;;  %v395_v38 = vadd.f32 %v2930_v8, %v359_v19  ;;  %v453_v19 = vmax.f32 %v421_v61, 0.0  ;;  %v1411_v20 = vld [vmem:[%s3931_s1 + $0x1b0] sm:$0xff] }
  0x33   : > { %307 = vst [vmem:[#allocation2 + $0x130] sm:$0x3] %v2847_v2  ;;  %1843 = vmatpush.msrb.mxu3 %v1417_v37  ;;  %1617 = vmatpush.msrb.mxu1 %v1385_v52  ;;  %v443_v37 = vmax.f32 %v411_v18, 0.0  ;;  %v350_v52 = vld [vmem:[%s2918_s12 + $0xd8] sm:$0xff] }
  0x34   : > { %308 = vst [vmem:[#allocation2 + $0x138] sm:$0xff] %v2847_v2  ;;  %1731 = vmatpush.msrb.mxu2 %v1400_v53  ;;  %1955 = vmatpush.msrb.mxu0 %v1434_v58  ;;  %v3171_v53 = vmax.f32 %v412_v32, 0.0  ;;  %v413_v54 = vadd.f32 %v2930_v8, %v377_v36  ;;  %v3175_v56 = vmax.f32 %v395_v38, 0.0  ;;  %v361_v58 = vmul.f32 %v2923_v6, %v325_v48  ;;  %v351_v32 = vld [vmem:[%s2918_s12 + $0xe0] sm:$0xff] }
  0x35   : > { %309 = vst [vmem:[#allocation2 + $0x140] sm:$0xff] %v2847_v2  ;;  %1844 = vmatpush.msrb.mxu3 %v1416_v57  ;;  %1618 = vmatpush.msrb.mxu1 %v1384_v59  ;;  %v396_v57 = vadd.f32 %v2930_v8, %v360_v42  ;;  %v387_v36 = vmul.f32 %v2923_v6, %v351_v32  ;;  %v1394_v42 = vld [vmem:[%s3931_s1 + $0x128] sm:$0xff] }
  0x36   : > { %310 = vst [vmem:[#allocation2 + $0x148] sm:$0x3] %v2847_v2  ;;  %1520 = vmatmul.f32.gmra.mxu0 %v2847_v2  ;;  %1732 = vmatpush.msrb.mxu2 %v1399_v62  ;;  %v386_v62 = vmul.f32 %v2923_v6, %v350_v52  ;;  %v3194_v7 = vmax.f32 %v413_v54, 0.0  ;;  %v397_v18 = vadd.f32 %v2930_v8, %v361_v58  ;;  %v1393_v52 = vld [vmem:[%s3931_s1 + $0x120] sm:$0xff] }
  0x37   : > { %311 = vst [vmem:[#allocation2 + $0x150] sm:$0xff] %v2847_v2  ;;  %1845 = vmatpush.msrb.mxu3 %v1415_v63  ;;  %1956 = vmatpush.msrb.mxu0 %v1433_v0  ;;  %v3205_v14 = vmax.f32 %v396_v57, 0.0  ;;  %v423_v44 = vadd.f32 %v2930_v8, %v387_v36  ;;  %v1427_v57 = vld [vmem:[%s3931_s1 + $0x230] sm:$0xff]  ;;  %v1425_v36 = vld [vmem:[%s3931_s1 + $0x220] sm:$0xff] }
  0x38   : > { %312 = vst [vmem:[#allocation2 + $0x158] sm:$0xff] %v2847_v2  ;;  %1619 = vmatpush.msrb.mxu1 %v1383_v28  ;;  %1733 = vmatpush.msrb.mxu2 %v1398_v29  ;;  %v422_v22 = vadd.f32 %v2930_v8, %v386_v62  ;;  %v371_v29 = vmul.f32 %v2923_v6, %v335_v25  ;;  %v1408_v25 = vld [vmem:[%s3931_s1 + $0x198] sm:$0xff] }
  0x39   : > { %313 = vst [vmem:[#allocation2 + $0x160] sm:$0x3] %v2847_v2  ;;  %1846 = vmatpush.msrb.mxu3 %v1414_v33  ;;  %1957 = vmatpush.msrb.mxu0 %v1432_v34  ;;  %v3234_v34 = vmax.f32 %v397_v18, 0.0  ;;  %v455_v58 = vmax.f32 %v423_v44, 0.0 }
  0x3a   : > { %314 = vst [vmem:[#allocation2 + $0x168] sm:$0xff] %v2847_v2  ;;  %1620 = vmatpush.msrb.mxu1 %v1382_v35  ;;  %1734 = vmatpush.msrb.mxu2 %v1397_v39  ;;  %v362_v35 = vmul.f32 %v2923_v6, %v326_v30  ;;  %v454_v38 = vmax.f32 %v422_v22, 0.0  ;;  %v407_v39 = vadd.f32 %v2930_v8, %v371_v29  ;;  %v1391_v30 = vld [vmem:[%s3931_s1 + $0x110] sm:$0xff] }
  0x3b   : > { %315 = vst [vmem:[#allocation2 + $0x170] sm:$0xff] %v2847_v2  ;;  %1847 = vmatpush.msrb.mxu3 %v1413_v40  ;;  %1958 = vmatpush.msrb.mxu0 %v1431_v41  ;;  %v1379_v41 = vld [vmem:[%s3931_s1 + $0xb0] sm:$0xff] }
  0x3c   : > { %316 = vst [vmem:[#allocation2 + $0x178] sm:$0x3] %v2847_v2  ;;  %1621 = vmatpush.msrb.mxu1 %v1381_v1  ;;  %1735 = vmatpush.msrb.mxu2 %v1396_v3  ;;  %v3260_v48 = vmax.f32 %v407_v39, 0.0  ;;  %v327_v1 = vld [vmem:[%s2918_s12 + $0x20] sm:$0xff]  ;;  %v352_v3 = vld [vmem:[%s2918_s12 + $0xe8] sm:$0xff] }
  0x3d   : > { %317 = vst [vmem:[#allocation2 + $0x180] sm:$0xff] %v2847_v2  ;;  %1848 = vmatpush.msrb.mxu3 %v1412_v9  ;;  %1959 = vmatpush.msrb.mxu0 %v1430_v10  ;;  %v363_v9 = vmul.f32 %v2923_v6, %v327_v1  ;;  %v388_v10 = vmul.f32 %v2923_v6, %v352_v3  ;;  %v1468_v3 = vld [vmem:[%s3931_s1 + $0x378] sm:$0xff] }
  0x3e   : > { %318 = vst [vmem:[#allocation2 + $0x188] sm:$0xff] %v2847_v2  ;;  %1622 = vmatpush.msrb.mxu1 %v1380_v15 }
  0x3f   : > { %319 = vst [vmem:[#allocation2 + $0x190] sm:$0x3] %v2847_v2  ;;  %1849 = vmatpush.msrb.mxu3 %v1411_v20  ;;  %v1392_v20 = vld [vmem:[%s3931_s1 + $0x118] sm:$0xff]  ;;  %v424_v22 = vadd.f32 %v2930_v8, %v388_v10 }
  0x40   : > { %320 = vst [vmem:[#allocation2 + $0x198] sm:$0xff] %v2847_v2  ;;  %1623 = vmatpush.msrb.mxu1 %v1379_v41  ;;  %v1452_v10 = vld [vmem:[%s3931_s1 + $0x2f8] sm:$0xff] }
  0x41   : > { %321 = vst [vmem:[#allocation2 + $0x1a0] sm:$0xff] %v2847_v2  ;;  %1850 = vmatpush.msrb.mxu3 %v1410_v46  ;;  %v1375_v46 = vld [vmem:[%s3931_s1 + $0x90] sm:$0xff] }
  0x42   : > { %322 = vst [vmem:[#allocation2 + $0x1a8] sm:$0x3] %v2847_v2  ;;  %v369_v2 = vmul.f32 %v2923_v6, %v333_v16  ;;  %v1395_v16 = vld [vmem:[%s3931_s1 + $0x130] sm:$0xff]  ;;  %1624 = vmatpush.msrb.mxu1 %v1378_v51  ;;  %v1374_v51 = vld [vmem:[%s3931_s1 + $0x88] sm:$0xff] }
  0x43   : > { %474 = vst [vmem:[#allocation2 + $0xc1] sm:$0xff] %v441_v5  ;;  %1736 = vmatpush.msrb.mxu2 %v1395_v16 }
  0x44   : > { %482 = vst [vmem:[#allocation2 + $0x121] sm:$0xff] %v449_v12  ;;  %v405_v50 = vadd.f32 %v2930_v8, %v369_v2  ;;  %v414_v12 = vadd.f32 %v2930_v8, %v378_v55  ;;  %v1409_v55 = vld [vmem:[%s3931_s1 + $0x1a0] sm:$0xff] }
  0x45   : > { %467 = vst [vmem:[#allocation2 + $0x69] sm:$0xff] %v3117_v17  ;;  %1737 = vmatpush.msrb.mxu2 %v1394_v42  ;;  %1851 = vmatpush.msrb.mxu3 %v1409_v55  ;;  %v1389_v55 = vld [vmem:[%s3931_s1 + $0x100] sm:$0xff] }
  0x46   : > { %475 = vst [vmem:[#allocation2 + $0xc9] sm:$0xff] %v442_v21  ;;  %v3182_v0 = vmax.f32 %v405_v50, 0.0  ;;  %v1429_v21 = vld [vmem:[%s3931_s1 + $0x240] sm:$0xff]  ;;  %v3227_v28 = vmax.f32 %v414_v12, 0.0 }
  0x47   : > { %483 = vst [vmem:[#allocation2 + $0x129] sm:$0xff] %v450_v26  ;;  %v343_v26 = vld [vmem:[%s2918_s12 + $0xa0] sm:$0xff]  ;;  %1960 = vmatpush.msrb.mxu0 %v1429_v21  ;;  %1738 = vmatpush.msrb.mxu2 %v1393_v52  ;;  %v399_v21 = vadd.f32 %v2930_v8, %v363_v9  ;;  %v1484_v9 = vld [vmem:[%s3931_s1 + $0x3f8] sm:$0xff] }
  0x48   : > { %468 = vst [vmem:[#allocation2 + $0x79] sm:$0xff] %v3135_v31  ;;  %v379_v2 = vmul.f32 %v2923_v6, %v343_v26  ;;  %v1426_v26 = vld [vmem:[%s3931_s1 + $0x228] sm:$0xff]  ;;  %1852 = vmatpush.msrb.mxu3 %v1408_v25 }
  0x49   : > { %476 = vst [vmem:[#allocation2 + $0xd9] sm:$0xff] %v443_v37  ;;  %1961 = vmatpush.msrb.mxu0 %v1428_v47  ;;  %v3327_v32 = vmax.f32 %v399_v21, 0.0  ;;  %1739 = vmatpush.msrb.mxu2 %v1392_v20  ;;  %v1390_v47 = vld [vmem:[%s3931_s1 + $0x108] sm:$0xff] }
  0x4a   : > { %v508_v59 = vld [vmem:[#allocation2 + $0xc0] sm:$0xff]  ;;  %484 = vst [vmem:[#allocation2 + $0x139] sm:$0xff] %v451_v43  ;;  %v415_v40 = vadd.f32 %v2930_v8, %v379_v2  ;;  %v398_v43 = vadd.f32 %v2930_v8, %v362_v35  ;;  %v1376_v2 = vld [vmem:[%s3931_s1 + $0x98] sm:$0xff]  ;;  %v1407_v35 = vld [vmem:[%s3931_s1 + $0x190] sm:$0xff] }
  0x4b   : > { %1565 = vmatmul.f32.vlgmr.msra.gmra.mxu2 %v508_v59  ;;  %v516_v63 = vld [vmem:[#allocation2 + $0x120] sm:$0xff]  ;;  %469 = vst [vmem:[#allocation2 + $0x81] sm:$0xff] %v3165_v49  ;;  %v336_v59 = vld [vmem:[%s2918_s12 + $0x68] sm:$0xff]  ;;  %1962 = vmatpush.msrb.mxu0 %v1427_v57 }
  0x4c   : > { %1589 = vmatmul.f32.vlgmr.msra.gmra.mxu3 %v516_v63  ;;  %v3191_v5 = vld [vmem:[#allocation2 + $0x68] sm:$0xff]  ;;  %477 = vst [vmem:[#allocation2 + $0xe1] sm:$0xff] %v3171_v53  ;;  %v3262_v50 = vmax.f32 %v415_v40, 0.0  ;;  %v3273_v54 = vmax.f32 %v398_v43, 0.0  ;;  %v372_v62 = vmul.f32 %v2923_v6, %v336_v59  ;;  %1740 = vmatpush.msrb.mxu2 %v1391_v30  ;;  %v1405_v57 = vld [vmem:[%s3931_s1 + $0x180] sm:$0xff] }
  0x4d   : > { %1544 = vmatmul.f32.gmra.mxu1 %v3191_v5  ;;  %460 = vst [vmem:[#allocation2 + $0x19] sm:$0xff] %v3175_v56  ;;  %v509_v27 = vld [vmem:[#allocation2 + $0xc8] sm:$0xff]  ;;  %1963 = vmatpush.msrb.mxu0 %v1426_v26  ;;  %v1373_v59 = vld [vmem:[%s3931_s1 + $0x80] sm:$0xff] }
  0x4e   : > { %485 = vst [vmem:[#allocation2 + $0x141] sm:$0xff] %v452_v60  ;;  %v517_v33 = vld [vmem:[#allocation2 + $0x128] sm:$0xff]  ;;  %v408_v16 = vadd.f32 %v2930_v8, %v372_v62  ;;  %1853 = vmatpush.msrb.mxu3 %v1407_v35  ;;  %1741 = vmatpush.msrb.mxu2 %v1390_v47  ;;  %v1483_v35 = vld [vmem:[%s3931_s1 + $0x3f0] sm:$0xff] }
  0x4f   : > { %470 = vst [vmem:[#allocation2 + $0x91] sm:$0xff] %v3182_v0  ;;  %v3238_v37 = vld [vmem:[#allocation2 + $0x78] sm:$0xff]  ;;  %v344_v60 = vld [vmem:[%s2918_s12 + $0xa8] sm:$0xff]  ;;  %1964 = vmatpush.msrb.mxu0 %v1425_v36  ;;  %v1451_v36 = vld [vmem:[%s3931_s1 + $0x2f0] sm:$0xff] }
  0x50   : > { %478 = vst [vmem:[#allocation2 + $0xf1] sm:$0xff] %v3194_v7  ;;  %v3284_v61 = vld [vmem:[#allocation2 + $0xd8] sm:$0xff]  ;;  %v380_v63 = vmul.f32 %v2923_v6, %v344_v60  ;;  %1742 = vmatpush.msrb.mxu2 %v1389_v55  ;;  %v557_v47 = vld [vmem:[#allocation2 + $0x9] sm:$0xff] }
  0x51   : > { %461 = vst [vmem:[#allocation2 + $0x21] sm:$0xff] %v3205_v14  ;;  %v518_v4 = vld [vmem:[#allocation2 + $0x138] sm:$0xff]  ;;  %v621_v55 = vld [vmem:[#allocation2 + $0xa] sm:$0xff] }
  0x52   : > { %486 = vst [vmem:[#allocation2 + $0x151] sm:$0xff] %v453_v19  ;;  %v3294_v12 = vld [vmem:[#allocation2 + $0x80] sm:$0xff]  ;;  %v416_v18 = vadd.f32 %v2930_v8, %v380_v63  ;;  %2179 = vmatpush.msra.mxu2 %v1468_v3 }
  0x53   : > { %1568 = vmatmul.f32.gmra.mxu2 %v509_v27  ;;  %471 = vst [vmem:[#allocation2 + $0x99] sm:$0xff] %v3222_v24  ;;  %v1377_v19 = vld [vmem:[%s3931_s1 + $0xa0] sm:$0xff]  ;;  %v3315_v27 = vmax.f32 %v408_v16, 0.0 }
  0x54   : > { %1592 = vmatmul.f32.gmra.mxu3 %v517_v33  ;;  %v3251_v45 = vld [vmem:[#allocation2 + $0x18] sm:$0xff]  ;;  %479 = vst [vmem:[#allocation2 + $0xf9] sm:$0xff] %v3227_v28  ;;  %1625 = vmatpush.msrb.mxu1 %v1377_v19  ;;  %v3317_v29 = vmax.f32 %v416_v18, 0.0  ;;  %v456_v33 = vmax.f32 %v424_v22, 0.0  ;;  %v3338_v39 = vld [vmem:[#allocation2 + $0xe0] sm:$0xff] }
  0x55   : > { %1547 = vmatmul.f32.gmra.mxu1 %v3238_v37  ;;  %1523 = vmatmul.f32.gmra.mxu0 %v3251_v45  ;;  %462 = vst [vmem:[#allocation2 + $0x31] sm:$0xff] %v3234_v34  ;;  %v519_v41 = vld [vmem:[#allocation2 + $0x140] sm:$0xff]  ;;  %v1500_v22 = vld [vmem:[%s3931_s1 + $0x478] sm:$0xff] }
  0x56   : > { %487 = vst [vmem:[#allocation2 + $0x159] sm:$0xff] %v454_v38  ;;  %1626 = vmatpush.msrb.mxu1 %v1376_v2  ;;  %v328_v38 = vld [vmem:[%s2918_s12 + $0x28] sm:$0xff]  ;;  %v3342_v42 = vld [vmem:[#allocation2 + $0x90] sm:$0xff]  ;;  %v1421_v16 = vld [vmem:[%s3931_s1 + $0x200] sm:$0xff] }
  0x57   : > { %472 = vst [vmem:[#allocation2 + $0xa9] sm:$0xff] %v3260_v48  ;;  %v364_v40 = vmul.f32 %v2923_v6, %v328_v38  ;;  %v1406_v6 = vld [vmem:[%s3931_s1 + $0x188] sm:$0xff]  ;;  %v3380_v60 = vld [vmem:[#allocation2 + $0xf0] sm:$0xff] }
  0x58   : > { %480 = vst [vmem:[#allocation2 + $0x109] sm:$0xff] %v3262_v50  ;;  %v3296_v15 = vld [vmem:[#allocation2 + $0x20] sm:$0xff]  ;;  %1627 = vmatpush.msrb.mxu1 %v1375_v46  ;;  %1854 = vmatpush.msrb.mxu3 %v1406_v6  ;;  %v1466_v6 = vld [vmem:[%s3931_s1 + $0x368] sm:$0xff] }
  0x59   : > { %463 = vst [vmem:[#allocation2 + $0x39] sm:$0xff] %v3273_v54  ;;  %v400_v44 = vadd.f32 %v2930_v8, %v364_v40  ;;  %v1424_v8 = vld [vmem:[%s3931_s1 + $0x218] sm:$0xff]  ;;  %v520_v62 = vld [vmem:[#allocation2 + $0x150] sm:$0xff]  ;;  %v620_v46 = vld [vmem:[#allocation2 + $0x2] sm:$0xff] }
  0x5a   : > { %488 = vst [vmem:[#allocation2 + $0x169] sm:$0xff] %v455_v58  ;;  %v1423_v58 = vld [vmem:[%s3931_s1 + $0x210] sm:$0xff]  ;;  %1965 = vmatpush.msrb.mxu0 %v1424_v8  ;;  %1628 = vmatpush.msrb.mxu1 %v1374_v51  ;;  %v3382_v63 = vld [vmem:[#allocation2 + $0x98] sm:$0xff]  ;;  %v1482_v8 = vld [vmem:[%s3931_s1 + $0x3e8] sm:$0xff] }
  0x5b   : > { %1571 = vmatmul.f32.gmra.mxu2 %v3284_v61  ;;  %473 = vst [vmem:[#allocation2 + $0xb1] sm:$0xff] %v3315_v27  ;;  %v3363_v52 = vmax.f32 %v400_v44, 0.0  ;;  %1855 = vmatpush.msrb.mxu3 %v1405_v57  ;;  %v3404_v18 = vld [vmem:[#allocation2 + $0xf8] sm:$0xff]  ;;  %v1499_v44 = vld [vmem:[%s3931_s1 + $0x470] sm:$0xff]  ;;  %v1450_v51 = vld [vmem:[%s3931_s1 + $0x2e8] sm:$0xff] }
  0x5c   : > { %1595 = vmatmul.f32.gmra.mxu3 %v518_v4  ;;  %481 = vst [vmem:[#allocation2 + $0x111] sm:$0xff] %v3317_v29  ;;  %v3344_v43 = vld [vmem:[#allocation2 + $0x30] sm:$0xff]  ;;  %1966 = vmatpush.msrb.mxu0 %v1423_v58  ;;  %v1422_v4 = vld [vmem:[%s3931_s1 + $0x208] sm:$0xff]  ;;  %v622_v57 = vld [vmem:[#allocation2 + $0x1a] sm:$0xff] }
  0x5d   : > { %1550 = vmatmul.f32.gmra.mxu1 %v3294_v12  ;;  %1526 = vmatmul.f32.gmra.mxu0 %v3296_v15  ;;  %464 = vst [vmem:[#allocation2 + $0x49] sm:$0xff] %v3327_v32  ;;  %v521_v19 = vld [vmem:[#allocation2 + $0x158] sm:$0xff]  ;;  %v1465_v58 = vld [vmem:[%s3931_s1 + $0x360] sm:$0xff] }
  0x5e   : > { %489 = vst [vmem:[#allocation2 + $0x171] sm:$0xff] %v456_v33  ;;  %1629 = vmatpush.msrb.mxu1 %v1373_v59  ;;  %1967 = vmatpush.msrb.mxu0 %v1422_v4  ;;  %v3406_v20 = vld [vmem:[#allocation2 + $0xa8] sm:$0xff]  ;;  %v1467_v33 = vld [vmem:[%s3931_s1 + $0x370] sm:$0xff]  ;;  %v1496_v4 = vld [vmem:[%s3931_s1 + $0x458] sm:$0xff] }
  0x5f   : > { %465 = vst [vmem:[#allocation2 + $0x51] sm:$0xff] %v3363_v52  ;;  %2292 = vmatpush.msra.mxu3 %v1484_v9  ;;  %v3416_v25 = vld [vmem:[#allocation2 + $0x108] sm:$0xff]  ;;  %2180 = vmatpush.msra.mxu2 %v1467_v33  ;;  %v1463_v9 = vld [vmem:[%s3931_s1 + $0x350] sm:$0xff] }
  0x60   : > { %v3384_v1 = vld [vmem:[#allocation2 + $0x38] sm:$0xff]  ;;  %2066 = vmatpush.msra.mxu1 %v1452_v10  ;;  %1968 = vmatpush.msrb.mxu0 %v1421_v16  ;;  %v623_v59 = vld [vmem:[#allocation2 + $0x22] sm:$0xff]  ;;  %v1479_v10 = vld [vmem:[%s3931_s1 + $0x3d0] sm:$0xff] }
  0x61   : > { %v522_v26 = vld [vmem:[#allocation2 + $0x168] sm:$0xff]  ;;  %2293 = vmatpush.msra.mxu3 %v1483_v35  ;;  %2181 = vmatpush.msra.mxu2 %v1466_v6  ;;  %v625_v3 = vld [vmem:[#allocation2 + $0x3a] sm:$0xff] }
  0x62   : > { %2405 = vmatpush.msra.mxu0 %v1500_v22  ;;  %v3418_v2 = vld [vmem:[#allocation2 + $0xb0] sm:$0xff]  ;;  %2067 = vmatpush.msra.mxu1 %v1451_v36  ;;  %v1446_v33 = vld [vmem:[%s3931_s1 + $0x2c8] sm:$0xff] }
  0x63   : > { %1574 = vmatmul.f32.gmra.mxu2 %v3338_v39  ;;  %v3434_v38 = vld [vmem:[#allocation2 + $0x110] sm:$0xff]  ;;  %2294 = vmatpush.msra.mxu3 %v1482_v8 }
  0x64   : > { %1598 = vmatmul.f32.gmra.mxu3 %v519_v41  ;;  %v3408_v21 = vld [vmem:[#allocation2 + $0x48] sm:$0xff]  ;;  %2406 = vmatpush.msra.mxu0 %v1499_v44 }
  0x65   : > { %1553 = vmatmul.f32.gmra.mxu1 %v3342_v42  ;;  %1529 = vmatmul.f32.gmra.mxu0 %v3344_v43  ;;  %v523_v40 = vld [vmem:[#allocation2 + $0x170] sm:$0xff]  ;;  %v556_v41 = vld [vmem:[#allocation2 + $0x1] sm:$0xff] }
  0x66   : > { %v3420_v30 = vld [vmem:[#allocation2 + $0x50] sm:$0xff]  ;;  %2068 = vmatpush.msra.mxu1 %v1450_v51  ;;  %2182 = vmatpush.msra.mxu2 %v1465_v58  ;;  %v1445_v51 = vld [vmem:[%s3931_s1 + $0x2c0] sm:$0xff] }
  0x6b   : > { %1577 = vmatmul.f32.gmra.mxu2 %v3380_v60 }
  0x6c   : > { %1601 = vmatmul.f32.gmra.mxu3 %v520_v62  ;;  %v624_v62 = vld [vmem:[#allocation2 + $0x32] sm:$0xff] }
  0x6d   : > { %1556 = vmatmul.f32.gmra.mxu1 %v3382_v63  ;;  %1532 = vmatmul.f32.gmra.mxu0 %v3384_v1 }
  0x73   : > { %1580 = vmatmul.f32.gmra.mxu2 %v3404_v18 }
  0x74   : > { %1604 = vmatmul.f32.gmra.mxu3 %v521_v19  ;;  %v628_v19 = vld [vmem:[#allocation2 + $0x62] sm:$0xff] }
  0x75   : > { %1559 = vmatmul.f32.gmra.mxu1 %v3406_v20  ;;  %1535 = vmatmul.f32.gmra.mxu0 %v3408_v21 }
  0x7b   : > { %1583 = vmatmul.f32.gmra.mxu2 %v3416_v25 }
  0x7c   : > { %1607 = vmatmul.f32.gmra.mxu3 %v522_v26  ;;  %v1462_v26 = vld [vmem:[%s3931_s1 + $0x348] sm:$0xff] }
  0x7d   : > { %1562 = vmatmul.f32.gmra.mxu1 %v3418_v2  ;;  %1538 = vmatmul.f32.gmra.mxu0 %v3420_v30 }
  0x83   : > { %1586 = vmatmul.f32.gmra.mxu2 %v3434_v38 }
  0x84   : > { %1610 = vmatmul.f32.gmra.mxu3 %v523_v40 }
  0x85   : > { %1630 = vmatmul.f32.vlgmr.msrb.gmra.mxu1 %v556_v41  ;;  %1969 = vmatmul.f32.vlgmr.msrb.gmra.mxu0 %v3175_v56 }
  0x8b   : > { %1743 = vmatmul.f32.vlgmr.msrb.gmra.mxu2 %v620_v46  ;;  %v630_v46 = vld [vmem:[#allocation2 + $0x7a] sm:$0xff] }
  0x8c   : > { %1856 = vmatmul.f32.vlgmr.msrb.gmra.mxu3 %v3251_v45  ;;  %v1498_v45 = vld [vmem:[%s3931_s1 + $0x468] sm:$0xff] }
  0x8d   : > { %1633 = vmatmul.f32.gmra.mxu1 %v557_v47  ;;  %1972 = vmatmul.f32.gmra.mxu0 %v3205_v14 }
  0x8e   : > { %2407 = vmatpush.msra.mxu0 %v1498_v45 }
  0x93   : > { %1746 = vmatmul.f32.gmra.mxu2 %v621_v55 }
  0x94   : > { %1859 = vmatmul.f32.gmra.mxu3 %v3296_v15  ;;  %v1481_v15 = vld [vmem:[%s3931_s1 + $0x3e0] sm:$0xff] }
  0x95   : > { %1636 = vmatmul.f32.gmra.mxu1 %v3175_v56  ;;  %1975 = vmatmul.f32.gmra.mxu0 %v3234_v34  ;;  %v1449_v56 = vld [vmem:[%s3931_s1 + $0x2e0] sm:$0xff] }
  0x96   : > { %2295 = vmatpush.msra.mxu3 %v1481_v15  ;;  %2069 = vmatpush.msra.mxu1 %v1449_v56  ;;  %v632_v56 = vld [vmem:[#allocation2 + $0x92] sm:$0xff] }
  0x9b   : > { %1749 = vmatmul.f32.gmra.mxu2 %v622_v57 }
  0x9c   : > { %1862 = vmatmul.f32.gmra.mxu3 %v3344_v43  ;;  %v1497_v43 = vld [vmem:[%s3931_s1 + $0x460] sm:$0xff] }
  0x9d   : > { %1639 = vmatmul.f32.gmra.mxu1 %v3205_v14  ;;  %1978 = vmatmul.f32.gmra.mxu0 %v3273_v54  ;;  %v1464_v14 = vld [vmem:[%s3931_s1 + $0x358] sm:$0xff] }
  0x9e   : > { %2408 = vmatpush.msra.mxu0 %v1497_v43  ;;  %2183 = vmatpush.msra.mxu2 %v1464_v14 }
  0xa0   : > { %2409 = vmatpush.msra.mxu0 %v1496_v4  ;;  %2184 = vmatpush.msra.mxu2 %v1463_v9  ;;  %v762_v4 = vld [vmem:[#allocation2 + $0xc1] sm:$0xff] }
  0xa2   : > { %2185 = vmatpush.msra.mxu2 %v1462_v26 }
  0xa3   : > { %1752 = vmatmul.f32.gmra.mxu2 %v623_v59 }
  0xa4   : > { %1865 = vmatmul.f32.gmra.mxu3 %v3384_v1  ;;  %v1480_v1 = vld [vmem:[%s3931_s1 + $0x3d8] sm:$0xff] }
  0xa5   : > { %1642 = vmatmul.f32.gmra.mxu1 %v3234_v34  ;;  %1981 = vmatmul.f32.gmra.mxu0 %v3327_v32  ;;  %v1448_v34 = vld [vmem:[%s3931_s1 + $0x2d8] sm:$0xff] }
  0xa6   : > { %2296 = vmatpush.msra.mxu3 %v1480_v1  ;;  %2070 = vmatpush.msra.mxu1 %v1448_v34  ;;  %v1444_v1 = vld [vmem:[%s3931_s1 + $0x2b8] sm:$0xff] }
  0xa7   : > { %v633_v34 = vld [vmem:[#allocation2 + $0x9a] sm:$0xff] }
  0xa8   : > { %2297 = vmatpush.msra.mxu3 %v1479_v10  ;;  %v3509_v16 = vpop.f32.mrf.mxu1  ;;  %v634_v10 = vld [vmem:[#allocation2 + $0xaa] sm:$0xff] }
  0xab   : > { %1755 = vmatmul.f32.gmra.mxu2 %v624_v62  ;;  %v3504_v11 = vpop.f32.mrf.mxu0 }
  0xac   : > { %1868 = vmatmul.f32.gmra.mxu3 %v3408_v21 }
  0xad   : > { %1645 = vmatmul.f32.gmra.mxu1 %v3273_v54  ;;  %1984 = vmatmul.f32.gmra.mxu0 %v3363_v52  ;;  %v626_v54 = vld [vmem:[#allocation2 + $0x4a] sm:$0xff] }
  0xb3   : > { %1758 = vmatmul.f32.gmra.mxu2 %v625_v3  ;;  %v3516_v21 = vpop.f32.mrf.mxu0 }
  0xb4   : > { %1871 = vmatmul.f32.gmra.mxu3 %v3420_v30 }
  0xb5   : > { %1648 = vmatmul.f32.gmra.mxu1 %v3327_v32  ;;  %1987 = vmatmul.f32.gmra.mxu0 %v433_v13  ;;  %v1447_v13 = vld [vmem:[%s3931_s1 + $0x2d0] sm:$0xff] }
  0xb6   : > { %2071 = vmatpush.msra.mxu1 %v1447_v13  ;;  %v627_v32 = vld [vmem:[#allocation2 + $0x52] sm:$0xff]  ;;  %v698_v13 = vld [vmem:[#allocation2 + $0xc0] sm:$0xff] }
  0xb8   : > { %2072 = vmatpush.msra.mxu1 %v1446_v33  ;;  %v635_v33 = vld [vmem:[#allocation2 + $0xb2] sm:$0xff] }
  0xba   : > { %2073 = vmatpush.msra.mxu1 %v1445_v51 }
  0xbb   : > { %1761 = vmatmul.f32.gmra.mxu2 %v626_v54 }
  0xbc   : > { %1874 = vmatmul.f32.gmra.mxu3 %v2994_v23  ;;  %v1495_v23 = vld [vmem:[%s3931_s1 + $0x450] sm:$0xff]  ;;  %2074 = vmatpush.msra.mxu1 %v1444_v1 }
  0xbd   : > { %1651 = vmatmul.f32.gmra.mxu1 %v3363_v52  ;;  %1990 = vmatmul.f32.gmra.mxu0 %v3117_v17  ;;  %v2835_v52 = vld [vmem:[#allocation2 + $0x61] sm:$0xff] }
  0xbe   : > { %2410 = vmatpush.msra.mxu0 %v1495_v23 }
  0xc3   : > { %1764 = vmatmul.f32.gmra.mxu2 %v627_v32 }
  0xc4   : > { %1877 = vmatmul.f32.gmra.mxu3 %v3191_v5  ;;  %v1478_v5 = vld [vmem:[%s3931_s1 + $0x3c8] sm:$0xff] }
  0xc5   : > { %1654 = vmatmul.f32.gmra.mxu1 %v2835_v52  ;;  %1993 = vmatmul.f32.gmra.mxu0 %v3135_v31  ;;  %v763_v52 = vld [vmem:[#allocation2 + $0xc9] sm:$0xff] }
  0xc6   : > { %2298 = vmatpush.msra.mxu3 %v1478_v5  ;;  %v1443_v5 = vld [vmem:[%s3931_s1 + $0x2b0] sm:$0xff] }
  0xc7   : > { %2075 = vmatpush.msra.mxu1 %v1443_v5 }
  0xca   : > { %v3518_v22 = vpop.f32.mrf.mxu1 }
  0xcb   : > { %1767 = vmatmul.f32.gmra.mxu2 %v628_v19 }
  0xcc   : > { %1880 = vmatmul.f32.gmra.mxu3 %v3238_v37  ;;  %v629_v37 = vld [vmem:[#allocation2 + $0x6a] sm:$0xff] }
  0xcd   : > { %1657 = vmatmul.f32.gmra.mxu1 %v3117_v17  ;;  %1996 = vmatmul.f32.gmra.mxu0 %v3165_v49  ;;  %v1494_v17 = vld [vmem:[%s3931_s1 + $0x448] sm:$0xff] }
  0xce   : > { %v3529_v30 = vpop.f32.mrf.mxu2  ;;  %2411 = vmatpush.msra.mxu0 %v1494_v17 }
  0xcf   : > { %v3534_v35 = vpop.f32.mrf.mxu3 }
  0xd2   : > { %v3536_v36 = vpop.f32.mrf.mxu1  ;;  %v3538_v40 = vpop.f32.mrf.mxu0 }
  0xd3   : > { %1770 = vmatmul.f32.gmra.mxu2 %v629_v37  ;;  %v699_v37 = vld [vmem:[#allocation2 + $0xc8] sm:$0xff] }
  0xd4   : > { %1883 = vmatmul.f32.gmra.mxu3 %v3294_v12  ;;  %v1461_v12 = vld [vmem:[%s3931_s1 + $0x340] sm:$0xff] }
  0xd5   : > { %1660 = vmatmul.f32.gmra.mxu1 %v3135_v31  ;;  %1999 = vmatmul.f32.gmra.mxu0 %v3182_v0  ;;  %v1477_v31 = vld [vmem:[%s3931_s1 + $0x3c0] sm:$0xff] }
  0xd6   : > { %v3546_v41 = vpop.f32.mrf.mxu2  ;;  %2186 = vmatpush.msra.mxu2 %v1461_v12  ;;  %2299 = vmatpush.msra.mxu3 %v1477_v31  ;;  %v764_v12 = vld [vmem:[#allocation2 + $0xd9] sm:$0xff] }
  0xd7   : > { %v3548_v44 = vpop.f32.mrf.mxu3 }
  0xda   : > { %v3550_v47 = vpop.f32.mrf.mxu1  ;;  %v3552_v6 = vpop.f32.mrf.mxu0 }
  0xdb   : > { %1773 = vmatmul.f32.gmra.mxu2 %v630_v46 }
  0xdc   : > { %1886 = vmatmul.f32.gmra.mxu3 %v3342_v42  ;;  %v631_v42 = vld [vmem:[#allocation2 + $0x82] sm:$0xff] }
  0xdd   : > { %1663 = vmatmul.f32.gmra.mxu1 %v3165_v49  ;;  %2002 = vmatmul.f32.gmra.mxu0 %v3222_v24  ;;  %v1493_v49 = vld [vmem:[%s3931_s1 + $0x440] sm:$0xff] }
  0xde   : > { %v3563_v8 = vpop.f32.mrf.mxu2  ;;  %2412 = vmatpush.msra.mxu0 %v1493_v49 }
  0xdf   : > { %v3568_v55 = vpop.f32.mrf.mxu3 }
  0xe2   : > { %v3570_v45 = vpop.f32.mrf.mxu1  ;;  %v3572_v57 = vpop.f32.mrf.mxu0 }
  0xe3   : > { %1776 = vmatmul.f32.gmra.mxu2 %v631_v42  ;;  %v636_v42 = vld [vmem:[#allocation2 + $0xc2] sm:$0xff] }
  0xe4   : > { %1889 = vmatmul.f32.gmra.mxu3 %v3382_v63  ;;  %v1460_v63 = vld [vmem:[%s3931_s1 + $0x338] sm:$0xff] }
  0xe5   : > { %1666 = vmatmul.f32.gmra.mxu1 %v3182_v0  ;;  %2005 = vmatmul.f32.gmra.mxu0 %v3260_v48  ;;  %v1476_v0 = vld [vmem:[%s3931_s1 + $0x3b8] sm:$0xff] }
  0xe6   : > { %v3580_v58 = vpop.f32.mrf.mxu2  ;;  %2187 = vmatpush.msra.mxu2 %v1460_v63  ;;  %2300 = vmatpush.msra.mxu3 %v1476_v0  ;;  %v1458_v63 = vld [vmem:[%s3931_s1 + $0x328] sm:$0xff] }
  0xe7   : > { %v3582_v15 = vpop.f32.mrf.mxu3  ;;  %v1474_v0 = vld [vmem:[%s3931_s1 + $0x3a8] sm:$0xff] }
  0xea   : > { %v3584_v59 = vpop.f32.mrf.mxu1  ;;  %v3586_v43 = vpop.f32.mrf.mxu0 }
  0xeb   : > { %1779 = vmatmul.f32.gmra.mxu2 %v632_v56 }
  0xec   : > { %1892 = vmatmul.f32.gmra.mxu3 %v3406_v20 }
  0xed   : > { %1669 = vmatmul.f32.gmra.mxu1 %v3222_v24  ;;  %2008 = vmatmul.f32.gmra.mxu0 %v3315_v27  ;;  %v1492_v24 = vld [vmem:[%s3931_s1 + $0x438] sm:$0xff] }
  0xee   : > { %v3597_v62 = vpop.f32.mrf.mxu2  ;;  %2413 = vmatpush.msra.mxu0 %v1492_v24 }
  0xef   : > { %v3599_v14 = vpop.f32.mrf.mxu3 }
  0xf2   : > { %v3604_v20 = vpop.f32.mrf.mxu1  ;;  %v3606_v3 = vpop.f32.mrf.mxu0 }
  0xf3   : > { %1782 = vmatmul.f32.gmra.mxu2 %v633_v34 }
  0xf4   : > { %1895 = vmatmul.f32.gmra.mxu3 %v3418_v2  ;;  %v1459_v2 = vld [vmem:[%s3931_s1 + $0x330] sm:$0xff] }
  0xf5   : > { %1672 = vmatmul.f32.gmra.mxu1 %v3260_v48  ;;  %2011 = vmatmul.f32.gmra.mxu0 %v762_v4  ;;  %v1475_v48 = vld [vmem:[%s3931_s1 + $0x3b0] sm:$0xff] }
  0xf6   : > { %v3613_v54 = vpop.f32.mrf.mxu2  ;;  %2188 = vmatpush.msra.mxu2 %v1459_v2  ;;  %2301 = vmatpush.msra.mxu3 %v1475_v48 }
  0xf7   : > { %v3615_v9 = vpop.f32.mrf.mxu3 }
  0xf8   : > { %2189 = vmatpush.msra.mxu2 %v1458_v63  ;;  %2302 = vmatpush.msra.mxu3 %v1474_v0 }
  0xfa   : > { %v3617_v32 = vpop.f32.mrf.mxu1  ;;  %v3619_v23 = vpop.f32.mrf.mxu0 }
  0xfb   : > { %1785 = vmatmul.f32.gmra.mxu2 %v634_v10  ;;  %v1442_v10 = vld [vmem:[%s3931_s1 + $0x2a8] sm:$0xff] }
  0xfc   : > { %1898 = vmatmul.f32.gmra.mxu3 %v698_v13  ;;  %v637_v13 = vld [vmem:[#allocation2 + $0xca] sm:$0xff]  ;;  %2076 = vmatpush.msra.mxu1 %v1442_v10 }
  0xfd   : > { %1675 = vmatmul.f32.gmra.mxu1 %v3315_v27  ;;  %2014 = vmatmul.f32.gmra.mxu0 %v763_v52  ;;  %v1491_v27 = vld [vmem:[%s3931_s1 + $0x430] sm:$0xff] }
  0xfe   : > { %v3628_v19 = vpop.f32.mrf.mxu2  ;;  %2414 = vmatpush.msra.mxu0 %v1491_v27  ;;  %v638_v27 = vld [vmem:[#allocation2 + $0xda] sm:$0xff] }
  0xff   : > { %v3630_v26 = vpop.f32.mrf.mxu3 }
 0x102   : > { %v1631_v17 = vpop.f32.mrf.mxu1  ;;  %v1970_v46 = vpop.f32.mrf.mxu0 }
 0x103   : > { %1788 = vmatmul.f32.gmra.mxu2 %v635_v33  ;;  %v1632_v1 = vadd.f32 %v1631_v17, %v3504_v11  ;;  %v1490_v11 = vld [vmem:[%s3931_s1 + $0x428] sm:$0xff] }
 0x104   : > { %1901 = vmatmul.f32.gmra.mxu3 %v699_v37  ;;  %2415 = vmatpush.msra.mxu0 %v1490_v11 }
 0x105   : > { %1678 = vmatmul.f32.gmra.mxu1 %v762_v4  ;;  %2017 = vmatmul.f32.gmra.mxu0 %v764_v12 }
 0x106   : > { %v3638_v31 = vpop.f32.mrf.mxu2 }
 0x107   : > { %v3640_v51 = vpop.f32.mrf.mxu3 }
 0x10a   : > { %v1634_v49 = vpop.f32.mrf.mxu1  ;;  %v1973_v56 = vpop.f32.mrf.mxu0 }
 0x10b   : > { %1791 = vmatmul.f32.gmra.mxu2 %v636_v42 }
 0x10c   : > { %1904 = vmatmul.f32.gmra.mxu3 %v3284_v61 }
 0x10d   : > { %1681 = vmatmul.f32.gmra.mxu1 %v763_v52  ;;  %2020 = vmatmul.f32.gmra.mxu0 %v3171_v53  ;;  %v1635_v52 = vadd.f32 %v1634_v49, %v3516_v21  ;;  %v1473_v21 = vld [vmem:[%s3931_s1 + $0x3a0] sm:$0xff] }
 0x10e   : > { %v1744_v34 = vpop.f32.mrf.mxu2  ;;  %2303 = vmatpush.msra.mxu3 %v1473_v21 }
 0x10f   : > { %v1745_v4 = vadd.f32 %v1744_v34, %v1632_v1  ;;  %v1857_v24 = vpop.f32.mrf.mxu3  ;;  %v1441_v34 = vld [vmem:[%s3931_s1 + $0x2a0] sm:$0xff] }
 0x110   : > { %2077 = vmatpush.msra.mxu1 %v1441_v34 }
 0x111   : > { %v1858_v61 = vadd.f32 %v1857_v24, %v1745_v4 }
 0x112   : > { %v1637_v2 = vpop.f32.mrf.mxu1  ;;  %v1976_v48 = vpop.f32.mrf.mxu0 }
 0x113   : > { %v3654_v5 = vadd.f32 %v1970_v46, %v1858_v61  ;;  %1794 = vmatmul.f32.gmra.mxu2 %v637_v13 }
 0x114   : > { %1907 = vmatmul.f32.gmra.mxu3 %v3338_v39  ;;  %v1457_v39 = vld [vmem:[%s3931_s1 + $0x320] sm:$0xff] }
 0x115   : > { %1684 = vmatmul.f32.gmra.mxu1 %v764_v12  ;;  %2023 = vmatmul.f32.gmra.mxu0 %v3194_v7  ;;  %v1638_v12 = vadd.f32 %v1637_v2, %v3538_v40 }
 0x116   : > { %v1747_v33 = vpop.f32.mrf.mxu2  ;;  %2190 = vmatpush.msra.mxu2 %v1457_v39 }
 0x117   : > { %v1748_v37 = vadd.f32 %v1747_v33, %v1635_v52  ;;  %v1860_v17 = vpop.f32.mrf.mxu3  ;;  %v640_v52 = vld [vmem:[#allocation2 + $0xf2] sm:$0xff] }
 0x119   : > { %v1861_v42 = vadd.f32 %v1860_v17, %v1748_v37 }
 0x11a   : > { %v1640_v46 = vpop.f32.mrf.mxu1  ;;  %v1979_v63 = vpop.f32.mrf.mxu0 }
 0x11b   : > { %v3662_v0 = vadd.f32 %v1973_v56, %v1861_v42  ;;  %1797 = vmatmul.f32.gmra.mxu2 %v638_v27  ;;  %v1641_v40 = vadd.f32 %v1640_v46, %v3552_v6 }
 0x11c   : > { %1910 = vmatmul.f32.gmra.mxu3 %v3380_v60  ;;  %v639_v60 = vld [vmem:[#allocation2 + $0xe2] sm:$0xff] }
 0x11d   : > { %1687 = vmatmul.f32.gmra.mxu1 %v3171_v53  ;;  %2026 = vmatmul.f32.gmra.mxu0 %v3227_v28  ;;  %v1489_v53 = vld [vmem:[%s3931_s1 + $0x420] sm:$0xff] }
 0x11e   : > { %v1750_v49 = vpop.f32.mrf.mxu2  ;;  %2416 = vmatpush.msra.mxu0 %v1489_v53 }
 0x11f   : > { %v1751_v56 = vadd.f32 %v1750_v49, %v1638_v12  ;;  %v1863_v1 = vpop.f32.mrf.mxu3  ;;  %v770_v49 = vld [vmem:[#allocation2 + $0x121] sm:$0xff] }
 0x121   : > { %v1864_v4 = vadd.f32 %v1863_v1, %v1751_v56 }
 0x122   : > { %v1643_v24 = vpop.f32.mrf.mxu1  ;;  %v1982_v10 = vpop.f32.mrf.mxu0 }
 0x123   : > { %v3677_v13 = vadd.f32 %v1976_v48, %v1864_v4  ;;  %1800 = vmatmul.f32.gmra.mxu2 %v639_v60  ;;  %v1644_v6 = vadd.f32 %v1643_v24, %v3572_v57  ;;  %v642_v4 = vld [vmem:[#allocation2 + $0x10a] sm:$0xff] }
 0x124   : > { %1913 = vmatmul.f32.gmra.mxu3 %v3404_v18  ;;  %v1456_v18 = vld [vmem:[%s3931_s1 + $0x318] sm:$0xff] }
 0x125   : > { %1690 = vmatmul.f32.gmra.mxu1 %v3194_v7  ;;  %2029 = vmatmul.f32.gmra.mxu0 %v3262_v50  ;;  %v1472_v7 = vld [vmem:[%s3931_s1 + $0x398] sm:$0xff] }
 0x126   : > { %v1753_v61 = vpop.f32.mrf.mxu2  ;;  %2191 = vmatpush.msra.mxu2 %v1456_v18  ;;  %2304 = vmatpush.msra.mxu3 %v1472_v7  ;;  %v707_v7 = vld [vmem:[#allocation2 + $0x128] sm:$0xff] }
 0x127   : > { %v1754_v2 = vadd.f32 %v1753_v61, %v1641_v40  ;;  %v1866_v11 = vpop.f32.mrf.mxu3  ;;  %v771_v61 = vld [vmem:[#allocation2 + $0x129] sm:$0xff] }
 0x129   : > { %v1867_v48 = vadd.f32 %v1866_v11, %v1754_v2 }
 0x12a   : > { %v1646_v33 = vpop.f32.mrf.mxu1  ;;  %v1985_v37 = vpop.f32.mrf.mxu0 }
 0x12b   : > { %v3686_v17 = vadd.f32 %v1979_v63, %v1867_v48  ;;  %1803 = vmatmul.f32.gmra.mxu2 %v640_v52  ;;  %v1440_v63 = vld [vmem:[%s3931_s1 + $0x298] sm:$0xff]  ;;  %v1647_v57 = vadd.f32 %v1646_v33, %v3586_v43  ;;  %v1455_v43 = vld [vmem:[%s3931_s1 + $0x310] sm:$0xff] }
 0x12c   : > { %1916 = vmatmul.f32.gmra.mxu3 %v3416_v25  ;;  %v641_v25 = vld [vmem:[#allocation2 + $0xfa] sm:$0xff]  ;;  %2078 = vmatpush.msra.mxu1 %v1440_v63  ;;  %v1439_v33 = vld [vmem:[%s3931_s1 + $0x290] sm:$0xff] }
 0x12d   : > { %1693 = vmatmul.f32.gmra.mxu1 %v3227_v28  ;;  %2032 = vmatmul.f32.gmra.mxu0 %v3317_v29  ;;  %v1488_v28 = vld [vmem:[%s3931_s1 + $0x418] sm:$0xff] }
 0x12e   : > { %v1756_v27 = vpop.f32.mrf.mxu2  ;;  %2417 = vmatpush.msra.mxu0 %v1488_v28  ;;  %2192 = vmatpush.msra.mxu2 %v1455_v43  ;;  %v1438_v43 = vld [vmem:[%s3931_s1 + $0x288] sm:$0xff] }
 0x12f   : > { %v1757_v42 = vadd.f32 %v1756_v27, %v1644_v6  ;;  %v1869_v46 = vpop.f32.mrf.mxu3  ;;  %2079 = vmatpush.msra.mxu1 %v1439_v33 }
 0x131   : > { %v1870_v39 = vadd.f32 %v1869_v46, %v1757_v42  ;;  %v772_v42 = vld [vmem:[#allocation2 + $0x139] sm:$0xff]  ;;  %2080 = vmatpush.msra.mxu1 %v1438_v43 }
 0x132   : > { %v1649_v21 = vpop.f32.mrf.mxu1  ;;  %v1988_v12 = vpop.f32.mrf.mxu0 }
 0x133   : > { %v3701_v56 = vadd.f32 %v1982_v10, %v1870_v39  ;;  %1806 = vmatmul.f32.gmra.mxu2 %v641_v25  ;;  %v706_v10 = vld [vmem:[#allocation2 + $0x120] sm:$0xff]  ;;  %v1650_v2 = vadd.f32 %v1649_v21, %v3606_v3 }
 0x134   : > { %1919 = vmatmul.f32.gmra.mxu3 %v3434_v38  ;;  %v644_v21 = vld [vmem:[#allocation2 + $0x122] sm:$0xff] }
 0x135   : > { %1696 = vmatmul.f32.gmra.mxu1 %v3262_v50  ;;  %2035 = vmatmul.f32.gmra.mxu0 %v770_v49  ;;  %v1471_v50 = vld [vmem:[%s3931_s1 + $0x390] sm:$0xff] }
 0x136   : > { %v1759_v1 = vpop.f32.mrf.mxu2  ;;  %2305 = vmatpush.msra.mxu3 %v1471_v50  ;;  %v2836_v50 = vld [vmem:[%s3932_s2] ss:$0 sm:$0xff] }
 0x137   : > { %v1760_v34 = vadd.f32 %v1759_v1, %v1647_v57  ;;  %v1872_v60 = vpop.f32.mrf.mxu3  ;;  %v708_v57 = vld [vmem:[#allocation2 + $0x138] sm:$0xff] }
 0x139   : > { %v1873_v24 = vadd.f32 %v1872_v60, %v1760_v34  ;;  %v773_v34 = vld [vmem:[#allocation2 + $0x141] sm:$0xff] }
 0x13a   : > { %v1652_v53 = vpop.f32.mrf.mxu1  ;;  %v1991_v40 = vpop.f32.mrf.mxu0 }
 0x13b   : > { %v3709_v38 = vadd.f32 %v1985_v37, %v1873_v24  ;;  %1809 = vmatmul.f32.gmra.mxu2 %v642_v4  ;;  %v643_v37 = vld [vmem:[#allocation2 + $0x112] sm:$0xff]  ;;  %v1653_v3 = vadd.f32 %v1652_v53, %v3619_v23  ;;  %v1454_v23 = vld [vmem:[%s3931_s1 + $0x308] sm:$0xff] }
 0x13c   : > { %1922 = vmatmul.f32.gmra.mxu3 %v706_v10  ;;  %2193 = vmatpush.msra.mxu2 %v1454_v23  ;;  %v353_v10 = vld [vmem:[%s2918_s12 + $0xf0] sm:$0xff] }
 0x13d   : > { %1699 = vmatmul.f32.gmra.mxu1 %v3317_v29  ;;  %2038 = vmatmul.f32.gmra.mxu0 %v771_v61  ;;  %v1487_v29 = vld [vmem:[%s3931_s1 + $0x410] sm:$0xff] }
 0x13e   : > { %v1762_v11 = vpop.f32.mrf.mxu2  ;;  %2418 = vmatpush.msra.mxu0 %v1487_v29  ;;  %v1486_v29 = vld [vmem:[%s3931_s1 + $0x408] sm:$0xff]  ;;  %v710_v23 = vld [vmem:[#allocation2 + $0x150] sm:$0xff] }
 0x13f   : > { %v1763_v52 = vadd.f32 %v1762_v11, %v1650_v2  ;;  %v1875_v48 = vpop.f32.mrf.mxu3  ;;  %v389_v2 = vmul.f32 %v2836_v50, %v353_v10  ;;  %v645_v11 = vld [vmem:[#allocation2 + $0x12a] sm:$0xff]  ;;  %v775_v10 = vld [vmem:[#allocation2 + $0x159] sm:$0xff] }
 0x140   : > { %2419 = vmatpush.msra.mxu0 %v1486_v29 }
 0x141   : > { %v1876_v18 = vadd.f32 %v1875_v48, %v1763_v52 }
 0x142   : > { %v1655_v6 = vpop.f32.mrf.mxu1  ;;  %v1994_v27 = vpop.f32.mrf.mxu0 }
 0x143   : > { %v3722_v46 = vadd.f32 %v1988_v12, %v1876_v18  ;;  %1812 = vmatmul.f32.gmra.mxu2 %v643_v37  ;;  %v1656_v4 = vadd.f32 %v1655_v6, %v3509_v16  ;;  %v709_v16 = vld [vmem:[#allocation2 + $0x140] sm:$0xff]  ;;  %v774_v18 = vld [vmem:[#allocation2 + $0x151] sm:$0xff] }
 0x144   : > { %1925 = vmatmul.f32.gmra.mxu3 %v707_v7 }
 0x145   : > { %1702 = vmatmul.f32.gmra.mxu1 %v770_v49  ;;  %2041 = vmatmul.f32.gmra.mxu0 %v772_v42  ;;  %v1470_v49 = vld [vmem:[%s3931_s1 + $0x388] sm:$0xff] }
 0x146   : > { %v1765_v63 = vpop.f32.mrf.mxu2  ;;  %2306 = vmatpush.msra.mxu3 %v1470_v49 }
 0x147   : > { %v1766_v25 = vadd.f32 %v1765_v63, %v1653_v3  ;;  %v1878_v39 = vpop.f32.mrf.mxu3 }
 0x149   : > { %v1879_v28 = vadd.f32 %v1878_v39, %v1766_v25  ;;  %v354_v25 = vld [vmem:[%s2918_s12 + $0xf8] sm:$0xff] }
 0x14a   : > { %v1658_v12 = vpop.f32.mrf.mxu1  ;;  %v1997_v1 = vpop.f32.mrf.mxu0 }
 0x14b   : > { %v3728_v60 = vadd.f32 %v1991_v40, %v1879_v28  ;;  %1815 = vmatmul.f32.gmra.mxu2 %v644_v21  ;;  %v1659_v3 = vadd.f32 %v1658_v12, %v3518_v22  ;;  %v390_v21 = vmul.f32 %v2836_v50, %v354_v25  ;;  %v646_v28 = vld [vmem:[#allocation2 + $0x13a] sm:$0xff] }
 0x14c   : > { %1928 = vmatmul.f32.gmra.mxu3 %v708_v57 }
 0x14d   : > { %1705 = vmatmul.f32.gmra.mxu1 %v771_v61  ;;  %2044 = vmatmul.f32.gmra.mxu0 %v773_v34  ;;  %v2837_v61 = vld [vmem:[%s3933_s3] ss:$0 sm:$0xff] }
 0x14e   : > { %v1768_v24 = vpop.f32.mrf.mxu2  ;;  %v3747_v48 = vadd.f32 %v2837_v61, %v389_v2  ;;  %v3759_v49 = vadd.f32 %v2837_v61, %v390_v21  ;;  %v1437_v2 = vld [vmem:[%s3931_s1 + $0x280] sm:$0xff] }
 0x14f   : > { %v1769_v53 = vadd.f32 %v1768_v24, %v1656_v4  ;;  %v1881_v40 = vpop.f32.mrf.mxu3  ;;  %2081 = vmatpush.msra.mxu1 %v1437_v2 }
 0x150   : > { %v457_v6 = vmax.f32 %v3747_v48, 0.0  ;;  %v458_v12 = vmax.f32 %v3759_v49, 0.0 }
 0x151   : > { %v1882_v52 = vadd.f32 %v1881_v40, %v1769_v53  ;;  %v1469_v53 = vld [vmem:[%s3931_s1 + $0x380] sm:$0xff] }
 0x152   : > { %v1661_v33 = vpop.f32.mrf.mxu1  ;;  %v2000_v37 = vpop.f32.mrf.mxu0  ;;  %490 = vst [vmem:[#allocation2 + $0x181] sm:$0xff] %v457_v6  ;;  %2307 = vmatpush.msra.mxu3 %v1469_v53 }
 0x153   : > { %v3749_v7 = vadd.f32 %v1994_v27, %v1882_v52  ;;  %1818 = vmatmul.f32.gmra.mxu2 %v645_v11  ;;  %v1662_v40 = vadd.f32 %v1661_v33, %v3536_v36  ;;  %491 = vst [vmem:[#allocation2 + $0x189] sm:$0xff] %v458_v12  ;;  %v647_v11 = vld [vmem:[#allocation2 + $0x142] sm:$0xff] }
 0x154   : > { %1931 = vmatmul.f32.gmra.mxu3 %v709_v16  ;;  %v711_v16 = vld [vmem:[#allocation2 + $0x158] sm:$0xff]  ;;  %v776_v36 = vld [vmem:[#allocation2 + $0x169] sm:$0xff]  ;;  %v1485_v33 = vld [vmem:[%s3931_s1 + $0x400] sm:$0xff] }
 0x155   : > { %1708 = vmatmul.f32.gmra.mxu1 %v772_v42  ;;  %2047 = vmatmul.f32.gmra.mxu0 %v774_v18  ;;  %v1453_v42 = vld [vmem:[%s3931_s1 + $0x300] sm:$0xff] }
 0x156   : > { %v1771_v63 = vpop.f32.mrf.mxu2  ;;  %2194 = vmatpush.msra.mxu2 %v1453_v42  ;;  %2420 = vmatpush.msra.mxu0 %v1485_v33 }
 0x157   : > { %v1772_v27 = vadd.f32 %v1771_v63, %v1659_v3  ;;  %v1884_v39 = vpop.f32.mrf.mxu3 }
 0x159   : > { %v1885_v57 = vadd.f32 %v1884_v39, %v1772_v27  ;;  %v648_v39 = vld [vmem:[#allocation2 + $0x152] sm:$0xff]  ;;  %v714_v33 = vld [vmem:[#allocation2 + $0x180] sm:$0xff] }
 0x15a   : > { %v1664_v4 = vpop.f32.mrf.mxu1  ;;  %v2003_v24 = vpop.f32.mrf.mxu0 }
 0x15b   : > { %v3761_v22 = vadd.f32 %v1997_v1, %v1885_v57  ;;  %1821 = vmatmul.f32.gmra.mxu2 %v646_v28  ;;  %v1665_v3 = vadd.f32 %v1664_v4, %v3550_v47  ;;  %v712_v28 = vld [vmem:[#allocation2 + $0x168] sm:$0xff] }
 0x15c   : > { %1934 = vmatmul.f32.gmra.mxu3 %v710_v23  ;;  %v777_v23 = vld [vmem:[#allocation2 + $0x171] sm:$0xff] }
 0x15d   : > { %1711 = vmatmul.f32.gmra.mxu1 %v773_v34  ;;  %2050 = vmatmul.f32.gmra.mxu0 %v775_v10 }
 0x15e   : > { %v1774_v1 = vpop.f32.mrf.mxu2 }
 0x15f   : > { %v1775_v43 = vadd.f32 %v1774_v1, %v1662_v40  ;;  %v1887_v50 = vpop.f32.mrf.mxu3  ;;  %v649_v40 = vld [vmem:[#allocation2 + $0x15a] sm:$0xff] }
 0x161   : > { %v1888_v52 = vadd.f32 %v1887_v50, %v1775_v43  ;;  %v713_v43 = vld [vmem:[#allocation2 + $0x170] sm:$0xff] }
 0x162   : > { %v1667_v61 = vpop.f32.mrf.mxu1  ;;  %v2006_v29 = vpop.f32.mrf.mxu0 }
 0x163   : > { %v3776_v34 = vadd.f32 %v2000_v37, %v1888_v52  ;;  %1824 = vmatmul.f32.gmra.mxu2 %v647_v11  ;;  %v1668_v53 = vadd.f32 %v1667_v61, %v3570_v45 }
 0x164   : > { %1937 = vmatmul.f32.gmra.mxu3 %v711_v16  ;;  %v650_v16 = vld [vmem:[#allocation2 + $0x16a] sm:$0xff] }
 0x165   : > { %1714 = vmatmul.f32.gmra.mxu1 %v774_v18  ;;  %2053 = vmatmul.f32.gmra.mxu0 %v776_v36 }
 0x166   : > { %v1777_v63 = vpop.f32.mrf.mxu2 }
 0x167   : > { %v1778_v25 = vadd.f32 %v1777_v63, %v1665_v3  ;;  %v1890_v27 = vpop.f32.mrf.mxu3 }
 0x169   : > { %v1891_v21 = vadd.f32 %v1890_v27, %v1778_v25 }
 0x16a   : > { %v1670_v57 = vpop.f32.mrf.mxu1  ;;  %v2009_v37 = vpop.f32.mrf.mxu0 }
 0x16b   : > { %v3782_v42 = vadd.f32 %v2003_v24, %v1891_v21  ;;  %1827 = vmatmul.f32.gmra.mxu2 %v648_v39  ;;  %v1671_v24 = vadd.f32 %v1670_v57, %v3584_v59  ;;  %v715_v39 = vld [vmem:[#allocation2 + $0x188] sm:$0xff] }
 0x16c   : > { %1940 = vmatmul.f32.gmra.mxu3 %v712_v28  ;;  %v812_v28 = vld [vmem:[#allocation2 + $0x1a] sm:$0xff] }
 0x16d   : > { %1717 = vmatmul.f32.gmra.mxu1 %v775_v10  ;;  %2056 = vmatmul.f32.gmra.mxu0 %v777_v23 }
 0x16e   : > { %v1780_v47 = vpop.f32.mrf.mxu2 }
 0x16f   : > { %v1781_v18 = vadd.f32 %v1780_v47, %v1668_v53  ;;  %v1893_v4 = vpop.f32.mrf.mxu3  ;;  %v1005_v53 = vld [vmem:[#allocation2 + $0x32] sm:$0xff] }
 0x170   : > { %v877_v47 = vld [vmem:[#allocation2 + $0x30] sm:$0xff] }
 0x171   : > { %v1894_v1 = vadd.f32 %v1893_v4, %v1781_v18  ;;  %v941_v4 = vld [vmem:[#allocation2 + $0x31] sm:$0xff] }
 0x172   : > { %v1673_v50 = vpop.f32.mrf.mxu1  ;;  %v2012_v2 = vpop.f32.mrf.mxu0 }
 0x173   : > { %v3785_v11 = vadd.f32 %v2006_v29, %v1894_v1  ;;  %1830 = vmatmul.f32.gmra.mxu2 %v649_v40  ;;  %v1674_v29 = vadd.f32 %v1673_v50, %v3604_v20  ;;  %v813_v1 = vld [vmem:[#allocation2 + $0x22] sm:$0xff]  ;;  %v1006_v50 = vld [vmem:[#allocation2 + $0x3a] sm:$0xff] }
 0x174   : > { %1943 = vmatmul.f32.gmra.mxu3 %v713_v43 }
 0x175   : > { %1720 = vmatmul.f32.gmra.mxu1 %v776_v36  ;;  %2059 = vmatmul.f32.gmra.mxu0 %v457_v6  ;;  %v651_v36 = vld [vmem:[#allocation2 + $0x172] sm:$0xff] }
 0x176   : > { %v1783_v45 = vpop.f32.mrf.mxu2 }
 0x177   : > { %v1784_v10 = vadd.f32 %v1783_v45, %v1671_v24  ;;  %v1896_v52 = vpop.f32.mrf.mxu3 }
 0x179   : > { %v1897_v61 = vadd.f32 %v1896_v52, %v1784_v10  ;;  %v878_v52 = vld [vmem:[#allocation2 + $0x38] sm:$0xff] }
 0x17a   : > { %v1676_v3 = vpop.f32.mrf.mxu1  ;;  %v2015_v63 = vpop.f32.mrf.mxu0 }
 0x17b   : > { %v3790_v25 = vadd.f32 %v2009_v37, %v1897_v61  ;;  %1833 = vmatmul.f32.gmra.mxu2 %v650_v16  ;;  %v1677_v20 = vadd.f32 %v1676_v3, %v3617_v32  ;;  %v942_v61 = vld [vmem:[#allocation2 + $0x39] sm:$0xff] }
 0x17c   : > { %1946 = vmatmul.f32.gmra.mxu3 %v714_v33 }
 0x17d   : > { %1723 = vmatmul.f32.gmra.mxu1 %v777_v23  ;;  %2062 = vmatmul.f32.gmra.mxu0 %v458_v12 }
 0x17e   : > { %v1786_v59 = vpop.f32.mrf.mxu2 }
 0x17f   : > { %v1787_v48 = vadd.f32 %v1786_v59, %v1674_v29  ;;  %v1899_v6 = vpop.f32.mrf.mxu3  ;;  %v1007_v29 = vld [vmem:[#allocation2 + $0x4a] sm:$0xff] }
 0x181   : > { %v1900_v27 = vadd.f32 %v1899_v6, %v1787_v48 }
 0x182   : > { %v1679_v21 = vpop.f32.mrf.mxu1  ;;  %v2018_v57 = vpop.f32.mrf.mxu0 }
 0x183   : > { %v3795_v37 = vadd.f32 %v2012_v2, %v1900_v27  ;;  %1836 = vmatmul.f32.gmra.mxu2 %v651_v36  ;;  %v1680_v2 = vadd.f32 %v1679_v21, %v3529_v30  ;;  %v879_v36 = vld [vmem:[#allocation2 + $0x48] sm:$0xff] }
 0x184   : > { %1949 = vmatmul.f32.gmra.mxu3 %v715_v39  ;;  %v943_v39 = vld [vmem:[#allocation2 + $0x49] sm:$0xff] }
 0x185   : > { %2082 = vmatmul.f32.vlgmr.msra.gmra.mxu1 %v812_v28  ;;  %2421 = vmatmul.f32.vlgmr.msra.gmra.mxu0 %v1005_v53 }
 0x186   : > { %v1789_v49 = vpop.f32.mrf.mxu2 }
 0x187   : > { %v1790_v12 = vadd.f32 %v1789_v49, %v1677_v20  ;;  %v1902_v23 = vpop.f32.mrf.mxu3  ;;  %v1008_v20 = vld [vmem:[#allocation2 + $0x52] sm:$0xff] }
 0x189   : > { %v1903_v18 = vadd.f32 %v1902_v23, %v1790_v12  ;;  %v880_v23 = vld [vmem:[#allocation2 + $0x50] sm:$0xff] }
 0x18a   : > { %v1682_v40 = vpop.f32.mrf.mxu1  ;;  %v2021_v43 = vpop.f32.mrf.mxu0 }
 0x18b   : > { %v3798_v24 = vadd.f32 %v2015_v63, %v1903_v18  ;;  %2195 = vmatmul.f32.vlgmr.msra.gmra.mxu2 %v877_v47  ;;  %v1683_v63 = vadd.f32 %v1682_v40, %v3546_v41  ;;  %v944_v18 = vld [vmem:[#allocation2 + $0x51] sm:$0xff] }
 0x18c   : > { %2308 = vmatmul.f32.vlgmr.msra.gmra.mxu3 %v941_v4 }
 0x18d   : > { %2085 = vmatmul.f32.gmra.mxu1 %v813_v1  ;;  %2424 = vmatmul.f32.gmra.mxu0 %v1006_v50  ;;  %v1009_v1 = vld [vmem:[#allocation2 + $0x62] sm:$0xff] }
 0x18e   : > { %v1792_v32 = vpop.f32.mrf.mxu2 }
 0x18f   : > { %v1793_v45 = vadd.f32 %v1792_v32, %v1680_v2  ;;  %v1905_v10 = vpop.f32.mrf.mxu3 }
 0x191   : > { %v1906_v16 = vadd.f32 %v1905_v10, %v1793_v45  ;;  %v881_v45 = vld [vmem:[#allocation2 + $0x60] sm:$0xff] }
 0x192   : > { %v1685_v33 = vpop.f32.mrf.mxu1  ;;  %v2024_v3 = vpop.f32.mrf.mxu0 }
 0x193   : > { %v3801_v59 = vadd.f32 %v2018_v57, %v1906_v16  ;;  %2198 = vmatmul.f32.gmra.mxu2 %v878_v52  ;;  %v1686_v57 = vadd.f32 %v1685_v33, %v3563_v8  ;;  %v945_v52 = vld [vmem:[#allocation2 + $0x61] sm:$0xff]  ;;  %v1010_v33 = vld [vmem:[#allocation2 + $0x6a] sm:$0xff] }
 0x194   : > { %2311 = vmatmul.f32.gmra.mxu3 %v942_v61 }
 0x195   : > { %2088 = vmatmul.f32.gmra.mxu1 %v1005_v53  ;;  %2427 = vmatmul.f32.gmra.mxu0 %v1007_v29 }
 0x196   : > { %v1795_v30 = vpop.f32.mrf.mxu2 }
 0x197   : > { %v1796_v48 = vadd.f32 %v1795_v30, %v1683_v63  ;;  %v1908_v6 = vpop.f32.mrf.mxu3 }
 0x199   : > { %v1909_v27 = vadd.f32 %v1908_v6, %v1796_v48  ;;  %v882_v48 = vld [vmem:[#allocation2 + $0x68] sm:$0xff] }
 0x19a   : > { %v1688_v21 = vpop.f32.mrf.mxu1  ;;  %v2027_v28 = vpop.f32.mrf.mxu0 }
 0x19b   : > { %v3804_v49 = vadd.f32 %v2021_v43, %v1909_v27  ;;  %2201 = vmatmul.f32.gmra.mxu2 %v879_v36  ;;  %v1689_v43 = vadd.f32 %v1688_v21, %v3580_v58  ;;  %v946_v36 = vld [vmem:[#allocation2 + $0x69] sm:$0xff]  ;;  %v1011_v21 = vld [vmem:[#allocation2 + $0x7a] sm:$0xff] }
 0x19c   : > { %2314 = vmatmul.f32.gmra.mxu3 %v943_v39 }
 0x19d   : > { %2091 = vmatmul.f32.gmra.mxu1 %v1006_v50  ;;  %2430 = vmatmul.f32.gmra.mxu0 %v1008_v20 }
 0x19e   : > { %v1798_v41 = vpop.f32.mrf.mxu2 }
 0x19f   : > { %v1799_v53 = vadd.f32 %v1798_v41, %v1686_v57  ;;  %v1911_v12 = vpop.f32.mrf.mxu3 }
 0x1a1   : > { %v1912_v47 = vadd.f32 %v1911_v12, %v1799_v53  ;;  %v883_v53 = vld [vmem:[#allocation2 + $0x78] sm:$0xff] }
 0x1a2   : > { %v1691_v4 = vpop.f32.mrf.mxu1  ;;  %v2030_v40 = vpop.f32.mrf.mxu0 }
 0x1a3   : > { %v3807_v2 = vadd.f32 %v2024_v3, %v1912_v47  ;;  %2204 = vmatmul.f32.gmra.mxu2 %v880_v23  ;;  %v1692_v3 = vadd.f32 %v1691_v4, %v3597_v62  ;;  %v947_v23 = vld [vmem:[#allocation2 + $0x79] sm:$0xff]  ;;  %v1012_v4 = vld [vmem:[#allocation2 + $0x82] sm:$0xff] }
 0x1a4   : > { %2317 = vmatmul.f32.gmra.mxu3 %v944_v18 }
 0x1a5   : > { %2094 = vmatmul.f32.gmra.mxu1 %v1007_v29  ;;  %2433 = vmatmul.f32.gmra.mxu0 %v1009_v1 }
 0x1a6   : > { %v1801_v8 = vpop.f32.mrf.mxu2 }
 0x1a7   : > { %v1802_v50 = vadd.f32 %v1801_v8, %v1689_v43  ;;  %v1914_v32 = vpop.f32.mrf.mxu3 }
 0x1a9   : > { %v1915_v10 = vadd.f32 %v1914_v32, %v1802_v50  ;;  %v884_v50 = vld [vmem:[#allocation2 + $0x80] sm:$0xff] }
 0x1aa   : > { %v1694_v16 = vpop.f32.mrf.mxu1  ;;  %v2033_v61 = vpop.f32.mrf.mxu0 }
 0x1ab   : > { %v3810_v63 = vadd.f32 %v2027_v28, %v1915_v10  ;;  %2207 = vmatmul.f32.gmra.mxu2 %v881_v45  ;;  %v1695_v28 = vadd.f32 %v1694_v16, %v3613_v54  ;;  %v948_v45 = vld [vmem:[#allocation2 + $0x81] sm:$0xff]  ;;  %v1013_v16 = vld [vmem:[#allocation2 + $0x92] sm:$0xff] }
 0x1ac   : > { %2320 = vmatmul.f32.gmra.mxu3 %v945_v52 }
 0x1ad   : > { %2097 = vmatmul.f32.gmra.mxu1 %v1008_v20  ;;  %2436 = vmatmul.f32.gmra.mxu0 %v1010_v33 }
 0x1ae   : > { %v1804_v58 = vpop.f32.mrf.mxu2 }
 0x1af   : > { %v1805_v29 = vadd.f32 %v1804_v58, %v1692_v3  ;;  %v1917_v30 = vpop.f32.mrf.mxu3 }
 0x1b1   : > { %v1918_v6 = vadd.f32 %v1917_v30, %v1805_v29  ;;  %v885_v29 = vld [vmem:[#allocation2 + $0x90] sm:$0xff] }
 0x1b2   : > { %v1697_v27 = vpop.f32.mrf.mxu1  ;;  %v2036_v39 = vpop.f32.mrf.mxu0 }
 0x1b3   : > { %v3813_v57 = vadd.f32 %v2030_v40, %v1918_v6  ;;  %2210 = vmatmul.f32.gmra.mxu2 %v882_v48  ;;  %v1698_v40 = vadd.f32 %v1697_v27, %v3628_v19  ;;  %v949_v48 = vld [vmem:[#allocation2 + $0x91] sm:$0xff]  ;;  %v1014_v27 = vld [vmem:[#allocation2 + $0x9a] sm:$0xff] }
 0x1b4   : > { %2323 = vmatmul.f32.gmra.mxu3 %v946_v36 }
 0x1b5   : > { %2100 = vmatmul.f32.gmra.mxu1 %v1009_v1  ;;  %2439 = vmatmul.f32.gmra.mxu0 %v1011_v21 }
 0x1b6   : > { %v1807_v62 = vpop.f32.mrf.mxu2 }
 0x1b7   : > { %v1808_v20 = vadd.f32 %v1807_v62, %v1695_v28  ;;  %v1920_v41 = vpop.f32.mrf.mxu3 }
 0x1b9   : > { %v1921_v12 = vadd.f32 %v1920_v41, %v1808_v20  ;;  %v886_v20 = vld [vmem:[#allocation2 + $0x98] sm:$0xff] }
 0x1ba   : > { %v1700_v47 = vpop.f32.mrf.mxu1  ;;  %v2039_v18 = vpop.f32.mrf.mxu0 }
 0x1bb   : > { %v3816_v43 = vadd.f32 %v2033_v61, %v1921_v12  ;;  %2213 = vmatmul.f32.gmra.mxu2 %v883_v53  ;;  %v1701_v61 = vadd.f32 %v1700_v47, %v3638_v31  ;;  %v950_v53 = vld [vmem:[#allocation2 + $0x99] sm:$0xff]  ;;  %v1015_v47 = vld [vmem:[#allocation2 + $0xaa] sm:$0xff] }
 0x1bc   : > { %2326 = vmatmul.f32.gmra.mxu3 %v947_v23 }
 0x1bd   : > { %2103 = vmatmul.f32.gmra.mxu1 %v1010_v33  ;;  %2442 = vmatmul.f32.gmra.mxu0 %v1012_v4 }
 0x1be   : > { %v1810_v54 = vpop.f32.mrf.mxu2 }
 0x1bf   : > { %v1811_v1 = vadd.f32 %v1810_v54, %v1698_v40  ;;  %v1923_v8 = vpop.f32.mrf.mxu3 }
 0x1c1   : > { %v1924_v32 = vadd.f32 %v1923_v8, %v1811_v1  ;;  %v887_v1 = vld [vmem:[#allocation2 + $0xa8] sm:$0xff] }
 0x1c2   : > { %v1703_v10 = vpop.f32.mrf.mxu1  ;;  %v2042_v52 = vpop.f32.mrf.mxu0 }
 0x1c3   : > { %v3819_v3 = vadd.f32 %v2036_v39, %v1924_v32  ;;  %2216 = vmatmul.f32.gmra.mxu2 %v884_v50  ;;  %v1704_v39 = vadd.f32 %v1703_v10, %v3534_v35  ;;  %v951_v50 = vld [vmem:[#allocation2 + $0xa9] sm:$0xff]  ;;  %v1016_v10 = vld [vmem:[#allocation2 + $0xb2] sm:$0xff] }
 0x1c4   : > { %2329 = vmatmul.f32.gmra.mxu3 %v948_v45 }
 0x1c5   : > { %2106 = vmatmul.f32.gmra.mxu1 %v1011_v21  ;;  %2445 = vmatmul.f32.gmra.mxu0 %v1013_v16 }
 0x1c6   : > { %v1813_v19 = vpop.f32.mrf.mxu2 }
 0x1c7   : > { %v1814_v33 = vadd.f32 %v1813_v19, %v1701_v61  ;;  %v1926_v58 = vpop.f32.mrf.mxu3 }
 0x1c9   : > { %v1927_v30 = vadd.f32 %v1926_v58, %v1814_v33  ;;  %v888_v33 = vld [vmem:[#allocation2 + $0xb0] sm:$0xff] }
 0x1ca   : > { %v1706_v6 = vpop.f32.mrf.mxu1  ;;  %v2045_v36 = vpop.f32.mrf.mxu0 }
 0x1cb   : > { %v3822_v28 = vadd.f32 %v2039_v18, %v1927_v30  ;;  %2219 = vmatmul.f32.gmra.mxu2 %v885_v29  ;;  %v1707_v18 = vadd.f32 %v1706_v6, %v3548_v44  ;;  %v952_v29 = vld [vmem:[#allocation2 + $0xb1] sm:$0xff]  ;;  %v1017_v6 = vld [vmem:[#allocation2 + $0xc2] sm:$0xff] }
 0x1cc   : > { %2332 = vmatmul.f32.gmra.mxu3 %v949_v48 }
 0x1cd   : > { %2109 = vmatmul.f32.gmra.mxu1 %v1012_v4  ;;  %2448 = vmatmul.f32.gmra.mxu0 %v1014_v27 }
 0x1ce   : > { %v1816_v31 = vpop.f32.mrf.mxu2 }
 0x1cf   : > { %v1817_v21 = vadd.f32 %v1816_v31, %v1704_v39  ;;  %v1929_v62 = vpop.f32.mrf.mxu3 }
 0x1d1   : > { %v1930_v41 = vadd.f32 %v1929_v62, %v1817_v21  ;;  %v889_v21 = vld [vmem:[#allocation2 + $0xc0] sm:$0xff] }
 0x1d2   : > { %v1709_v12 = vpop.f32.mrf.mxu1  ;;  %v2048_v23 = vpop.f32.mrf.mxu0 }
 0x1d3   : > { %v3825_v40 = vadd.f32 %v2042_v52, %v1930_v41  ;;  %2222 = vmatmul.f32.gmra.mxu2 %v886_v20  ;;  %v1710_v52 = vadd.f32 %v1709_v12, %v3568_v55  ;;  %v953_v20 = vld [vmem:[#allocation2 + $0xc1] sm:$0xff]  ;;  %v1018_v12 = vld [vmem:[#allocation2 + $0xca] sm:$0xff] }
 0x1d4   : > { %2335 = vmatmul.f32.gmra.mxu3 %v950_v53 }
 0x1d5   : > { %2112 = vmatmul.f32.gmra.mxu1 %v1013_v16  ;;  %2451 = vmatmul.f32.gmra.mxu0 %v1015_v47 }
 0x1d6   : > { %v1819_v35 = vpop.f32.mrf.mxu2 }
 0x1d7   : > { %v1820_v4 = vadd.f32 %v1819_v35, %v1707_v18  ;;  %v1932_v54 = vpop.f32.mrf.mxu3 }
 0x1d9   : > { %v1933_v8 = vadd.f32 %v1932_v54, %v1820_v4  ;;  %v890_v4 = vld [vmem:[#allocation2 + $0xc8] sm:$0xff] }
 0x1da   : > { %v1712_v32 = vpop.f32.mrf.mxu1  ;;  %v2051_v45 = vpop.f32.mrf.mxu0 }
 0x1db   : > { %v3828_v61 = vadd.f32 %v2045_v36, %v1933_v8  ;;  %2225 = vmatmul.f32.gmra.mxu2 %v887_v1  ;;  %v1713_v36 = vadd.f32 %v1712_v32, %v3582_v15  ;;  %v954_v1 = vld [vmem:[#allocation2 + $0xc9] sm:$0xff]  ;;  %v1019_v32 = vld [vmem:[#allocation2 + $0xda] sm:$0xff] }
 0x1dc   : > { %2338 = vmatmul.f32.gmra.mxu3 %v951_v50 }
 0x1dd   : > { %2115 = vmatmul.f32.gmra.mxu1 %v1014_v27  ;;  %2454 = vmatmul.f32.gmra.mxu0 %v1016_v10 }
 0x1de   : > { %v1822_v44 = vpop.f32.mrf.mxu2 }
 0x1df   : > { %v1823_v16 = vadd.f32 %v1822_v44, %v1710_v52  ;;  %v1935_v19 = vpop.f32.mrf.mxu3 }
 0x1e1   : > { %v1936_v58 = vadd.f32 %v1935_v19, %v1823_v16  ;;  %v891_v16 = vld [vmem:[#allocation2 + $0xd8] sm:$0xff] }
 0x1e2   : > { %v1715_v30 = vpop.f32.mrf.mxu1  ;;  %v2054_v48 = vpop.f32.mrf.mxu0 }
 0x1e3   : > { %v3831_v39 = vadd.f32 %v2048_v23, %v1936_v58  ;;  %2228 = vmatmul.f32.gmra.mxu2 %v888_v33  ;;  %v1716_v23 = vadd.f32 %v1715_v30, %v3599_v14  ;;  %v955_v33 = vld [vmem:[#allocation2 + $0xd9] sm:$0xff]  ;;  %v1020_v30 = vld [vmem:[#allocation2 + $0xe2] sm:$0xff] }
 0x1e4   : > { %2341 = vmatmul.f32.gmra.mxu3 %v952_v29 }
 0x1e5   : > { %2118 = vmatmul.f32.gmra.mxu1 %v1015_v47  ;;  %2457 = vmatmul.f32.gmra.mxu0 %v1017_v6 }
 0x1e6   : > { %v1825_v55 = vpop.f32.mrf.mxu2 }
 0x1e7   : > { %v1826_v27 = vadd.f32 %v1825_v55, %v1713_v36  ;;  %v1938_v31 = vpop.f32.mrf.mxu3 }
 0x1e9   : > { %v1939_v62 = vadd.f32 %v1938_v31, %v1826_v27  ;;  %v892_v27 = vld [vmem:[#allocation2 + $0xe0] sm:$0xff] }
 0x1ea   : > { %v1718_v41 = vpop.f32.mrf.mxu1  ;;  %v2057_v53 = vpop.f32.mrf.mxu0 }
 0x1eb   : > { %v3834_v18 = vadd.f32 %v2051_v45, %v1939_v62  ;;  %2231 = vmatmul.f32.gmra.mxu2 %v889_v21  ;;  %v1719_v45 = vadd.f32 %v1718_v41, %v3615_v9  ;;  %v956_v21 = vld [vmem:[#allocation2 + $0xe1] sm:$0xff]  ;;  %v1021_v41 = vld [vmem:[#allocation2 + $0xf2] sm:$0xff] }
 0x1ec   : > { %2344 = vmatmul.f32.gmra.mxu3 %v953_v20 }
 0x1ed   : > { %2121 = vmatmul.f32.gmra.mxu1 %v1016_v10  ;;  %2460 = vmatmul.f32.gmra.mxu0 %v1018_v12 }
 0x1ee   : > { %v1828_v15 = vpop.f32.mrf.mxu2 }
 0x1ef   : > { %v1829_v47 = vadd.f32 %v1828_v15, %v1716_v23  ;;  %v1941_v35 = vpop.f32.mrf.mxu3 }
 0x1f1   : > { %v1942_v54 = vadd.f32 %v1941_v35, %v1829_v47  ;;  %v893_v47 = vld [vmem:[#allocation2 + $0xf0] sm:$0xff] }
 0x1f2   : > { %v1721_v8 = vpop.f32.mrf.mxu1  ;;  %v2060_v50 = vpop.f32.mrf.mxu0 }
 0x1f3   : > { %v3837_v52 = vadd.f32 %v2054_v48, %v1942_v54  ;;  %2234 = vmatmul.f32.gmra.mxu2 %v890_v4  ;;  %v1722_v48 = vadd.f32 %v1721_v8, %v3630_v26  ;;  %v957_v4 = vld [vmem:[#allocation2 + $0xf1] sm:$0xff]  ;;  %v1022_v8 = vld [vmem:[#allocation2 + $0xfa] sm:$0xff] }
 0x1f4   : > { %2347 = vmatmul.f32.gmra.mxu3 %v954_v1 }
 0x1f5   : > { %2124 = vmatmul.f32.gmra.mxu1 %v1017_v6  ;;  %2463 = vmatmul.f32.gmra.mxu0 %v1019_v32 }
 0x1f6   : > { %v1831_v14 = vpop.f32.mrf.mxu2 }
 0x1f7   : > { %v1832_v10 = vadd.f32 %v1831_v14, %v1719_v45  ;;  %v1944_v44 = vpop.f32.mrf.mxu3 }
 0x1f9   : > { %v1945_v19 = vadd.f32 %v1944_v44, %v1832_v10  ;;  %v894_v10 = vld [vmem:[#allocation2 + $0xf8] sm:$0xff] }
 0x1fa   : > { %v1724_v58 = vpop.f32.mrf.mxu1  ;;  %v2063_v29 = vpop.f32.mrf.mxu0 }
 0x1fb   : > { %v3840_v36 = vadd.f32 %v2057_v53, %v1945_v19  ;;  %2237 = vmatmul.f32.gmra.mxu2 %v891_v16  ;;  %v1725_v53 = vadd.f32 %v1724_v58, %v3640_v51  ;;  %v958_v16 = vld [vmem:[#allocation2 + $0xf9] sm:$0xff]  ;;  %v1023_v58 = vld [vmem:[#allocation2 + $0x10a] sm:$0xff] }
 0x1fc   : > { %2350 = vmatmul.f32.gmra.mxu3 %v955_v33 }
 0x1fd   : > { %2127 = vmatmul.f32.gmra.mxu1 %v1018_v12  ;;  %2466 = vmatmul.f32.gmra.mxu0 %v1020_v30 }
 0x1fe   : > { %v1834_v9 = vpop.f32.mrf.mxu2 }
 0x1ff   : > { %v1835_v6 = vadd.f32 %v1834_v9, %v1722_v48  ;;  %v1947_v55 = vpop.f32.mrf.mxu3 }
 0x201   : > { %v1948_v31 = vadd.f32 %v1947_v55, %v1835_v6  ;;  %v895_v6 = vld [vmem:[#allocation2 + $0x108] sm:$0xff] }
 0x202   : > { %v2083_v62 = vpop.f32.mrf.mxu1  ;;  %v2422_v20 = vpop.f32.mrf.mxu0 }
 0x203   : > { %v3843_v23 = vadd.f32 %v2060_v50, %v1948_v31  ;;  %2240 = vmatmul.f32.gmra.mxu2 %v892_v27  ;;  %v2084_v50 = vadd.f32 %v2083_v62, %v3654_v5  ;;  %v959_v27 = vld [vmem:[#allocation2 + $0x109] sm:$0xff]  ;;  %v1024_v62 = vld [vmem:[#allocation2 + $0x112] sm:$0xff] }
 0x204   : > { %2353 = vmatmul.f32.gmra.mxu3 %v956_v21 }
 0x205   : > { %2130 = vmatmul.f32.gmra.mxu1 %v1019_v32  ;;  %2469 = vmatmul.f32.gmra.mxu0 %v1021_v41 }
 0x206   : > { %v1837_v26 = vpop.f32.mrf.mxu2 }
 0x207   : > { %v1838_v12 = vadd.f32 %v1837_v26, %v1725_v53  ;;  %v1950_v15 = vpop.f32.mrf.mxu3 }
 0x209   : > { %v1951_v35 = vadd.f32 %v1950_v15, %v1838_v12 }
 0x20a   : > { %v2086_v54 = vpop.f32.mrf.mxu1  ;;  %v2425_v1 = vpop.f32.mrf.mxu0 }
 0x20b   : > { %v3846_v45 = vadd.f32 %v2063_v29, %v1951_v35  ;;  %2243 = vmatmul.f32.gmra.mxu2 %v893_v47  ;;  %v2087_v5 = vadd.f32 %v2086_v54, %v3662_v0 }
 0x20c   : > { %2356 = vmatmul.f32.gmra.mxu3 %v957_v4  ;;  %v896_v4 = vld [vmem:[#allocation2 + $0x110] sm:$0xff] }
 0x20d   : > { %2133 = vmatmul.f32.gmra.mxu1 %v1020_v30  ;;  %2472 = vmatmul.f32.gmra.mxu0 %v1022_v8 }
 0x20e   : > { %v2196_v51 = vpop.f32.mrf.mxu2 }
 0x20f   : > { %v2197_v32 = vadd.f32 %v2196_v51, %v2084_v50  ;;  %v2309_v14 = vpop.f32.mrf.mxu3  ;;  %v960_v50 = vld [vmem:[#allocation2 + $0x111] sm:$0xff] }
 0x211   : > { %v2310_v44 = vadd.f32 %v2309_v14, %v2197_v32  ;;  %v1025_v32 = vld [vmem:[#allocation2 + $0x122] sm:$0xff] }
 0x212   : > { %v2089_v19 = vpop.f32.mrf.mxu1  ;;  %v2428_v33 = vpop.f32.mrf.mxu0 }
 0x213   : > { %v2423_v29 = vadd.f32 %v2422_v20, %v2310_v44  ;;  %2246 = vmatmul.f32.gmra.mxu2 %v894_v10  ;;  %v2090_v20 = vadd.f32 %v2089_v19, %v3677_v13 }
 0x214   : > { %2359 = vmatmul.f32.gmra.mxu3 %v958_v16 }
 0x215   : > { %2518 = vst [vmem:[%s3854_s20] sm:$0xff] %v2423_v29  ;;  %2136 = vmatmul.f32.gmra.mxu1 %v1021_v41  ;;  %2475 = vmatmul.f32.gmra.mxu0 %v1023_v58  ;;  %v2588_v26 = vmul.f32 %v2423_v29, %v2423_v29 }
 0x216   : > { %v2199_v30 = vpop.f32.mrf.mxu2 }
 0x217   : > { %v2200_v48 = vadd.f32 %v2199_v30, %v2087_v5  ;;  %v2312_v9 = vpop.f32.mrf.mxu3  ;;  %v897_v5 = vld [vmem:[#allocation2 + $0x120] sm:$0xff] }
 0x219   : > { %v2313_v55 = vadd.f32 %v2312_v9, %v2200_v48  ;;  %v961_v48 = vld [vmem:[#allocation2 + $0x121] sm:$0xff] }
 0x21a   : > { %v2092_v31 = vpop.f32.mrf.mxu1  ;;  %v2431_v21 = vpop.f32.mrf.mxu0 }
 0x21b   : > { %v2426_v53 = vadd.f32 %v2425_v1, %v2313_v55  ;;  %2249 = vmatmul.f32.gmra.mxu2 %v895_v6  ;;  %v2093_v13 = vadd.f32 %v2092_v31, %v3686_v17 }
 0x21c   : > { %2362 = vmatmul.f32.gmra.mxu3 %v959_v27 }
 0x21d   : > { %2519 = vst [vmem:[%s3854_s20 + $0x8] sm:$0xff] %v2426_v53  ;;  %v2550_v0 = vadd.f32 %v2426_v53, %v2423_v29  ;;  %v2589_v41 = vmul.f32 %v2426_v53, %v2426_v53  ;;  %2139 = vmatmul.f32.gmra.mxu1 %v1022_v8  ;;  %2478 = vmatmul.f32.gmra.mxu0 %v1024_v62 }
 0x21e   : > { %v2202_v12 = vpop.f32.mrf.mxu2 }
 0x21f   : > { %v2620_v15 = vadd.f32 %v2589_v41, %v2588_v26  ;;  %v2203_v47 = vadd.f32 %v2202_v12, %v2090_v20  ;;  %v2315_v35 = vpop.f32.mrf.mxu3  ;;  %v962_v12 = vld [vmem:[#allocation2 + $0x129] sm:$0xff] }
 0x221   : > { %v2316_v54 = vadd.f32 %v2315_v35, %v2203_v47 }
 0x222   : > { %v2095_v51 = vpop.f32.mrf.mxu1  ;;  %v2434_v1 = vpop.f32.mrf.mxu0 }
 0x223   : > { %v2429_v14 = vadd.f32 %v2428_v33, %v2316_v54  ;;  %2252 = vmatmul.f32.gmra.mxu2 %v896_v4  ;;  %v1026_v33 = vld [vmem:[#allocation2 + $0x12a] sm:$0xff]  ;;  %v2096_v17 = vadd.f32 %v2095_v51, %v3701_v56 }
 0x224   : > { %2365 = vmatmul.f32.gmra.mxu3 %v960_v50 }
 0x225   : > { %2520 = vst [vmem:[%s3854_s20 + $0x10] sm:$0xff] %v2429_v14  ;;  %v2551_v10 = vadd.f32 %v2550_v0, %v2429_v14  ;;  %v2590_v8 = vmul.f32 %v2429_v14, %v2429_v14  ;;  %2142 = vmatmul.f32.gmra.mxu1 %v1023_v58  ;;  %2481 = vmatmul.f32.gmra.mxu0 %v1025_v32  ;;  %v898_v0 = vld [vmem:[#allocation2 + $0x128] sm:$0xff] }
 0x226   : > { %v2205_v44 = vpop.f32.mrf.mxu2 }
 0x227   : > { %v2621_v16 = vadd.f32 %v2620_v15, %v2590_v8  ;;  %v2206_v19 = vadd.f32 %v2205_v44, %v2093_v13  ;;  %v2318_v29 = vpop.f32.mrf.mxu3  ;;  %v899_v13 = vld [vmem:[#allocation2 + $0x138] sm:$0xff] }
 0x228   : > { %v963_v8 = vld [vmem:[#allocation2 + $0x139] sm:$0xff] }
 0x229   : > { %v2319_v30 = vadd.f32 %v2318_v29, %v2206_v19 }
 0x22a   : > { %v2098_v9 = vpop.f32.mrf.mxu1  ;;  %v2437_v6 = vpop.f32.mrf.mxu0 }
 0x22b   : > { %v2432_v55 = vadd.f32 %v2431_v21, %v2319_v30  ;;  %2255 = vmatmul.f32.gmra.mxu2 %v897_v5  ;;  %v1027_v21 = vld [vmem:[#allocation2 + $0x13a] sm:$0xff]  ;;  %v2099_v56 = vadd.f32 %v2098_v9, %v3709_v38 }
 0x22c   : > { %2368 = vmatmul.f32.gmra.mxu3 %v961_v48 }
 0x22d   : > { %2521 = vst [vmem:[%s3854_s20 + $0x18] sm:$0xff] %v2432_v55  ;;  %v2552_v27 = vadd.f32 %v2551_v10, %v2432_v55  ;;  %v2591_v58 = vmul.f32 %v2432_v55, %v2432_v55  ;;  %2145 = vmatmul.f32.gmra.mxu1 %v1024_v62  ;;  %2484 = vmatmul.f32.gmra.mxu0 %v1026_v33  ;;  %v900_v55 = vld [vmem:[#allocation2 + $0x140] sm:$0xff] }
 0x22e   : > { %v2208_v31 = vpop.f32.mrf.mxu2 }
 0x22f   : > { %v2622_v53 = vadd.f32 %v2621_v16, %v2591_v58  ;;  %v2209_v20 = vadd.f32 %v2208_v31, %v2096_v17  ;;  %v2321_v26 = vpop.f32.mrf.mxu3 }
 0x231   : > { %v2322_v41 = vadd.f32 %v2321_v26, %v2209_v20 }
 0x232   : > { %v2101_v15 = vpop.f32.mrf.mxu1  ;;  %v2440_v47 = vpop.f32.mrf.mxu0 }
 0x233   : > { %v2435_v35 = vadd.f32 %v2434_v1, %v2322_v41  ;;  %2258 = vmatmul.f32.gmra.mxu2 %v898_v0  ;;  %v1028_v1 = vld [vmem:[#allocation2 + $0x142] sm:$0xff]  ;;  %v2102_v38 = vadd.f32 %v2101_v15, %v3722_v46  ;;  %v901_v15 = vld [vmem:[#allocation2 + $0x150] sm:$0xff] }
 0x234   : > { %2371 = vmatmul.f32.gmra.mxu3 %v962_v12 }
 0x235   : > { %2522 = vst [vmem:[%s3854_s20 + $0x20] sm:$0xff] %v2435_v35  ;;  %v2553_v4 = vadd.f32 %v2552_v27, %v2435_v35  ;;  %v2592_v62 = vmul.f32 %v2435_v35, %v2435_v35  ;;  %2148 = vmatmul.f32.gmra.mxu1 %v1025_v32  ;;  %2487 = vmatmul.f32.gmra.mxu0 %v1027_v21  ;;  %v964_v27 = vld [vmem:[#allocation2 + $0x141] sm:$0xff] }
 0x236   : > { %v2211_v54 = vpop.f32.mrf.mxu2 }
 0x237   : > { %v2623_v50 = vadd.f32 %v2622_v53, %v2592_v62  ;;  %v2212_v51 = vadd.f32 %v2211_v54, %v2099_v56  ;;  %v2324_v14 = vpop.f32.mrf.mxu3  ;;  %v965_v56 = vld [vmem:[#allocation2 + $0x151] sm:$0xff] }
 0x239   : > { %v2325_v10 = vadd.f32 %v2324_v14, %v2212_v51 }
 0x23a   : > { %v2104_v44 = vpop.f32.mrf.mxu1  ;;  %v2443_v16 = vpop.f32.mrf.mxu0 }
 0x23b   : > { %v2438_v19 = vadd.f32 %v2437_v6, %v2325_v10  ;;  %2261 = vmatmul.f32.gmra.mxu2 %v899_v13  ;;  %v1029_v6 = vld [vmem:[#allocation2 + $0x152] sm:$0xff]  ;;  %v2105_v46 = vadd.f32 %v2104_v44, %v3728_v60 }
 0x23c   : > { %2374 = vmatmul.f32.gmra.mxu3 %v963_v8  ;;  %v902_v8 = vld [vmem:[#allocation2 + $0x158] sm:$0xff] }
 0x23d   : > { %2523 = vst [vmem:[%s3854_s20 + $0x28] sm:$0xff] %v2438_v19  ;;  %v2554_v29 = vadd.f32 %v2553_v4, %v2438_v19  ;;  %v2593_v32 = vmul.f32 %v2438_v19, %v2438_v19  ;;  %2151 = vmatmul.f32.gmra.mxu1 %v1026_v33  ;;  %2490 = vmatmul.f32.gmra.mxu0 %v1028_v1  ;;  %v966_v19 = vld [vmem:[#allocation2 + $0x159] sm:$0xff] }
 0x23e   : > { %v2214_v5 = vpop.f32.mrf.mxu2 }
 0x23f   : > { %v2624_v30 = vadd.f32 %v2623_v50, %v2593_v32  ;;  %v2215_v48 = vadd.f32 %v2214_v5, %v2102_v38  ;;  %v2327_v9 = vpop.f32.mrf.mxu3 }
 0x241   : > { %v2328_v17 = vadd.f32 %v2327_v9, %v2215_v48 }
 0x242   : > { %v2107_v58 = vpop.f32.mrf.mxu1  ;;  %v2446_v31 = vpop.f32.mrf.mxu0 }
 0x243   : > { %v2441_v53 = vadd.f32 %v2440_v47, %v2328_v17  ;;  %2264 = vmatmul.f32.gmra.mxu2 %v900_v55  ;;  %v1030_v47 = vld [vmem:[#allocation2 + $0x15a] sm:$0xff]  ;;  %v2108_v60 = vadd.f32 %v2107_v58, %v3749_v7  ;;  %v903_v17 = vld [vmem:[#allocation2 + $0x168] sm:$0xff] }
 0x244   : > { %2377 = vmatmul.f32.gmra.mxu3 %v964_v27  ;;  %v967_v58 = vld [vmem:[#allocation2 + $0x169] sm:$0xff] }
 0x245   : > { %2524 = vst [vmem:[%s3854_s20 + $0x30] sm:$0xff] %v2441_v53  ;;  %v2555_v20 = vadd.f32 %v2554_v29, %v2441_v53  ;;  %v2594_v33 = vmul.f32 %v2441_v53, %v2441_v53  ;;  %2154 = vmatmul.f32.gmra.mxu1 %v1027_v21  ;;  %2493 = vmatmul.f32.gmra.mxu0 %v1029_v6 }
 0x246   : > { %v2217_v26 = vpop.f32.mrf.mxu2 }
 0x247   : > { %v2625_v0 = vadd.f32 %v2624_v30, %v2594_v33  ;;  %v2218_v41 = vadd.f32 %v2217_v26, %v2105_v46  ;;  %v2330_v12 = vpop.f32.mrf.mxu3 }
 0x249   : > { %v2331_v35 = vadd.f32 %v2330_v12, %v2218_v41 }
 0x24a   : > { %v2110_v4 = vpop.f32.mrf.mxu1  ;;  %v2449_v62 = vpop.f32.mrf.mxu0 }
 0x24b   : > { %v2444_v54 = vadd.f32 %v2443_v16, %v2331_v35  ;;  %2267 = vmatmul.f32.gmra.mxu2 %v901_v15  ;;  %v1031_v16 = vld [vmem:[#allocation2 + $0x16a] sm:$0xff]  ;;  %v2111_v7 = vadd.f32 %v2110_v4, %v3761_v22 }
 0x24c   : > { %2380 = vmatmul.f32.gmra.mxu3 %v965_v56  ;;  %v904_v15 = vld [vmem:[#allocation2 + $0x170] sm:$0xff] }
 0x24d   : > { %2525 = vst [vmem:[%s3854_s20 + $0x38] sm:$0xff] %v2444_v54  ;;  %v2556_v50 = vadd.f32 %v2555_v20, %v2444_v54  ;;  %v2595_v21 = vmul.f32 %v2444_v54, %v2444_v54  ;;  %2157 = vmatmul.f32.gmra.mxu1 %v1028_v1  ;;  %2496 = vmatmul.f32.gmra.mxu0 %v1030_v47  ;;  %v968_v56 = vld [vmem:[#allocation2 + $0x171] sm:$0xff] }
 0x24e   : > { %v2220_v51 = vpop.f32.mrf.mxu2 }
 0x24f   : > { %v2626_v14 = vadd.f32 %v2625_v0, %v2595_v21  ;;  %v2221_v13 = vadd.f32 %v2220_v51, %v2108_v60  ;;  %v2333_v10 = vpop.f32.mrf.mxu3 }
 0x251   : > { %v2334_v44 = vadd.f32 %v2333_v10, %v2221_v13  ;;  %v905_v10 = vld [vmem:[#allocation2 + $0x180] sm:$0xff] }
 0x252   : > { %v2113_v38 = vpop.f32.mrf.mxu1  ;;  %v2452_v29 = vpop.f32.mrf.mxu0 }
 0x253   : > { %v2447_v32 = vadd.f32 %v2446_v31, %v2334_v44  ;;  %2270 = vmatmul.f32.gmra.mxu2 %v902_v8  ;;  %v1032_v31 = vld [vmem:[#allocation2 + $0x172] sm:$0xff]  ;;  %v2114_v22 = vadd.f32 %v2113_v38, %v3776_v34  ;;  %v969_v44 = vld [vmem:[#allocation2 + $0x181] sm:$0xff] }
 0x254   : > { %2383 = vmatmul.f32.gmra.mxu3 %v966_v19 }
 0x255   : > { %2526 = vst [vmem:[%s3854_s20 + $0x40] sm:$0xff] %v2447_v32  ;;  %v2557_v5 = vadd.f32 %v2556_v50, %v2447_v32  ;;  %v2596_v1 = vmul.f32 %v2447_v32, %v2447_v32  ;;  %2160 = vmatmul.f32.gmra.mxu1 %v1029_v6  ;;  %2499 = vmatmul.f32.gmra.mxu0 %v1031_v16 }
 0x256   : > { %v2223_v30 = vpop.f32.mrf.mxu2 }
 0x257   : > { %v2627_v48 = vadd.f32 %v2626_v14, %v2596_v1  ;;  %v2224_v9 = vadd.f32 %v2223_v30, %v2111_v7  ;;  %v2336_v55 = vpop.f32.mrf.mxu3 }
 0x259   : > { %v2337_v27 = vadd.f32 %v2336_v55, %v2224_v9  ;;  %v906_v9 = vld [vmem:[#allocation2 + $0x188] sm:$0xff] }
 0x25a   : > { %v2116_v53 = vpop.f32.mrf.mxu1  ;;  %v2455_v46 = vpop.f32.mrf.mxu0 }
 0x25b   : > { %v2450_v20 = vadd.f32 %v2449_v62, %v2337_v27  ;;  %2273 = vmatmul.f32.gmra.mxu2 %v903_v17  ;;  %v1033_v62 = vld [vmem:[#allocation2 + $0x182] sm:$0xff]  ;;  %v2117_v34 = vadd.f32 %v2116_v53, %v3782_v42  ;;  %v1035_v53 = vld [vmem:[#allocation2 + $0x19a] sm:$0xff] }
 0x25c   : > { %2386 = vmatmul.f32.gmra.mxu3 %v967_v58  ;;  %v970_v17 = vld [vmem:[#allocation2 + $0x189] sm:$0xff] }
 0x25d   : > { %2527 = vst [vmem:[%s3854_s20 + $0x48] sm:$0xff] %v2450_v20  ;;  %v2558_v33 = vadd.f32 %v2557_v5, %v2450_v20  ;;  %v2597_v6 = vmul.f32 %v2450_v20, %v2450_v20  ;;  %2163 = vmatmul.f32.gmra.mxu1 %v1030_v47  ;;  %2502 = vmatmul.f32.gmra.mxu0 %v1032_v31 }
 0x25e   : > { %v2226_v26 = vpop.f32.mrf.mxu2 }
 0x25f   : > { %v2628_v0 = vadd.f32 %v2627_v48, %v2597_v6  ;;  %v2227_v41 = vadd.f32 %v2226_v26, %v2114_v22  ;;  %v2339_v12 = vpop.f32.mrf.mxu3 }
 0x261   : > { %v2340_v35 = vadd.f32 %v2339_v12, %v2227_v41  ;;  %v971_v41 = vld [vmem:[#allocation2 + $0x199] sm:$0xff] }
 0x262   : > { %v2119_v4 = vpop.f32.mrf.mxu1  ;;  %v2458_v54 = vpop.f32.mrf.mxu0 }
 0x263   : > { %v2453_v60 = vadd.f32 %v2452_v29, %v2340_v35  ;;  %2276 = vmatmul.f32.gmra.mxu2 %v904_v15  ;;  %v1034_v29 = vld [vmem:[#allocation2 + $0x18a] sm:$0xff]  ;;  %v2120_v42 = vadd.f32 %v2119_v4, %v3785_v11  ;;  %v1036_v35 = vld [vmem:[#allocation2 + $0x1a2] sm:$0xff] }
 0x264   : > { %2389 = vmatmul.f32.gmra.mxu3 %v968_v56  ;;  %v2838_v4 = vld [vmem:[#allocation2] sm:$0xff] }
 0x265   : > { %2528 = vst [vmem:[%s3854_s20 + $0x50] sm:$0xff] %v2453_v60  ;;  %v2559_v50 = vadd.f32 %v2558_v33, %v2453_v60  ;;  %v2598_v47 = vmul.f32 %v2453_v60, %v2453_v60  ;;  %2166 = vmatmul.f32.gmra.mxu1 %v1031_v16  ;;  %2505 = vmatmul.f32.gmra.mxu0 %v1033_v62 }
 0x266   : > { %v2229_v21 = vpop.f32.mrf.mxu2 }
 0x267   : > { %v2629_v51 = vadd.f32 %v2628_v0, %v2598_v47  ;;  %v2230_v14 = vadd.f32 %v2229_v21, %v2117_v34  ;;  %v2342_v13 = vpop.f32.mrf.mxu3 }
 0x269   : > { %v2343_v8 = vadd.f32 %v2342_v13, %v2230_v14 }
 0x26a   : > { %v2122_v19 = vpop.f32.mrf.mxu1  ;;  %v2461_v38 = vpop.f32.mrf.mxu0 }
 0x26b   : > { %v2456_v32 = vadd.f32 %v2455_v46, %v2343_v8  ;;  %2279 = vmatmul.f32.gmra.mxu2 %v905_v10  ;;  %v2123_v11 = vadd.f32 %v2122_v19, %v3790_v25 }
 0x26c   : > { %2392 = vmatmul.f32.gmra.mxu3 %v969_v44 }
 0x26d   : > { %2529 = vst [vmem:[%s3854_s20 + $0x58] sm:$0xff] %v2456_v32  ;;  %v2560_v7 = vadd.f32 %v2559_v50, %v2456_v32  ;;  %v2599_v16 = vmul.f32 %v2456_v32, %v2456_v32  ;;  %2169 = vmatmul.f32.gmra.mxu1 %v1032_v31  ;;  %2508 = vmatmul.f32.gmra.mxu0 %v1034_v29 }
 0x26e   : > { %v2232_v5 = vpop.f32.mrf.mxu2 }
 0x26f   : > { %v2630_v1 = vadd.f32 %v2629_v51, %v2599_v16  ;;  %v2233_v30 = vadd.f32 %v2232_v5, %v2120_v42  ;;  %v2345_v48 = vpop.f32.mrf.mxu3  ;;  %v972_v51 = vld [vmem:[#allocation2 + $0x1a1] sm:$0xff] }
 0x271   : > { %v2346_v55 = vadd.f32 %v2345_v48, %v2233_v30 }
 0x272   : > { %v2125_v27 = vpop.f32.mrf.mxu1  ;;  %v2464_v58 = vpop.f32.mrf.mxu0 }
 0x273   : > { %v2459_v46 = vadd.f32 %v2458_v54, %v2346_v55  ;;  %2282 = vmatmul.f32.gmra.mxu2 %v906_v9  ;;  %v2126_v25 = vadd.f32 %v2125_v27, %v3795_v37 }
 0x274   : > { %2395 = vmatmul.f32.gmra.mxu3 %v970_v17 }
 0x275   : > { %2530 = vst [vmem:[%s3854_s20 + $0x60] sm:$0xff] %v2459_v46  ;;  %v2561_v20 = vadd.f32 %v2560_v7, %v2459_v46  ;;  %v2600_v31 = vmul.f32 %v2459_v46, %v2459_v46  ;;  %2172 = vmatmul.f32.gmra.mxu1 %v1033_v62  ;;  %2511 = vmatmul.f32.gmra.mxu0 %v1035_v53 }
 0x276   : > { %v2235_v22 = vpop.f32.mrf.mxu2 }
 0x277   : > { %v2631_v33 = vadd.f32 %v2630_v1, %v2600_v31  ;;  %v2236_v6 = vadd.f32 %v2235_v22, %v2123_v11  ;;  %v2348_v26 = vpop.f32.mrf.mxu3 }
 0x279   : > { %v2349_v0 = vadd.f32 %v2348_v26, %v2236_v6 }
 0x27a   : > { %v2128_v12 = vpop.f32.mrf.mxu1  ;;  %v2467_v15 = vpop.f32.mrf.mxu0 }
 0x27b   : > { %v2462_v56 = vadd.f32 %v2461_v38, %v2349_v0  ;;  %2285 = vmatmul.f32.gmra.mxu2 %v2838_v4  ;;  %v2129_v37 = vadd.f32 %v2128_v12, %v3798_v24 }
 0x27c   : > { %2398 = vmatmul.f32.gmra.mxu3 %v971_v41 }
 0x27d   : > { %2531 = vst [vmem:[%s3854_s20 + $0x68] sm:$0xff] %v2462_v56  ;;  %v2562_v54 = vadd.f32 %v2561_v20, %v2462_v56  ;;  %v2601_v62 = vmul.f32 %v2462_v56, %v2462_v56  ;;  %2175 = vmatmul.f32.gmra.mxu1 %v1034_v29  ;;  %2514 = vmatmul.f32.gmra.mxu0 %v1036_v35 }
 0x27e   : > { %v2238_v60 = vpop.f32.mrf.mxu2 }
 0x27f   : > { %v2632_v34 = vadd.f32 %v2631_v33, %v2601_v62  ;;  %v2239_v50 = vadd.f32 %v2238_v60, %v2126_v25  ;;  %v2351_v47 = vpop.f32.mrf.mxu3 }
 0x281   : > { %v2352_v21 = vadd.f32 %v2351_v47, %v2239_v50 }
 0x282   : > { %v2131_v14 = vpop.f32.mrf.mxu1  ;;  %v2470_v13 = vpop.f32.mrf.mxu0 }
 0x283   : > { %v2465_v10 = vadd.f32 %v2464_v58, %v2352_v21  ;;  %2288 = vmatmul.f32.gmra.mxu2 %v2838_v4  ;;  %v2132_v1 = vadd.f32 %v2131_v14, %v3801_v59 }
 0x284   : > { %2401 = vmatmul.f32.gmra.mxu3 %v972_v51 }
 0x285   : > { %2532 = vst [vmem:[%s3854_s20 + $0x70] sm:$0xff] %v2465_v10  ;;  %v2563_v8 = vadd.f32 %v2562_v54, %v2465_v10  ;;  %v2602_v44 = vmul.f32 %v2465_v10, %v2465_v10 }
 0x286   : > { %v2241_v19 = vpop.f32.mrf.mxu2 }
 0x287   : > { %v2633_v38 = vadd.f32 %v2632_v34, %v2602_v44  ;;  %v2242_v29 = vadd.f32 %v2241_v19, %v2129_v37  ;;  %v2354_v32 = vpop.f32.mrf.mxu3 }
 0x289   : > { %v2355_v42 = vadd.f32 %v2354_v32, %v2242_v29 }
 0x28a   : > { %v2134_v7 = vpop.f32.mrf.mxu1  ;;  %v2473_v16 = vpop.f32.mrf.mxu0 }
 0x28b   : > { %v2468_v5 = vadd.f32 %v2467_v15, %v2355_v42  ;;  %v2135_v11 = vadd.f32 %v2134_v7, %v3804_v49 }
 0x28d   : > { %2533 = vst [vmem:[%s3854_s20 + $0x78] sm:$0xff] %v2468_v5  ;;  %v2564_v30 = vadd.f32 %v2563_v8, %v2468_v5  ;;  %v2603_v48 = vmul.f32 %v2468_v5, %v2468_v5 }
 0x28e   : > { %v2244_v9 = vpop.f32.mrf.mxu2 }
 0x28f   : > { %v2634_v55 = vadd.f32 %v2633_v38, %v2603_v48  ;;  %v2245_v24 = vadd.f32 %v2244_v9, %v2132_v1  ;;  %v2357_v17 = vpop.f32.mrf.mxu3 }
 0x291   : > { %v2358_v27 = vadd.f32 %v2357_v17, %v2245_v24 }
 0x292   : > { %v2137_v58 = vpop.f32.mrf.mxu1  ;;  %v2476_v53 = vpop.f32.mrf.mxu0 }
 0x293   : > { %v2471_v46 = vadd.f32 %v2470_v13, %v2358_v27  ;;  %v2138_v15 = vadd.f32 %v2137_v58, %v3807_v2 }
 0x295   : > { %2534 = vst [vmem:[%s3854_s20 + $0x80] sm:$0xff] %v2471_v46  ;;  %v2565_v20 = vadd.f32 %v2564_v30, %v2471_v46  ;;  %v2604_v31 = vmul.f32 %v2471_v46, %v2471_v46 }
 0x296   : > { %v2247_v22 = vpop.f32.mrf.mxu2 }
 0x297   : > { %v2635_v33 = vadd.f32 %v2634_v55, %v2604_v31  ;;  %v2248_v59 = vadd.f32 %v2247_v22, %v2135_v11  ;;  %v2360_v6 = vpop.f32.mrf.mxu3 }
 0x299   : > { %v2361_v26 = vadd.f32 %v2360_v6, %v2248_v59 }
 0x29a   : > { %v2140_v0 = vpop.f32.mrf.mxu1  ;;  %v2479_v41 = vpop.f32.mrf.mxu0 }
 0x29b   : > { %v2474_v12 = vadd.f32 %v2473_v16, %v2361_v26  ;;  %v2141_v47 = vadd.f32 %v2140_v0, %v3810_v63 }
 0x29d   : > { %2535 = vst [vmem:[%s3854_s20 + $0x88] sm:$0xff] %v2474_v12  ;;  %v2566_v35 = vadd.f32 %v2565_v20, %v2474_v12  ;;  %v2605_v56 = vmul.f32 %v2474_v12, %v2474_v12 }
 0x29e   : > { %v2250_v4 = vpop.f32.mrf.mxu2 }
 0x29f   : > { %v2636_v25 = vadd.f32 %v2635_v33, %v2605_v56  ;;  %v2251_v49 = vadd.f32 %v2250_v4, %v2138_v15  ;;  %v2363_v54 = vpop.f32.mrf.mxu3 }
 0x2a1   : > { %v2364_v62 = vadd.f32 %v2363_v54, %v2251_v49 }
 0x2a2   : > { %v2143_v60 = vpop.f32.mrf.mxu1  ;;  %v2482_v34 = vpop.f32.mrf.mxu0 }
 0x2a3   : > { %v2477_v50 = vadd.f32 %v2476_v53, %v2364_v62  ;;  %v2144_v38 = vadd.f32 %v2143_v60, %v3813_v57 }
 0x2a5   : > { %2536 = vst [vmem:[%s3854_s20 + $0x90] sm:$0xff] %v2477_v50  ;;  %v2567_v21 = vadd.f32 %v2566_v35, %v2477_v50  ;;  %v2606_v51 = vmul.f32 %v2477_v50, %v2477_v50 }
 0x2a6   : > { %v2253_v14 = vpop.f32.mrf.mxu2 }
 0x2a7   : > { %v2637_v13 = vadd.f32 %v2636_v25, %v2606_v51  ;;  %v2254_v2 = vadd.f32 %v2253_v14, %v2141_v47  ;;  %v2366_v10 = vpop.f32.mrf.mxu3 }
 0x2a9   : > { %v2367_v37 = vadd.f32 %v2366_v10, %v2254_v2 }
 0x2aa   : > { %v2146_v8 = vpop.f32.mrf.mxu1  ;;  %v2485_v44 = vpop.f32.mrf.mxu0 }
 0x2ab   : > { %v2480_v19 = vadd.f32 %v2479_v41, %v2367_v37  ;;  %v2147_v9 = vadd.f32 %v2146_v8, %v3816_v43 }
 0x2ad   : > { %2537 = vst [vmem:[%s3854_s20 + $0x98] sm:$0xff] %v2480_v19  ;;  %v2568_v29 = vadd.f32 %v2567_v21, %v2480_v19  ;;  %v2607_v32 = vmul.f32 %v2480_v19, %v2480_v19 }
 0x2ae   : > { %v2256_v42 = vpop.f32.mrf.mxu2 }
 0x2af   : > { %v2638_v7 = vadd.f32 %v2637_v13, %v2607_v32  ;;  %v2257_v63 = vadd.f32 %v2256_v42, %v2144_v38  ;;  %v2369_v16 = vpop.f32.mrf.mxu3 }
 0x2b1   : > { %v2370_v5 = vadd.f32 %v2369_v16, %v2257_v63 }
 0x2b2   : > { %v2149_v1 = vpop.f32.mrf.mxu1  ;;  %v2488_v30 = vpop.f32.mrf.mxu0 }
 0x2b3   : > { %v2483_v48 = vadd.f32 %v2482_v34, %v2370_v5  ;;  %v2150_v31 = vadd.f32 %v2149_v1, %v3819_v3 }
 0x2b5   : > { %2538 = vst [vmem:[%s3854_s20 + $0xa0] sm:$0xff] %v2483_v48  ;;  %v2569_v55 = vadd.f32 %v2568_v29, %v2483_v48  ;;  %v2608_v24 = vmul.f32 %v2483_v48, %v2483_v48 }
 0x2b6   : > { %v2259_v17 = vpop.f32.mrf.mxu2 }
 0x2b7   : > { %v2639_v27 = vadd.f32 %v2638_v7, %v2608_v24  ;;  %v2260_v57 = vadd.f32 %v2259_v17, %v2147_v9  ;;  %v2372_v58 = vpop.f32.mrf.mxu3 }
 0x2b9   : > { %v2373_v53 = vadd.f32 %v2372_v58, %v2260_v57 }
 0x2ba   : > { %v2152_v46 = vpop.f32.mrf.mxu1  ;;  %v2491_v11 = vpop.f32.mrf.mxu0 }
 0x2bb   : > { %v2486_v20 = vadd.f32 %v2485_v44, %v2373_v53  ;;  %v2153_v35 = vadd.f32 %v2152_v46, %v3822_v28 }
 0x2bd   : > { %2539 = vst [vmem:[%s3854_s20 + $0xa8] sm:$0xff] %v2486_v20  ;;  %v2570_v22 = vadd.f32 %v2569_v55, %v2486_v20  ;;  %v2609_v33 = vmul.f32 %v2486_v20, %v2486_v20 }
 0x2be   : > { %v2262_v59 = vpop.f32.mrf.mxu2 }
 0x2bf   : > { %v2640_v6 = vadd.f32 %v2639_v27, %v2609_v33  ;;  %v2263_v43 = vadd.f32 %v2262_v59, %v2150_v31  ;;  %v2375_v26 = vpop.f32.mrf.mxu3 }
 0x2c1   : > { %v2376_v0 = vadd.f32 %v2375_v26, %v2263_v43 }
 0x2c2   : > { %v2155_v41 = vpop.f32.mrf.mxu1  ;;  %v2494_v12 = vpop.f32.mrf.mxu0 }
 0x2c3   : > { %v2489_v15 = vadd.f32 %v2488_v30, %v2376_v0  ;;  %v2156_v47 = vadd.f32 %v2155_v41, %v3825_v40 }
 0x2c5   : > { %2540 = vst [vmem:[%s3854_s20 + $0xb0] sm:$0xff] %v2489_v15  ;;  %v2571_v56 = vadd.f32 %v2570_v22, %v2489_v15  ;;  %v2610_v4 = vmul.f32 %v2489_v15, %v2489_v15 }
 0x2c6   : > { %v2265_v25 = vpop.f32.mrf.mxu2 }
 0x2c7   : > { %v2641_v49 = vadd.f32 %v2640_v6, %v2610_v4  ;;  %v2266_v3 = vadd.f32 %v2265_v25, %v2153_v35  ;;  %v2378_v54 = vpop.f32.mrf.mxu3 }
 0x2c9   : > { %v2379_v62 = vadd.f32 %v2378_v54, %v2266_v3 }
 0x2ca   : > { %v2158_v60 = vpop.f32.mrf.mxu1  ;;  %v2497_v50 = vpop.f32.mrf.mxu0 }
 0x2cb   : > { %v2492_v34 = vadd.f32 %v2491_v11, %v2379_v62  ;;  %v2159_v44 = vadd.f32 %v2158_v60, %v3828_v61 }
 0x2cd   : > { %2541 = vst [vmem:[%s3854_s20 + $0xb8] sm:$0xff] %v2492_v34  ;;  %v2572_v21 = vadd.f32 %v2571_v56, %v2492_v34  ;;  %v2611_v51 = vmul.f32 %v2492_v34, %v2492_v34 }
 0x2ce   : > { %v2268_v14 = vpop.f32.mrf.mxu2 }
 0x2cf   : > { %v2642_v13 = vadd.f32 %v2641_v49, %v2611_v51  ;;  %v2269_v28 = vadd.f32 %v2268_v14, %v2156_v47  ;;  %v2381_v2 = vpop.f32.mrf.mxu3 }
 0x2d1   : > { %v2382_v10 = vadd.f32 %v2381_v2, %v2269_v28 }
 0x2d2   : > { %v2161_v37 = vpop.f32.mrf.mxu1  ;;  %v2500_v32 = vpop.f32.mrf.mxu0 }
 0x2d3   : > { %v2495_v8 = vadd.f32 %v2494_v12, %v2382_v10  ;;  %v2162_v1 = vadd.f32 %v2161_v37, %v3831_v39 }
 0x2d5   : > { %2542 = vst [vmem:[%s3854_s20 + $0xc0] sm:$0xff] %v2495_v8  ;;  %v2573_v19 = vadd.f32 %v2572_v21, %v2495_v8  ;;  %v2612_v38 = vmul.f32 %v2495_v8, %v2495_v8 }
 0x2d6   : > { %v2271_v29 = vpop.f32.mrf.mxu2 }
 0x2d7   : > { %v2643_v42 = vadd.f32 %v2642_v13, %v2612_v38  ;;  %v2272_v40 = vadd.f32 %v2271_v29, %v2159_v44  ;;  %v2384_v7 = vpop.f32.mrf.mxu3 }
 0x2d9   : > { %v2385_v63 = vadd.f32 %v2384_v7, %v2272_v40 }
 0x2da   : > { %v2164_v16 = vpop.f32.mrf.mxu1  ;;  %v2503_v17 = vpop.f32.mrf.mxu0 }
 0x2db   : > { %v2498_v5 = vadd.f32 %v2497_v50, %v2385_v63  ;;  %v2165_v53 = vadd.f32 %v2164_v16, %v3834_v18 }
 0x2dd   : > { %2543 = vst [vmem:[%s3854_s20 + $0xc8] sm:$0xff] %v2498_v5  ;;  %v2574_v30 = vadd.f32 %v2573_v19, %v2498_v5  ;;  %v2613_v48 = vmul.f32 %v2498_v5, %v2498_v5 }
 0x2de   : > { %v2274_v9 = vpop.f32.mrf.mxu2 }
 0x2df   : > { %v2644_v55 = vadd.f32 %v2643_v42, %v2613_v48  ;;  %v2275_v61 = vadd.f32 %v2274_v9, %v2162_v1  ;;  %v2387_v24 = vpop.f32.mrf.mxu3 }
 0x2e1   : > { %v2388_v27 = vadd.f32 %v2387_v24, %v2275_v61 }
 0x2e2   : > { %v2167_v58 = vpop.f32.mrf.mxu1  ;;  %v2506_v59 = vpop.f32.mrf.mxu0 }
 0x2e3   : > { %v2501_v57 = vadd.f32 %v2500_v32, %v2388_v27  ;;  %v2168_v43 = vadd.f32 %v2167_v58, %v3837_v52 }
 0x2e5   : > { %2544 = vst [vmem:[%s3854_s20 + $0xd0] sm:$0xff] %v2501_v57  ;;  %v2575_v46 = vadd.f32 %v2574_v30, %v2501_v57  ;;  %v2614_v11 = vmul.f32 %v2501_v57, %v2501_v57 }
 0x2e6   : > { %v2277_v20 = vpop.f32.mrf.mxu2 }
 0x2e7   : > { %v2645_v31 = vadd.f32 %v2644_v55, %v2614_v11  ;;  %v2278_v39 = vadd.f32 %v2277_v20, %v2165_v53  ;;  %v2390_v22 = vpop.f32.mrf.mxu3 }
 0x2e9   : > { %v2391_v33 = vadd.f32 %v2390_v22, %v2278_v39 }
 0x2ea   : > { %v2170_v12 = vpop.f32.mrf.mxu1  ;;  %v2509_v25 = vpop.f32.mrf.mxu0 }
 0x2eb   : > { %v2504_v6 = vadd.f32 %v2503_v17, %v2391_v33  ;;  %v2171_v49 = vadd.f32 %v2170_v12, %v3840_v36 }
 0x2ed   : > { %2545 = vst [vmem:[%s3854_s20 + $0xd8] sm:$0xff] %v2504_v6  ;;  %v2576_v26 = vadd.f32 %v2575_v46, %v2504_v6  ;;  %v2615_v0 = vmul.f32 %v2504_v6, %v2504_v6 }
 0x2ee   : > { %v2280_v41 = vpop.f32.mrf.mxu2 }
 0x2ef   : > { %v2646_v15 = vadd.f32 %v2645_v31, %v2615_v0  ;;  %v2281_v18 = vadd.f32 %v2280_v41, %v2168_v43  ;;  %v2393_v35 = vpop.f32.mrf.mxu3 }
 0x2f1   : > { %v2394_v56 = vadd.f32 %v2393_v35, %v2281_v18 }
 0x2f2   : > { %v2173_v50 = vpop.f32.mrf.mxu1  ;;  %v2512_v2 = vpop.f32.mrf.mxu0 }
 0x2f3   : > { %v2507_v4 = vadd.f32 %v2506_v59, %v2394_v56  ;;  %v2174_v51 = vadd.f32 %v2173_v50, %v3843_v23 }
 0x2f5   : > { %2546 = vst [vmem:[%s3854_s20 + $0xe0] sm:$0xff] %v2507_v4  ;;  %v2577_v3 = vadd.f32 %v2576_v26, %v2507_v4  ;;  %v2616_v54 = vmul.f32 %v2507_v4, %v2507_v4 }
 0x2f6   : > { %v2283_v62 = vpop.f32.mrf.mxu2 }
 0x2f7   : > { %v2647_v60 = vadd.f32 %v2646_v15, %v2616_v54  ;;  %v2284_v52 = vadd.f32 %v2283_v62, %v2171_v49  ;;  %v2396_v34 = vpop.f32.mrf.mxu3 }
 0x2f9   : > { %v2397_v47 = vadd.f32 %v2396_v34, %v2284_v52 }
 0x2fa   : > { %v2176_v44 = vpop.f32.mrf.mxu1  ;;  %v2515_v63 = vpop.f32.mrf.mxu0 }
 0x2fb   : > { %v2510_v21 = vadd.f32 %v2509_v25, %v2397_v47  ;;  %v2177_v38 = vadd.f32 %v2176_v44, %v3846_v45 }
 0x2fd   : > { %2547 = vst [vmem:[%s3854_s20 + $0xe8] sm:$0xff] %v2510_v21  ;;  %v2578_v14 = vadd.f32 %v2577_v3, %v2510_v21  ;;  %v2617_v13 = vmul.f32 %v2510_v21, %v2510_v21 }
 0x2fe   : > { %v2286_v28 = vpop.f32.mrf.mxu2 }
 0x2ff   : > { %v2648_v10 = vadd.f32 %v2647_v60, %v2617_v13  ;;  %v2287_v36 = vadd.f32 %v2286_v28, %v2174_v51  ;;  %v2399_v37 = vpop.f32.mrf.mxu3 }
 0x301   : > { %v2400_v8 = vadd.f32 %v2399_v37, %v2287_v36 }
 0x303   : > { %v2513_v19 = vadd.f32 %v2512_v2, %v2400_v8 }
 0x305   : > { %2548 = vst [vmem:[%s3854_s20 + $0xf0] sm:$0xff] %v2513_v19  ;;  %v2579_v29 = vadd.f32 %v2578_v14, %v2513_v19  ;;  %v2618_v32 = vmul.f32 %v2513_v19, %v2513_v19 }
 0x306   : > { %v2289_v42 = vpop.f32.mrf.mxu2 }
 0x307   : > { %v2649_v40 = vadd.f32 %v2648_v10, %v2618_v32  ;;  %v2290_v23 = vadd.f32 %v2289_v42, %v2177_v38  ;;  %v2402_v7 = vpop.f32.mrf.mxu3 }
 0x309   : > { %v2403_v16 = vadd.f32 %v2402_v7, %v2290_v23 }
 0x30b   : > { %v2516_v5 = vadd.f32 %v2515_v63, %v2403_v16 }
 0x30d   : > { %2549 = vst [vmem:[%s3854_s20 + $0xf8] sm:$0xff] %v2516_v5  ;;  %v2580_v1 = vadd.f32 %v2579_v29, %v2516_v5  ;;  %v2619_v30 = vmul.f32 %v2516_v5, %v2516_v5 }
 0x30f   : > { %v2581_v48 = vrot.slane %v2580_v1, 4  ;;  %v2650_v9 = vadd.f32 %v2649_v40, %v2619_v30 }
 0x311   : > { %v2582_v55 = vadd.f32 %v2581_v48, %v2580_v1  ;;  %v2651_v61 = vrot.slane %v2650_v9, 4 }
 0x313   : > { %v2583_v45 = vrot.slane %v2582_v55, 2  ;;  %v2652_v24 = vadd.f32 %v2651_v61, %v2650_v9 }
 0x315   : > { %v2584_v17 = vadd.f32 %v2583_v45, %v2582_v55  ;;  %v2653_v27 = vrot.slane %v2652_v24, 2 }
 0x317   : > { %v2585_v57 = vrot.slane %v2584_v17, 1  ;;  %v2654_v58 = vadd.f32 %v2653_v27, %v2652_v24 }
 0x319   : > { %v2586_v53 = vadd.f32 %v2585_v57, %v2584_v17  ;;  %v2655_v46 = vrot.slane %v2654_v58, 1 }
 0x31b   : > { %2587 = vst [vmem:[%s265_s24] sm:$0x1] %v2586_v53  ;;  %v2656_v11 = vadd.f32 %v2655_v46, %v2654_v58 }
 0x31d   : > { %2657 = vst [vmem:[%s268_s27] sm:$0x1] %v2656_v11 }
 0x31e PF: > { %s17_s21 = sadd.s32 1, %s2845_s21  }
 0x31f   : > { %p14_p4 = scmp.ge.s32.totalorder %s17_s21, 4  }
 0x321   :  { %16 = sbr.rel (!%p14_p4) target bundleno = 1 (0x1), region = 92 }

</bundles_post_ra>
